<compile_context>
chip_gen: v7x
topology: tpu7x:2x2x1
jax: 0.10.0
libtpu: 0.0.40
codegen_flags: <defaults>
</compile_context>

<pallas_src>
import functools

import jax
import jax.numpy as jnp
from jax import lax
from jax.experimental import pallas as pl
from jax.experimental.pallas import tpu as pltpu

K_NEIGHBORS = 3  # knn_graph(pos, k=3, ..., loop=True)


def _round_up(x, m):
    return ((x + m - 1) // m) * m


# ---------------------------------------------------------------------------
# Pallas kernels
# ---------------------------------------------------------------------------
def pointnet_layer_kernel(x_ref, w1_ref, w2_ref, o_ref):
    """One PointNetLayer (Linear->ReLU->Linear message MLP, 'max' aggregation)
    followed by the post-conv .relu().  Channels-first / lane-dense.

    x_ref  : (Cin+1, K*TN) bf16  pre-packed [h_j ; pos_j - pos_i ; 1] for the
             K neighbor slots of this node tile (k-minor, 128-aligned slabs).
    w1_ref : (H+1, Cin+1) bf16   [W1 | b1] plus a [0..0,1] row (keeps a ones
             row alive through matmul 1 so b2 folds into matmul 2).
    w2_ref : (H, H+1)     bf16   [W2 | b2]
    o_ref  : (H, TN)             relu(max_k message)
    """
    tn = o_ref.shape[1]
    # Message MLP; biases are folded into the matmuls (MXU is <<10% utilized at
    # these channel counts, so the extra contraction row/col is free and two
    # full VPU bias passes over (H, 3*TN) disappear).
    h1 = jnp.dot(w1_ref[...], x_ref[...], preferred_element_type=jnp.float32)
    h1 = jnp.maximum(h1, 0.0).astype(jnp.bfloat16)        # ReLU (ones row stays 1)
    msg = jnp.dot(w2_ref[...], h1, preferred_element_type=jnp.float32)  # (H, K*TN)
    # 'max' aggregation over the K neighbor slabs (static, 128-aligned slices).
    agg = jnp.maximum(jnp.maximum(msg[:, 0:tn], msg[:, tn:2 * tn]),
                      msg[:, 2 * tn:3 * tn])
    o_ref[...] = jnp.maximum(agg, 0.0).astype(o_ref.dtype)   # h = h.relu()


def pool_classifier_kernel(h_ref, bid_ref, wc_ref, bc_ref, o_ref, acc_ref):
    """global_max_pool(h, batch) + classifier Linear, tiled over node tiles.

    h_ref   : (H, TN) f32   conv2 output tile (channels-first)
    bid_ref : (1, TN) i32   graph id per node (padded nodes carry id >= G)
    wc      : (T, H) bf16   bc : (T, 1) f32
    o_ref   : (T, G) f32    (wrapper transposes back to (G, T))
    acc_ref : (H, G) f32    running per-graph max across node tiles
    """
    @pl.when(pl.program_id(0) == 0)
    def _init():
        acc_ref[...] = jnp.full(acc_ref.shape, -jnp.inf, dtype=acc_ref.dtype)

    h = h_ref[...].astype(jnp.float32)                     # (H, TN)
    bid = bid_ref[...]                                     # (1, TN)
    g = acc_ref.shape[1]
    tn = h.shape[1]
    # Membership mask built in-kernel from the graph-id tile (no dense (G, N)
    # f32 mask materialized in HBM / DMAed per tile).
    gids = lax.broadcasted_iota(jnp.int32, (g, tn), 0)
    member = bid == gids                                   # (G, TN) bool
    # TODO(synk): for large G the (H, G, TN) masked intermediate and the G*H
    # lane reductions should be replaced by per-graph segment reductions
    # (sorted batch + scalar-prefetched offsets) to keep XLU/VMEM flat in G.
    masked = jnp.where(member[None, :, :], h[:, None, :], -jnp.inf)   # (H, G, TN)
    acc_ref[...] = jnp.maximum(acc_ref[...], jnp.max(masked, axis=2))

    @pl.when(pl.program_id(0) == pl.num_programs(0) - 1)
    def _finalize():
        acc = acc_ref[...]
        # Empty graphs would pool to -inf; substitute 0 (torch_geometric's
        # scatter-max fill value) so the classifier output stays finite.
        pooled = jnp.where(acc > -jnp.inf, acc, 0.0).astype(jnp.bfloat16)   # (H, G)
        o_ref[...] = jnp.dot(wc_ref[...], pooled,
                             preferred_element_type=jnp.float32) + bc_ref[...]


# ---------------------------------------------------------------------------
# pallas_call wrappers
# ---------------------------------------------------------------------------
def pointnet_layer(x_packed, w1_aug, w2_aug, *, n_pad, tn, out_dtype):
    cp = x_packed.shape[0]
    h = w2_aug.shape[0]
    res = lambda a: pl.BlockSpec(a.shape, lambda i: (0, 0))     # resident weights
    return pl.pallas_call(
        pointnet_layer_kernel,
        out_shape=jax.ShapeDtypeStruct((h, n_pad), out_dtype),
        grid=(n_pad // tn,),
        in_specs=[pl.BlockSpec((cp, K_NEIGHBORS * tn), lambda i: (0, i)),
                  res(w1_aug), res(w2_aug)],
        out_specs=pl.BlockSpec((h, tn), lambda i: (0, i)),
        # Node tiles are independent -> "parallel" lets Mosaic shard them
        # across both TensorCores on v7x.
        compiler_params=pltpu.CompilerParams(dimension_semantics=("parallel",)),
    )(x_packed, w1_aug, w2_aug)


def pool_classifier(h, batch_ids, wc, bc, num_graphs, *, tn):
    hd, n_pad = h.shape
    t = wc.shape[0]
    res = lambda a: pl.BlockSpec(a.shape, lambda i: (0, 0))
    out = pl.pallas_call(
        pool_classifier_kernel,
        out_shape=jax.ShapeDtypeStruct((t, num_graphs), jnp.float32),
        grid=(n_pad // tn,),
        in_specs=[pl.BlockSpec((hd, tn), lambda i: (0, i)),
                  pl.BlockSpec((1, tn), lambda i: (0, i)),
                  res(wc), res(bc)],
        out_specs=pl.BlockSpec((t, num_graphs), lambda i: (0, 0)),
        scratch_shapes=[pltpu.VMEM((hd, num_graphs), jnp.float32)],
        # Running max across node tiles -> sequential reduction axis.
        compiler_params=pltpu.CompilerParams(dimension_semantics=("arbitrary",)),
    )(h, batch_ids, wc, bc)
    return out.T                                            # (G, T); tiny transpose


# ---------------------------------------------------------------------------
# Plain-JAX glue: kNN (computed once) + neighbor gather / packing
# ---------------------------------------------------------------------------
def knn_neighbors(pos_t, batch, k):
    """Emulates knn_graph(pos, k, batch, loop=True): k nearest same-graph
    neighbors per node, self included.  Returns (k, N) int32.

    # TODO(synk): O(N^2) distance matrix + top_k stays in plain JAX; for very
    # large N this should become a tiled Pallas distance + running-top-3 kernel.
    """
    n = pos_t.shape[1]
    d2 = jnp.sum((pos_t[:, :, None] - pos_t[:, None, :]) ** 2, axis=0)   # (N, N)
    d2 = jnp.where(batch[:, None] == batch[None, :], d2, jnp.inf)
    vals, nbr = lax.top_k(-d2, k)                                        # (N, k)
    # Graphs with < k nodes: top_k fills missing slots with cross-graph indices
    # at -inf; clamp those to self (duplicate self messages are a no-op under
    # max aggregation -> matches knn_graph simply emitting fewer edges).
    self_idx = jnp.broadcast_to(jnp.arange(n, dtype=nbr.dtype)[:, None], nbr.shape)
    nbr = jnp.where(vals > -jnp.inf, nbr, self_idx)
    return nbr.T.astype(jnp.int32)                                       # (k, N)


def pointnet_forward(params, pos, batch, num_graphs, *, tile_n=512):
    bf = jnp.bfloat16
    n = pos.shape[0]
    # Node tile: multiple of 128, capped by tile_n; pad N to a tile multiple so
    # the grid uses uniform lane-dense blocks (no full-N fallback block).
    tn = min(tile_n, _round_up(n, 128))
    n_pad = _round_up(n, tn)
    n_tiles = n_pad // tn

    pos_t = jnp.pad(pos.T.astype(jnp.float32), ((0, 0), (0, n_pad - n)))  # (3, Np)
    # Padded nodes get graph id == num_graphs: never matches a real graph in
    # the kNN mask or in the pool, so they cannot contaminate results.
    batch_p = jnp.pad(batch.astype(jnp.int32), (0, n_pad - n),
                      constant_values=num_graphs)

    # kNN computed ONCE and reused by both conv layers.
    nbr_t = knn_neighbors(pos_t, batch_p, K_NEIGHBORS)                    # (K, Np)
    rel = [pos_t[:, nbr_t[j]] - pos_t for j in range(K_NEIGHBORS)]        # K x (3, Np)
    ones = jnp.ones((1, n_pad), jnp.float32)

    def pack(feat_t):
        """Gather per-neighbor features and pre-pack them tile-major/k-minor
        into ONE (C+4, K*Np) bf16 operand: single input stream per conv tile,
        no in-kernel concat, half the DMA bytes (bf16).
        # TODO(synk): the gather+pack still round-trips HBM via XLA; an
        # in-kernel gather (nbr indices in SMEM) would save those bytes for
        # large N.
        """
        cp = feat_t.shape[0] + 3 + 1
        slabs = [jnp.concatenate([feat_t[:, nbr_t[j]].astype(jnp.float32),
                                  rel[j], ones], axis=0)                  # (Cp, Np)
                 for j in range(K_NEIGHBORS)]
        x = jnp.stack([s.reshape(cp, n_tiles, tn) for s in slabs], axis=2)
        return x.reshape(cp, n_tiles * K_NEIGHBORS * tn).astype(bf)

    def aug_weights(w1, b1, w2, b2):
        """Fold biases into the matmuls (ones row in x, bias column in W)."""
        h, cin = w1.shape
        w1_aug = jnp.concatenate([w1, b1.reshape(h, 1)], axis=1)
        keep_ones = jnp.concatenate([jnp.zeros((1, cin), w1.dtype),
                                     jnp.ones((1, 1), w1.dtype)], axis=1)
        w1_aug = jnp.concatenate([w1_aug, keep_ones], axis=0).astype(bf)    # (H+1, Cin+1)
        w2_aug = jnp.concatenate([w2, b2.reshape(h, 1)], axis=1).astype(bf)  # (H, H+1)
        return w1_aug, w2_aug

    w1a, b1a, w2a, b2a = params["conv1"]
    w1b, b1b, w2b, b2b = params["conv2"]
    wc, bc = params["classifier"]
    w1a_aug, w2a_aug = aug_weights(w1a, b1a, w2a, b2a)
    w1b_aug, w2b_aug = aug_weights(w1b, b1b, w2b, b2b)

    # conv1: h_j = pos_j.  Output stored bf16 (only ever consumed after a bf16
    # cast when building conv2's operand) -> halves its HBM writeback/re-read.
    h = pointnet_layer(pack(pos_t), w1a_aug, w2a_aug,
                       n_pad=n_pad, tn=tn, out_dtype=bf)                   # (32, Np) bf16
    # conv2: h_j = conv1 output at the neighbor.
    h = pointnet_layer(pack(h), w1b_aug, w2b_aug,
                       n_pad=n_pad, tn=tn, out_dtype=jnp.float32)          # (32, Np) f32

    # global_max_pool + classifier (running-max accumulator over node tiles).
    return pool_classifier(h, batch_p.reshape(1, n_pad), wc.astype(bf), bc,
                           num_graphs, tn=tn)                              # (G, T)


# ---------------------------------------------------------------------------
# Deterministic parameter init (PyTorch Linear-style uniform, fixed seed)
# ---------------------------------------------------------------------------
def linear_params(key, fan_in, fan_out):
    kw, kb = jax.random.split(key)
    bound = 1.0 / float(fan_in) ** 0.5
    w = jax.random.uniform(kw, (fan_out, fan_in), jnp.float32, -bound, bound)
    b = jax.random.uniform(kb, (fan_out, 1), jnp.float32, -bound, bound)
    return w, b


if __name__ == "__main__":
    tgt = 4
    num_graphs = 2
    pts_per_graph = 500                 # N = 1000 -> padded to 1024, 2 node tiles
    n = num_graphs * pts_per_graph

    pos = jax.random.normal(jax.random.PRNGKey(0), (n, 3), jnp.float32)
    batch = jnp.repeat(jnp.arange(num_graphs, dtype=jnp.int32), pts_per_graph)

    pkeys = jax.random.split(jax.random.PRNGKey(12345), 5)
    params = {
        "conv1": (*linear_params(pkeys[0], 3 + 3, 32),
                  *linear_params(pkeys[1], 32, 32)),
        "conv2": (*linear_params(pkeys[2], 32 + 3, 32),
                  *linear_params(pkeys[3], 32, 32)),
        "classifier": linear_params(pkeys[4], 32, tgt),
    }

    fwd = jax.jit(functools.partial(pointnet_forward),
                  static_argnames=("num_graphs", "tile_n"))
    out = fwd(params, pos, batch, num_graphs=num_graphs, tile_n=512)
    out = jax.block_until_ready(out)
    assert out.shape == (num_graphs, tgt)
    assert bool(jnp.all(jnp.isfinite(out)))
    print("KERNEL_OK")
</pallas_src>

<mosaic_0001>
module attributes {stable_mosaic.version = 11 : i64} {
  func.func @pointnet_layer_kernel(%arg0: i32, %arg1: memref<7x1536xbf16, #tpu.memory_space<vmem>>, %arg2: memref<33x7xbf16, #tpu.memory_space<vmem>>, %arg3: memref<32x33xbf16, #tpu.memory_space<vmem>>, %arg4: memref<32x512xbf16, #tpu.memory_space<vmem>>) attributes {dimension_semantics = [#tpu.dimension_semantics<parallel>], iteration_bounds = array<i64: 2>, scalar_prefetch = 0 : i64, scratch_operands = 0 : i64, tpu.core_type = #tpu.core_type<tc>, window_params = [{transform_indices = @transform_0, window_bounds = array<i64: 7, 1536>}, {pipeline_mode = #tpu.pipeline_mode<synchronous>, transform_indices = @transform_1, window_bounds = array<i64: 33, 7>}, {pipeline_mode = #tpu.pipeline_mode<synchronous>, transform_indices = @transform_2, window_bounds = array<i64: 32, 33>}, {transform_indices = @transform_3, window_bounds = array<i64: 32, 512>}]} {
    %c0 = arith.constant 0 : index
    %c0_0 = arith.constant 0 : index
    %0 = vector.load %arg2[%c0, %c0_0] : memref<33x7xbf16, #tpu.memory_space<vmem>>, vector<33x7xbf16>
    %c0_1 = arith.constant 0 : index
    %c0_2 = arith.constant 0 : index
    %1 = vector.load %arg1[%c0_1, %c0_2] : memref<7x1536xbf16, #tpu.memory_space<vmem>>, vector<7x1536xbf16>
    %cst = arith.constant dense<0.000000e+00> : vector<33x1536xf32>
    %2 = tpu.matmul %0, %1, %cst {dimension_numbers = #tpu.dot_dimension_numbers<[1], [0], [0], [1], [0, 0, 1, 1], [], []>} : vector<33x7xbf16>, vector<7x1536xbf16>, vector<33x1536xf32> -> vector<33x1536xf32>
    %cst_3 = arith.constant 0.000000e+00 : f32
    %3 = vector.broadcast %cst_3 : f32 to vector<33x1536xf32>
    %4 = arith.maximumf %2, %3 : vector<33x1536xf32>
    %5 = arith.truncf %4 : vector<33x1536xf32> to vector<33x1536xbf16>
    %c0_4 = arith.constant 0 : index
    %c0_5 = arith.constant 0 : index
    %6 = vector.load %arg3[%c0_4, %c0_5] : memref<32x33xbf16, #tpu.memory_space<vmem>>, vector<32x33xbf16>
    %cst_6 = arith.constant dense<0.000000e+00> : vector<32x1536xf32>
    %7 = tpu.matmul %6, %5, %cst_6 {dimension_numbers = #tpu.dot_dimension_numbers<[1], [0], [0], [1], [0, 0, 1, 1], [], []>} : vector<32x33xbf16>, vector<33x1536xbf16>, vector<32x1536xf32> -> vector<32x1536xf32>
    %8 = vector.extract_strided_slice %7 {offsets = [0, 0], sizes = [32, 512], strides = [1, 1]} : vector<32x1536xf32> to vector<32x512xf32>
    %9 = vector.extract_strided_slice %7 {offsets = [0, 512], sizes = [32, 512], strides = [1, 1]} : vector<32x1536xf32> to vector<32x512xf32>
    %10 = arith.maximumf %8, %9 : vector<32x512xf32>
    %11 = vector.extract_strided_slice %7 {offsets = [0, 1024], sizes = [32, 512], strides = [1, 1]} : vector<32x1536xf32> to vector<32x512xf32>
    %12 = arith.maximumf %10, %11 : vector<32x512xf32>
    %cst_7 = arith.constant 0.000000e+00 : f32
    %13 = vector.broadcast %cst_7 : f32 to vector<32x512xf32>
    %14 = arith.maximumf %12, %13 : vector<32x512xf32>
    %15 = arith.truncf %14 : vector<32x512xf32> to vector<32x512xbf16>
    %c0_8 = arith.constant 0 : index
    %c0_9 = arith.constant 0 : index
    %16 = vector.load %arg4[%c0_8, %c0_9] : memref<32x512xbf16, #tpu.memory_space<vmem>>, vector<32x512xbf16>
    tpu.vector_store %arg4[%c0_8, %c0_9], %15 {strides = array<i32>} : memref<32x512xbf16, #tpu.memory_space<vmem>>, vector<32x512xbf16>,
    return
  }
  func.func @transform_0(%arg0: i32) -> (i32, i32) {
    %c0_i32 = arith.constant 0 : i32
    %c0_i32_0 = arith.constant 0 : i32
    return %c0_i32, %arg0 : i32, i32
  }
  func.func @transform_1(%arg0: i32) -> (i32, i32) {
    %c0_i32 = arith.constant 0 : i32
    %c0_i32_0 = arith.constant 0 : i32
    %c0_i32_1 = arith.constant 0 : i32
    return %c0_i32, %c0_i32_0 : i32, i32
  }
  func.func @transform_2(%arg0: i32) -> (i32, i32) {
    %c0_i32 = arith.constant 0 : i32
    %c0_i32_0 = arith.constant 0 : i32
    %c0_i32_1 = arith.constant 0 : i32
    return %c0_i32, %c0_i32_0 : i32, i32
  }
  func.func @transform_3(%arg0: i32) -> (i32, i32) {
    %c0_i32 = arith.constant 0 : i32
    %c0_i32_0 = arith.constant 0 : i32
    return %c0_i32, %arg0 : i32, i32
  }
}

module attributes {stable_mosaic.version = 11 : i64} {
  func.func @pointnet_layer_kernel(%arg0: i32, %arg1: memref<36x1536xbf16, #tpu.memory_space<vmem>>, %arg2: memref<33x36xbf16, #tpu.memory_space<vmem>>, %arg3: memref<32x33xbf16, #tpu.memory_space<vmem>>, %arg4: memref<32x512xf32, #tpu.memory_space<vmem>>) attributes {dimension_semantics = [#tpu.dimension_semantics<parallel>], iteration_bounds = array<i64: 2>, scalar_prefetch = 0 : i64, scratch_operands = 0 : i64, tpu.core_type = #tpu.core_type<tc>, window_params = [{transform_indices = @transform_0, window_bounds = array<i64: 36, 1536>}, {pipeline_mode = #tpu.pipeline_mode<synchronous>, transform_indices = @transform_1, window_bounds = array<i64: 33, 36>}, {pipeline_mode = #tpu.pipeline_mode<synchronous>, transform_indices = @transform_2, window_bounds = array<i64: 32, 33>}, {transform_indices = @transform_3, window_bounds = array<i64: 32, 512>}]} {
    %c0 = arith.constant 0 : index
    %c0_0 = arith.constant 0 : index
    %0 = vector.load %arg2[%c0, %c0_0] : memref<33x36xbf16, #tpu.memory_space<vmem>>, vector<33x36xbf16>
    %c0_1 = arith.constant 0 : index
    %c0_2 = arith.constant 0 : index
    %1 = vector.load %arg1[%c0_1, %c0_2] : memref<36x1536xbf16, #tpu.memory_space<vmem>>, vector<36x1536xbf16>
    %cst = arith.constant dense<0.000000e+00> : vector<33x1536xf32>
    %2 = tpu.matmul %0, %1, %cst {dimension_numbers = #tpu.dot_dimension_numbers<[1], [0], [0], [1], [0, 0, 1, 1], [], []>} : vector<33x36xbf16>, vector<36x1536xbf16>, vector<33x1536xf32> -> vector<33x1536xf32>
    %cst_3 = arith.constant 0.000000e+00 : f32
    %3 = vector.broadcast %cst_3 : f32 to vector<33x1536xf32>
    %4 = arith.maximumf %2, %3 : vector<33x1536xf32>
    %5 = arith.truncf %4 : vector<33x1536xf32> to vector<33x1536xbf16>
    %c0_4 = arith.constant 0 : index
    %c0_5 = arith.constant 0 : index
    %6 = vector.load %arg3[%c0_4, %c0_5] : memref<32x33xbf16, #tpu.memory_space<vmem>>, vector<32x33xbf16>
    %cst_6 = arith.constant dense<0.000000e+00> : vector<32x1536xf32>
    %7 = tpu.matmul %6, %5, %cst_6 {dimension_numbers = #tpu.dot_dimension_numbers<[1], [0], [0], [1], [0, 0, 1, 1], [], []>} : vector<32x33xbf16>, vector<33x1536xbf16>, vector<32x1536xf32> -> vector<32x1536xf32>
    %8 = vector.extract_strided_slice %7 {offsets = [0, 0], sizes = [32, 512], strides = [1, 1]} : vector<32x1536xf32> to vector<32x512xf32>
    %9 = vector.extract_strided_slice %7 {offsets = [0, 512], sizes = [32, 512], strides = [1, 1]} : vector<32x1536xf32> to vector<32x512xf32>
    %10 = arith.maximumf %8, %9 : vector<32x512xf32>
    %11 = vector.extract_strided_slice %7 {offsets = [0, 1024], sizes = [32, 512], strides = [1, 1]} : vector<32x1536xf32> to vector<32x512xf32>
    %12 = arith.maximumf %10, %11 : vector<32x512xf32>
    %cst_7 = arith.constant 0.000000e+00 : f32
    %13 = vector.broadcast %cst_7 : f32 to vector<32x512xf32>
    %14 = arith.maximumf %12, %13 : vector<32x512xf32>
    %c0_8 = arith.constant 0 : index
    %c0_9 = arith.constant 0 : index
    %15 = vector.load %arg4[%c0_8, %c0_9] : memref<32x512xf32, #tpu.memory_space<vmem>>, vector<32x512xf32>
    tpu.vector_store %arg4[%c0_8, %c0_9], %14 {strides = array<i32>} : memref<32x512xf32, #tpu.memory_space<vmem>>, vector<32x512xf32>,
    return
  }
  func.func @transform_0(%arg0: i32) -> (i32, i32) {
    %c0_i32 = arith.constant 0 : i32
    %c0_i32_0 = arith.constant 0 : i32
    return %c0_i32, %arg0 : i32, i32
  }
  func.func @transform_1(%arg0: i32) -> (i32, i32) {
    %c0_i32 = arith.constant 0 : i32
    %c0_i32_0 = arith.constant 0 : i32
    %c0_i32_1 = arith.constant 0 : i32
    return %c0_i32, %c0_i32_0 : i32, i32
  }
  func.func @transform_2(%arg0: i32) -> (i32, i32) {
    %c0_i32 = arith.constant 0 : i32
    %c0_i32_0 = arith.constant 0 : i32
    %c0_i32_1 = arith.constant 0 : i32
    return %c0_i32, %c0_i32_0 : i32, i32
  }
  func.func @transform_3(%arg0: i32) -> (i32, i32) {
    %c0_i32 = arith.constant 0 : i32
    %c0_i32_0 = arith.constant 0 : i32
    return %c0_i32, %arg0 : i32, i32
  }
}

module attributes {stable_mosaic.version = 11 : i64} {
  func.func @pool_classifier_kernel(%arg0: i32, %arg1: memref<32x512xf32, #tpu.memory_space<vmem>>, %arg2: memref<1x512xi32, #tpu.memory_space<vmem>>, %arg3: memref<4x32xbf16, #tpu.memory_space<vmem>>, %arg4: memref<4x1xf32, #tpu.memory_space<vmem>>, %arg5: memref<4x2xf32, #tpu.memory_space<vmem>>, %arg6: memref<32x2xf32, #tpu.memory_space<vmem>>) attributes {dimension_semantics = [#tpu.dimension_semantics<arbitrary>], iteration_bounds = array<i64: 2>, scalar_prefetch = 0 : i64, scratch_operands = 1 : i64, tpu.core_type = #tpu.core_type<tc>, window_params = [{transform_indices = @transform_0, window_bounds = array<i64: 32, 512>}, {transform_indices = @transform_1, window_bounds = array<i64: 1, 512>}, {pipeline_mode = #tpu.pipeline_mode<synchronous>, transform_indices = @transform_2, window_bounds = array<i64: 4, 32>}, {pipeline_mode = #tpu.pipeline_mode<synchronous>, transform_indices = @transform_3, window_bounds = array<i64: 4, 1>}, {pipeline_mode = #tpu.pipeline_mode<synchronous>, transform_indices = @transform_4, window_bounds = array<i64: 4, 2>}]} {
    %c0_i32 = arith.constant 0 : i32
    %0 = arith.cmpi eq, %arg0, %c0_i32 : i32
    %1 = arith.extui %0 : i1 to i32
    %c0_i32_0 = arith.constant 0 : i32
    %2 = arith.cmpi ne, %1, %c0_i32_0 : i32
    scf.if %2 {
      %cst_10 = arith.constant 0xFF800000 : f32
      %23 = vector.broadcast %cst_10 : f32 to vector<32x2xf32>
      %c0_11 = arith.constant 0 : index
      %c0_12 = arith.constant 0 : index
      %24 = vector.load %arg6[%c0_11, %c0_12] : memref<32x2xf32, #tpu.memory_space<vmem>>, vector<32x2xf32>
      tpu.vector_store %arg6[%c0_11, %c0_12], %23 {strides = array<i32>} : memref<32x2xf32, #tpu.memory_space<vmem>>, vector<32x2xf32>,
    } else {
    }
    %c0 = arith.constant 0 : index
    %c0_1 = arith.constant 0 : index
    %3 = vector.load %arg1[%c0, %c0_1] : memref<32x512xf32, #tpu.memory_space<vmem>>, vector<32x512xf32>
    %c0_2 = arith.constant 0 : index
    %c0_3 = arith.constant 0 : index
    %4 = vector.load %arg2[%c0_2, %c0_3] : memref<1x512xi32, #tpu.memory_space<vmem>>, vector<1x512xi32>
    %5 = tpu.iota {dimensions = array<i32: 0>} : vector<2x512xi32>
    %6 = vector.broadcast %4 : vector<1x512xi32> to vector<2x512xi32>
    %7 = arith.cmpi eq, %6, %5 : vector<2x512xi32>
    %8 = vector.shape_cast %7 : vector<2x512xi1> to vector<1x2x512xi1>
    %9 = vector.shape_cast %3 : vector<32x512xf32> to vector<32x1x512xf32>
    %cst = arith.constant 0xFF800000 : f32
    %10 = vector.shape_cast %8 : vector<1x2x512xi1> to vector<1x2x512xi1>
    %11 = vector.broadcast %10 : vector<1x2x512xi1> to vector<32x2x512xi1>
    %12 = vector.shape_cast %9 : vector<32x1x512xf32> to vector<32x1x512xf32>
    %13 = vector.broadcast %12 : vector<32x1x512xf32> to vector<32x2x512xf32>
    %14 = vector.broadcast %cst : f32 to vector<32x2x512xf32>
    %15 = arith.select %11, %13, %14 : vector<32x2x512xi1>, vector<32x2x512xf32>
    %c0_4 = arith.constant 0 : index
    %c0_5 = arith.constant 0 : index
    %16 = vector.load %arg6[%c0_4, %c0_5] : memref<32x2xf32, #tpu.memory_space<vmem>>, vector<32x2xf32>
    %cst_6 = arith.constant dense<0xFF800000> : vector<32x2xf32>
    %17 = vector.multi_reduction <maximumf>, %15, %cst_6 [2] : vector<32x2x512xf32> to vector<32x2xf32>
    %18 = arith.maximumf %16, %17 : vector<32x2xf32>
    %c0_7 = arith.constant 0 : index
    %c0_8 = arith.constant 0 : index
    %19 = vector.load %arg6[%c0_7, %c0_8] : memref<32x2xf32, #tpu.memory_space<vmem>>, vector<32x2xf32>
    tpu.vector_store %arg6[%c0_7, %c0_8], %18 {strides = array<i32>} : memref<32x2xf32, #tpu.memory_space<vmem>>, vector<32x2xf32>,
    %c1_i32 = arith.constant 1 : i32
    %20 = arith.cmpi eq, %arg0, %c1_i32 : i32
    %21 = arith.extui %20 : i1 to i32
    %c0_i32_9 = arith.constant 0 : i32
    %22 = arith.cmpi ne, %21, %c0_i32_9 : i32
    scf.if %22 {
      %c0_10 = arith.constant 0 : index
      %c0_11 = arith.constant 0 : index
      %23 = vector.load %arg6[%c0_10, %c0_11] : memref<32x2xf32, #tpu.memory_space<vmem>>, vector<32x2xf32>
      %cst_12 = arith.constant 0xFF800000 : f32
      %24 = vector.broadcast %cst_12 : f32 to vector<32x2xf32>
      %25 = arith.cmpf ogt, %23, %24 : vector<32x2xf32>
      %cst_13 = arith.constant 0.000000e+00 : f32
      %26 = vector.broadcast %cst_13 : f32 to vector<32x2xf32>
      %27 = arith.select %25, %23, %26 : vector<32x2xi1>, vector<32x2xf32>
      %28 = arith.truncf %27 : vector<32x2xf32> to vector<32x2xbf16>
      %c0_14 = arith.constant 0 : index
      %c0_15 = arith.constant 0 : index
      %29 = vector.load %arg3[%c0_14, %c0_15] : memref<4x32xbf16, #tpu.memory_space<vmem>>, vector<4x32xbf16>
      %cst_16 = arith.constant dense<0.000000e+00> : vector<4x2xf32>
      %30 = tpu.matmul %29, %28, %cst_16 {dimension_numbers = #tpu.dot_dimension_numbers<[1], [0], [0], [1], [0, 0, 1, 1], [], []>} : vector<4x32xbf16>, vector<32x2xbf16>, vector<4x2xf32> -> vector<4x2xf32>
      %c0_17 = arith.constant 0 : index
      %c0_18 = arith.constant 0 : index
      %31 = vector.load %arg4[%c0_17, %c0_18] : memref<4x1xf32, #tpu.memory_space<vmem>>, vector<4x1xf32>
      %32 = vector.broadcast %31 : vector<4x1xf32> to vector<4x2xf32>
      %33 = arith.addf %30, %32 : vector<4x2xf32>
      %c0_19 = arith.constant 0 : index
      %c0_20 = arith.constant 0 : index
      %34 = vector.load %arg5[%c0_19, %c0_20] : memref<4x2xf32, #tpu.memory_space<vmem>>, vector<4x2xf32>
      tpu.vector_store %arg5[%c0_19, %c0_20], %33 {strides = array<i32>} : memref<4x2xf32, #tpu.memory_space<vmem>>, vector<4x2xf32>,
    } else {
    }
    return
  }
  func.func @transform_0(%arg0: i32) -> (i32, i32) {
    %c0_i32 = arith.constant 0 : i32
    %c0_i32_0 = arith.constant 0 : i32
    return %c0_i32, %arg0 : i32, i32
  }
  func.func @transform_1(%arg0: i32) -> (i32, i32) {
    %c0_i32 = arith.constant 0 : i32
    %c0_i32_0 = arith.constant 0 : i32
    return %c0_i32, %arg0 : i32, i32
  }
  func.func @transform_2(%arg0: i32) -> (i32, i32) {
    %c0_i32 = arith.constant 0 : i32
    %c0_i32_0 = arith.constant 0 : i32
    %c0_i32_1 = arith.constant 0 : i32
    return %c0_i32, %c0_i32_0 : i32, i32
  }
  func.func @transform_3(%arg0: i32) -> (i32, i32) {
    %c0_i32 = arith.constant 0 : i32
    %c0_i32_0 = arith.constant 0 : i32
    %c0_i32_1 = arith.constant 0 : i32
    return %c0_i32, %c0_i32_0 : i32, i32
  }
  func.func @transform_4(%arg0: i32) -> (i32, i32) {
    %c0_i32 = arith.constant 0 : i32
    %c0_i32_0 = arith.constant 0 : i32
    %c0_i32_1 = arith.constant 0 : i32
    return %c0_i32, %c0_i32_0 : i32, i32
  }
}

</mosaic_0001>

<bundles_post_ra>
// kernel: pointnet_forward.3
= control target key start
LH: loop header
LB: loop body
LE: loop exit
PB: predicated region body
PF: predicated region fallthrough
CT: control target
= control target key end

     0   :  { %s1473_s12 = smov 0   ;;  %s1475_s13 = smov 0   ;;  %s1677_s0 = inlined_call_operand.vmem [shape: bf16[7,3072], index: 0, kind: input, shape index: {}]   ;;  %s1678_s1 = inlined_call_operand.vmem [shape: bf16[33,7], index: 1, kind: input, shape index: {}]   ;;  %s1679_s2 = inlined_call_operand.vmem [shape: bf16[32,33], index: 2, kind: input, shape index: {}]   ;;  %s1680_s3 = inlined_call_operand.vmem [shape: bf16[32,1024], index: 3, kind: output, shape index: {}]  }
   0x1   :  { %s1477_s14 = smov 0  }
   0x2 LB: > { %s1486_s15 = sadd.s32 4294967295, %s1449_s14   ;;  %s1488_s16 = sadd.s32 1, %s1449_s14   ;;  %s1449_s14 = sphi %s1477_s14, %s1684_s14   ;;  %s1445_s13 = sphi %s1475_s13, %s1683_s13   ;;  %s1441_s12 = sphi %s1473_s12, %s1682_s12  }
   0x3   : > { %s85_s17 = ssub.s32 %s1449_s14, %s1488_s16  ;;  %s88_s18 = sadd.s32 1, %s1445_s13 }
   0x4   : > { %p86_p0 = scmp.eq.s32.totalorder %s85_s17, 0  ;;  %p98_p1 = scmp.ne.s32.totalorder %s1445_s13, %s1441_s12 }
   0x5   : > { %p99_p2 = scmp.eq.s32.totalorder %s1486_s15, 1  ;;  %p1312_p3 = scmp.ge.s32.totalorder %s1449_s14, 1 }
   0x6   : > { %s1496_s19 = scalar_select %p86_p0, %s1445_s13, %s88_s18  }
   0x7   : > { %p1498_p4 = por %p99_p2, %p98_p1  ;;  %p138_p5 = scmp.lt.s32.totalorder %s1449_s14, 3 }
   0x9   : > { %p139_p6 = pnand %p1312_p3, %p138_p5 }
   0xa   : > { %s161_s21 = smul.u32 (!%p139_p6), 12, %s1486_s15  ;;  %vm233_vm0 = vcmask (!%p139_p6), 1042432   ;;  %v1451_v0 = vmov (!%p139_p6), 0   ;;  %vm234_vm1 = vcmask (!%p139_p6), 1043456   ;;  %v1452_v1 = vmov (!%p139_p6), 65535   ;;  %v1414_v24 = vld [vmem:[%s1678_s1] sm:$0xff] (!%p139_p6)  }
   0xb   : > { %142 = sbr.rel (%p139_p6) target bundleno = 555 (0x22b), region = 32  ;;  %305 = vmatprep.mubr.bf16.mxu0 (!%p139_p6), %v1451_v0  ;;  %366 = vmatprep.mubr.bf16.mxu1 (!%p139_p6), %v1451_v0  ;;  %v235_v2 = vsel (!%p139_p6), %vm233_vm0, 4294967295, %v1452_v1  ;;  %vm223_vm2 = vcmask (!%p139_p6), 56320   ;;  %v1419_v31 = vld [vmem:[%s1678_s1 + $0x8] sm:$0xff] (!%p139_p6)   ;;  %vm756_vm3 = vcmask (!%p139_p6), 1040384   ;;  %vm749_vm4 = vcmask (!%p139_p6), 269312  }
   0xc   : > { %p162_p7 = scmp.lt.s32.totalorder (!%p139_p6), %s161_s21, 23  ;;  %v236_v4 = vsel (!%p139_p6), %vm234_vm1, %v235_v2, 0  ;;  %v1420_v32 = vld [vmem:[%s1678_s1 + $0x10] ss:$0 sps:$4 sm:$0x11] (!%p139_p6)   ;;  %s158_s9 = sand.u32 (!%p139_p6), 1, %s1441_s12  }
   0xd   : > { %s1313_s10 = sshll.u32 (!%p139_p6), %s158_s9, 6 }
   0xe   : > { %s1643_s11 = scalar_lea.vmem (!%p139_p6), [#allocation2], %s1313_s10 }
  0x12   : > { %s1686_s21 = smov (!%p162_p7, %s161_s21), 23  ;;  %s1383_s12 = sshll.u32 (%p1498_p4), %s1486_s15, 4 }
  0x13   : > { %s1314_s22 = sshll.u32 %s1686_s21, 2  ;;  %s1226_s18 = scalar_lea.vmem (%p1498_p4), %s1680_s3, %s1383_s12 }
  0x14   : > { %s165_s25 = scalar_lea.vmem %s1677_s0, %s1314_s22 }
  0x15   : > { %v174_v3 = vld [vmem:[%s165_s25] sm:$0xff]  ;;  %v175_v5 = vld [vmem:[%s165_s25 + $0x8] sm:$0xff]  ;;  %v176_v6 = vld [vmem:[%s165_s25 + $0x10] sm:$0xff] }
  0x16   : > { %v1319_v7 = vcombine.high %v174_v3, %v174_v3  ;;  %v1321_v8 = vcombine.high %v175_v5, %v175_v5  ;;  %v1318_v9 = vcombine.low %v174_v3, %v174_v3  ;;  %v1320_v10 = vcombine.low %v175_v5, %v175_v5  ;;  %v177_v11 = vld [vmem:[%s165_s25 + $0x18] sm:$0xff]  ;;  %v178_v16 = vld [vmem:[%s165_s25 + $0x20] sm:$0xff]  ;;  %v179_v21 = vld [vmem:[%s165_s25 + $0x28] sm:$0xff] }
  0x17   : > { %v1322_v12 = vcombine.low %v176_v6, %v176_v6  ;;  %v1323_v13 = vcombine.high %v176_v6, %v176_v6  ;;  %v1324_v14 = vcombine.low %v177_v11, %v177_v11  ;;  %v1325_v15 = vcombine.high %v177_v11, %v177_v11 }
  0x18   : > { %v241_v17 = vand.u32 %v1319_v7, %v236_v4  ;;  %v247_v18 = vand.u32 %v1321_v8, %v236_v4  ;;  %v238_v19 = vand.u32 %v1318_v9, %v236_v4  ;;  %v244_v20 = vand.u32 %v1320_v10, %v236_v4 }
  0x19   : > { %v253_v22 = vand.u32 %v1323_v13, %v236_v4  ;;  %v259_v23 = vand.u32 %v1325_v15, %v236_v4  ;;  %v1327_v25 = vcombine.high %v178_v16, %v178_v16  ;;  %v250_v26 = vand.u32 %v1322_v12, %v236_v4 }
  0x1a   : > { %273 = vmatprep.subr.bf16.mxu0 %v241_v17  ;;  %334 = vmatprep.subr.bf16.mxu1 %v247_v18  ;;  %v256_v27 = vand.u32 %v1324_v14, %v236_v4  ;;  %v1329_v28 = vcombine.high %v179_v21, %v179_v21  ;;  %v1326_v33 = vcombine.low %v178_v16, %v178_v16 }
  0x1b   : > { %274 = vmatpush1.bf16.msra.mxu0 %v238_v19  ;;  %335 = vmatpush1.bf16.msra.mxu1 %v244_v20  ;;  %v265_v29 = vand.u32 %v1327_v25, %v236_v4  ;;  %v1328_v34 = vcombine.low %v179_v21, %v179_v21  ;;  %v1554_v25 = vsel %vm756_vm3, 65535, %v1451_v0 }
  0x1c   : > { %395 = vmatprep.subr.bf16.mxu0 %v253_v22  ;;  %456 = vmatprep.subr.bf16.mxu1 %v259_v23  ;;  %v271_v30 = vand.u32 %v1329_v28, %v236_v4  ;;  %v262_v35 = vand.u32 %v1326_v33, %v236_v4 }
  0x1d   : > { %v268_v36 = vand.u32 %v1328_v34, %v236_v4 }
  0x1e   : > { %1330 = vmatmul.mubr.msk.bf16.vlgmr.msra.gmra.mrb[0].mxu0 %vm223_vm2, %v1414_v24  ;;  %1333 = vmatmul.mubr.msk.bf16.vlgmr.msra.gmra.mrb[0].mxu1 %vm223_vm2, %v1414_v24 }
  0x1f   : > { %396 = vmatpush1.bf16.msra.mxu0 %v250_v26  ;;  %457 = vmatpush1.bf16.msra.mxu1 %v256_v27 }
  0x20   : > { %315 = vmatprep.mubr.bf16.mxu0 %v1451_v0  ;;  %376 = vmatprep.mubr.bf16.mxu1 %v1451_v0 }
  0x21   : > { %517 = vmatprep.subr.bf16.mxu0 %v265_v29  ;;  %578 = vmatprep.subr.bf16.mxu1 %v271_v30 }
  0x26   : > { %1331 = vmatmul.mubr.msk.bf16.gmra.mrb[4].mxu0 %vm223_vm2, %v1419_v31  ;;  %1334 = vmatmul.mubr.msk.bf16.gmra.mrb[4].mxu1 %vm223_vm2, %v1419_v31 }
  0x27   : > { %325 = vmatprep.mubr.bf16.mxu0 %v1451_v0  ;;  %386 = vmatprep.mubr.bf16.mxu1 %v1451_v0 }
  0x2e   : > { %1332 = vmatmul.mubr.msk.bf16.gmra.mrb[8].mxu0 %vm223_vm2, %v1420_v32  ;;  %1335 = vmatmul.mubr.msk.bf16.gmra.mrb[8].mxu1 %vm223_vm2, %v1420_v32 }
  0x2f   : > { %427 = vmatprep.mubr.bf16.mxu0 %v1451_v0  ;;  %488 = vmatprep.mubr.bf16.mxu1 %v1451_v0 }
  0x36   : > { %1336 = vmatmul.mubr.msk.bf16.vlgmr.msra.gmra.mrb[12].mxu0 %vm223_vm2, %v1414_v24  ;;  %1339 = vmatmul.mubr.msk.bf16.vlgmr.msra.gmra.mrb[12].mxu1 %vm223_vm2, %v1414_v24 }
  0x37   : > { %518 = vmatpush1.bf16.msra.mxu0 %v262_v35  ;;  %579 = vmatpush1.bf16.msra.mxu1 %v268_v36 }
  0x38   : > { %437 = vmatprep.mubr.bf16.mxu0 %v1451_v0  ;;  %498 = vmatprep.mubr.bf16.mxu1 %v1451_v0 }
  0x3e   : > { %1337 = vmatmul.mubr.msk.bf16.gmra.mrb[16].mxu0 %vm223_vm2, %v1419_v31  ;;  %1340 = vmatmul.mubr.msk.bf16.gmra.mrb[16].mxu1 %vm223_vm2, %v1419_v31 }
  0x3f   : > { %447 = vmatprep.mubr.bf16.mxu0 %v1451_v0  ;;  %508 = vmatprep.mubr.bf16.mxu1 %v1451_v0 }
  0x46   : > { %1338 = vmatmul.mubr.msk.bf16.gmra.mrb[20].mxu0 %vm223_vm2, %v1420_v32  ;;  %1341 = vmatmul.mubr.msk.bf16.gmra.mrb[20].mxu1 %vm223_vm2, %v1420_v32 }
  0x47   : > { %549 = vmatprep.mubr.bf16.mxu0 %v1451_v0  ;;  %610 = vmatprep.mubr.bf16.mxu1 %v1451_v0 }
  0x4e   : > { %1342 = vmatmul.mubr.msk.bf16.vlgmr.msra.gmra.mrb[24].mxu0 %vm223_vm2, %v1414_v24  ;;  %1345 = vmatmul.mubr.msk.bf16.vlgmr.msra.gmra.mrb[24].mxu1 %vm223_vm2, %v1414_v24 }
  0x4f   : > { %559 = vmatprep.mubr.bf16.mxu0 %v1451_v0  ;;  %620 = vmatprep.mubr.bf16.mxu1 %v1451_v0 }
  0x56   : > { %1343 = vmatmul.mubr.msk.bf16.gmra.mrb[28].mxu0 %vm223_vm2, %v1419_v31  ;;  %1346 = vmatmul.mubr.msk.bf16.gmra.mrb[28].mxu1 %vm223_vm2, %v1419_v31 }
  0x57   : > { %569 = vmatprep.mubr.bf16.mxu0 %v1451_v0  ;;  %630 = vmatprep.mubr.bf16.mxu1 %v1451_v0 }
  0x5e   : > { %1344 = vmatmul.mubr.msk.bf16.gmra.mrb[32].mxu0 %vm223_vm2, %v1420_v32  ;;  %1347 = vmatmul.mubr.msk.bf16.gmra.mrb[32].mxu1 %vm223_vm2, %v1420_v32 }
  0x5f   : > { %827 = vmatprep.mubr.bf16.mxu0 %v1451_v0  ;;  %880 = vmatprep.mubr.bf16.mxu1 %v1451_v0 }
  0xf1   : > { %v307_v37 = vpop.f32.mrb[0].mxu0  ;;  %v368_v38 = vpop.f32.mrb[0].mxu1 }
  0xf2   : > { %v309_v39 = vpop.f32.mrb[1].mxu0  ;;  %v370_v40 = vpop.f32.mrb[1].mxu1  ;;  %v639_v43 = vmax.f32 %v307_v37, 0.0  ;;  %v641_v44 = vmax.f32 %v368_v38, 0.0  ;;  %v1563_v37 = vld [vmem:[%s1679_s2] sm:$0xff]  }
  0xf3   : > { %v311_v41 = vpop.f32.mrb[2].mxu0  ;;  %v372_v42 = vpop.f32.mrb[2].mxu1  ;;  %v640_v49 = vmax.f32 %v309_v39, 0.0  ;;  %v642_v50 = vmax.f32 %v370_v40, 0.0 }
  0xf4   : > { %v651_v45 = vmax.f32 %v311_v41, 0.0  ;;  %v653_v46 = vmax.f32 %v372_v42, 0.0  ;;  %v313_v47 = vpop.f32.mrb[3].mxu0  ;;  %v374_v48 = vpop.f32.mrb[3].mxu1 }
  0xf5   : > { %v652_v51 = vmax.f32 %v313_v47, 0.0  ;;  %v654_v52 = vmax.f32 %v374_v48, 0.0 }
  0xf6   : > { %v699_v53 = vpack.c.bf16 %v651_v45, %v639_v43  ;;  %v701_v54 = vpack.c.bf16 %v653_v46, %v641_v44 }
  0xf7   : > { %v700_v55 = vpack.c.bf16 %v652_v51, %v640_v49  ;;  %v702_v56 = vpack.c.bf16 %v654_v52, %v642_v50 }
  0xf9   : > { %v317_v57 = vpop.f32.mrb[4].mxu0  ;;  %v378_v58 = vpop.f32.mrb[4].mxu1  ;;  %795 = vmatprep.subr.bf16.mxu0 %v700_v55  ;;  %848 = vmatprep.subr.bf16.mxu1 %v702_v56 }
  0xfa   : > { %v319_v59 = vpop.f32.mrb[5].mxu0  ;;  %v380_v60 = vpop.f32.mrb[5].mxu1  ;;  %796 = vmatpush1.bf16.msra.mxu0 %v699_v53  ;;  %849 = vmatpush1.bf16.msra.mxu1 %v701_v54  ;;  %v663_v63 = vmax.f32 %v317_v57, 0.0  ;;  %v665_v1 = vmax.f32 %v378_v58, 0.0  ;;  %v1574_v58 = vld [vmem:[%s1679_s2 + $0x8] sm:$0xff]  }
  0xfb   : > { %v321_v61 = vpop.f32.mrb[6].mxu0  ;;  %v382_v62 = vpop.f32.mrb[6].mxu1  ;;  %v664_v6 = vmax.f32 %v319_v59, 0.0  ;;  %v666_v7 = vmax.f32 %v380_v60, 0.0 }
  0xfc   : > { %v675_v2 = vmax.f32 %v321_v61, 0.0  ;;  %v677_v3 = vmax.f32 %v382_v62, 0.0  ;;  %v323_v4 = vpop.f32.mrb[7].mxu0  ;;  %v384_v5 = vpop.f32.mrb[7].mxu1 }
  0xfd   : > { %v676_v8 = vmax.f32 %v323_v4, 0.0  ;;  %v678_v9 = vmax.f32 %v384_v5, 0.0 }
  0xfe   : > { %v711_v10 = vpack.c.bf16 %v675_v2, %v663_v63  ;;  %v713_v11 = vpack.c.bf16 %v677_v3, %v665_v1 }
  0xff   : > { %v712_v12 = vpack.c.bf16 %v676_v8, %v664_v6  ;;  %v714_v13 = vpack.c.bf16 %v678_v9, %v666_v7 }
 0x101   : > { %v327_v14 = vpop.f32.mrb[8].mxu0  ;;  %v388_v15 = vpop.f32.mrb[8].mxu1  ;;  %797 = vmatprep.subr.bf16.mxu0 %v712_v12  ;;  %850 = vmatprep.subr.bf16.mxu1 %v714_v13 }
 0x102   : > { %v687_v16 = vmax.f32 %v327_v14, 0.0  ;;  %v689_v17 = vmax.f32 %v388_v15, 0.0  ;;  %v329_v18 = vpop.f32.mrb[9].mxu0  ;;  %v390_v19 = vpop.f32.mrb[9].mxu1  ;;  %798 = vmatpush1.bf16.msra.mxu0 %v711_v10  ;;  %851 = vmatpush1.bf16.msra.mxu1 %v713_v11 }
 0x103   : > { %v688_v20 = vmax.f32 %v329_v18, 0.0  ;;  %v690_v21 = vmax.f32 %v390_v19, 0.0  ;;  %v331_v22 = vpop.f32.mrb[10].mxu0  ;;  %v392_v23 = vpop.f32.mrb[10].mxu1 }
 0x104   : > { %v723_v24 = vpack.c.bf16 %v687_v16, %v687_v16  ;;  %v725_v26 = vpack.c.bf16 %v689_v17, %v689_v17  ;;  %v332_v27 = vpop.f32.mrb[11].mxu0  ;;  %v393_v28 = vpop.f32.mrb[11].mxu1 }
 0x105   : > { %v724_v29 = vpack.c.bf16 %v688_v20, %v688_v20  ;;  %v726_v30 = vpack.c.bf16 %v690_v21, %v690_v21 }
 0x106   : > { %v760_v33 = vand.u32 %v1554_v25, %v723_v24  ;;  %v766_v34 = vand.u32 %v1554_v25, %v725_v26 }
 0x107   : > { %v763_v31 = vand.u32 %v1554_v25, %v724_v29  ;;  %v769_v32 = vand.u32 %v1554_v25, %v726_v30 }
 0x109   : > { %v429_v35 = vpop.f32.mrb[12].mxu0  ;;  %v490_v36 = vpop.f32.mrb[12].mxu1  ;;  %799 = vmatprep.subr.bf16.mxu0 %v763_v31  ;;  %852 = vmatprep.subr.bf16.mxu1 %v769_v32 }
 0x10a   : > { %v431_v38 = vpop.f32.mrb[13].mxu0  ;;  %v492_v39 = vpop.f32.mrb[13].mxu1  ;;  %800 = vmatpush1.bf16.msra.mxu0 %v760_v33  ;;  %853 = vmatpush1.bf16.msra.mxu1 %v766_v34  ;;  %v643_v42 = vmax.f32 %v429_v35, 0.0  ;;  %v645_v43 = vmax.f32 %v490_v36, 0.0 }
 0x10b   : > { %v433_v40 = vpop.f32.mrb[14].mxu0  ;;  %v494_v41 = vpop.f32.mrb[14].mxu1  ;;  %v644_v48 = vmax.f32 %v431_v38, 0.0  ;;  %v646_v49 = vmax.f32 %v492_v39, 0.0 }
 0x10c   : > { %v655_v44 = vmax.f32 %v433_v40, 0.0  ;;  %v657_v45 = vmax.f32 %v494_v41, 0.0  ;;  %v435_v46 = vpop.f32.mrb[15].mxu0  ;;  %v496_v47 = vpop.f32.mrb[15].mxu1 }
 0x10d   : > { %v656_v50 = vmax.f32 %v435_v46, 0.0  ;;  %v658_v51 = vmax.f32 %v496_v47, 0.0  ;;  %1350 = vmatmul.mubr.msk.bf16.vlgmr.msra.gmra.mrb[36].mxu0 %vm749_vm4, %v1563_v37  ;;  %1352 = vmatmul.mubr.msk.bf16.vlgmr.msra.gmra.mrb[36].mxu1 %vm749_vm4, %v1563_v37 }
 0x10e   : > { %v703_v52 = vpack.c.bf16 %v655_v44, %v643_v42  ;;  %v705_v53 = vpack.c.bf16 %v657_v45, %v645_v43  ;;  %837 = vmatprep.mubr.bf16.mxu0 %v1451_v0  ;;  %890 = vmatprep.mubr.bf16.mxu1 %v1451_v0 }
 0x10f   : > { %v704_v54 = vpack.c.bf16 %v656_v50, %v644_v48  ;;  %v706_v55 = vpack.c.bf16 %v658_v51, %v646_v49 }
 0x111   : > { %v439_v56 = vpop.f32.mrb[16].mxu0  ;;  %v500_v57 = vpop.f32.mrb[16].mxu1  ;;  %901 = vmatprep.subr.bf16.mxu0 %v704_v54  ;;  %954 = vmatprep.subr.bf16.mxu1 %v706_v55 }
 0x112   : > { %v441_v59 = vpop.f32.mrb[17].mxu0  ;;  %v502_v60 = vpop.f32.mrb[17].mxu1  ;;  %902 = vmatpush1.bf16.msra.mxu0 %v703_v52  ;;  %955 = vmatpush1.bf16.msra.mxu1 %v705_v53  ;;  %v667_v63 = vmax.f32 %v439_v56, 0.0  ;;  %v669_v1 = vmax.f32 %v500_v57, 0.0 }
 0x113   : > { %v443_v61 = vpop.f32.mrb[18].mxu0  ;;  %v504_v62 = vpop.f32.mrb[18].mxu1  ;;  %v668_v6 = vmax.f32 %v441_v59, 0.0  ;;  %v670_v7 = vmax.f32 %v502_v60, 0.0 }
 0x114   : > { %v679_v2 = vmax.f32 %v443_v61, 0.0  ;;  %v681_v3 = vmax.f32 %v504_v62, 0.0  ;;  %v445_v4 = vpop.f32.mrb[19].mxu0  ;;  %v506_v5 = vpop.f32.mrb[19].mxu1 }
 0x115   : > { %v680_v8 = vmax.f32 %v445_v4, 0.0  ;;  %v682_v9 = vmax.f32 %v506_v5, 0.0  ;;  %1351 = vmatmul.mubr.msk.bf16.gmra.mrb[40].mxu0 %vm749_vm4, %v1574_v58  ;;  %1353 = vmatmul.mubr.msk.bf16.gmra.mrb[40].mxu1 %vm749_vm4, %v1574_v58 }
 0x116   : > { %v715_v10 = vpack.c.bf16 %v679_v2, %v667_v63  ;;  %v717_v11 = vpack.c.bf16 %v681_v3, %v669_v1  ;;  %933 = vmatprep.mubr.bf16.mxu0 %v1451_v0  ;;  %986 = vmatprep.mubr.bf16.mxu1 %v1451_v0 }
 0x117   : > { %v716_v12 = vpack.c.bf16 %v680_v8, %v668_v6  ;;  %v718_v13 = vpack.c.bf16 %v682_v9, %v670_v7 }
 0x119   : > { %v449_v14 = vpop.f32.mrb[20].mxu0  ;;  %v510_v15 = vpop.f32.mrb[20].mxu1  ;;  %903 = vmatprep.subr.bf16.mxu0 %v716_v12  ;;  %956 = vmatprep.subr.bf16.mxu1 %v718_v13 }
 0x11a   : > { %v691_v16 = vmax.f32 %v449_v14, 0.0  ;;  %v693_v17 = vmax.f32 %v510_v15, 0.0  ;;  %v451_v18 = vpop.f32.mrb[21].mxu0  ;;  %v512_v19 = vpop.f32.mrb[21].mxu1  ;;  %904 = vmatpush1.bf16.msra.mxu0 %v715_v10  ;;  %957 = vmatpush1.bf16.msra.mxu1 %v717_v11 }
 0x11b   : > { %v692_v20 = vmax.f32 %v451_v18, 0.0  ;;  %v694_v21 = vmax.f32 %v512_v19, 0.0  ;;  %v453_v22 = vpop.f32.mrb[22].mxu0  ;;  %v514_v23 = vpop.f32.mrb[22].mxu1 }
 0x11c   : > { %v727_v24 = vpack.c.bf16 %v691_v16, %v691_v16  ;;  %v729_v26 = vpack.c.bf16 %v693_v17, %v693_v17  ;;  %v454_v27 = vpop.f32.mrb[23].mxu0  ;;  %v515_v28 = vpop.f32.mrb[23].mxu1 }
 0x11d   : > { %v728_v29 = vpack.c.bf16 %v692_v20, %v692_v20  ;;  %v730_v30 = vpack.c.bf16 %v694_v21, %v694_v21 }
 0x11e   : > { %v772_v33 = vand.u32 %v1554_v25, %v727_v24  ;;  %v778_v34 = vand.u32 %v1554_v25, %v729_v26 }
 0x11f   : > { %v775_v31 = vand.u32 %v1554_v25, %v728_v29  ;;  %v781_v32 = vand.u32 %v1554_v25, %v730_v30 }
 0x121   : > { %v551_v35 = vpop.f32.mrb[24].mxu0  ;;  %v612_v36 = vpop.f32.mrb[24].mxu1  ;;  %905 = vmatprep.subr.bf16.mxu0 %v775_v31  ;;  %958 = vmatprep.subr.bf16.mxu1 %v781_v32 }
 0x122   : > { %v553_v38 = vpop.f32.mrb[25].mxu0  ;;  %v614_v39 = vpop.f32.mrb[25].mxu1  ;;  %906 = vmatpush1.bf16.msra.mxu0 %v772_v33  ;;  %959 = vmatpush1.bf16.msra.mxu1 %v778_v34  ;;  %v647_v42 = vmax.f32 %v551_v35, 0.0  ;;  %v649_v43 = vmax.f32 %v612_v36, 0.0 }
 0x123   : > { %v555_v40 = vpop.f32.mrb[26].mxu0  ;;  %v616_v41 = vpop.f32.mrb[26].mxu1  ;;  %v648_v48 = vmax.f32 %v553_v38, 0.0  ;;  %v650_v49 = vmax.f32 %v614_v39, 0.0 }
 0x124   : > { %v659_v44 = vmax.f32 %v555_v40, 0.0  ;;  %v661_v45 = vmax.f32 %v616_v41, 0.0  ;;  %v557_v46 = vpop.f32.mrb[27].mxu0  ;;  %v618_v47 = vpop.f32.mrb[27].mxu1 }
 0x125   : > { %v660_v50 = vmax.f32 %v557_v46, 0.0  ;;  %v662_v51 = vmax.f32 %v618_v47, 0.0  ;;  %1354 = vmatmul.mubr.msk.bf16.vlgmr.msra.gmra.mrb[44].mxu0 %vm749_vm4, %v1563_v37  ;;  %1356 = vmatmul.mubr.msk.bf16.vlgmr.msra.gmra.mrb[44].mxu1 %vm749_vm4, %v1563_v37 }
 0x126   : > { %v707_v52 = vpack.c.bf16 %v659_v44, %v647_v42  ;;  %v709_v53 = vpack.c.bf16 %v661_v45, %v649_v43  ;;  %943 = vmatprep.mubr.bf16.mxu0 %v1451_v0  ;;  %996 = vmatprep.mubr.bf16.mxu1 %v1451_v0 }
 0x127   : > { %v708_v54 = vpack.c.bf16 %v660_v50, %v648_v48  ;;  %v710_v55 = vpack.c.bf16 %v662_v51, %v650_v49 }
 0x129   : > { %v561_v56 = vpop.f32.mrb[28].mxu0  ;;  %v622_v57 = vpop.f32.mrb[28].mxu1  ;;  %1007 = vmatprep.subr.bf16.mxu0 %v708_v54  ;;  %1060 = vmatprep.subr.bf16.mxu1 %v710_v55 }
 0x12a   : > { %v563_v59 = vpop.f32.mrb[29].mxu0  ;;  %v624_v60 = vpop.f32.mrb[29].mxu1  ;;  %1008 = vmatpush1.bf16.msra.mxu0 %v707_v52  ;;  %1061 = vmatpush1.bf16.msra.mxu1 %v709_v53  ;;  %v671_v63 = vmax.f32 %v561_v56, 0.0  ;;  %v673_v1 = vmax.f32 %v622_v57, 0.0 }
 0x12b   : > { %v565_v61 = vpop.f32.mrb[30].mxu0  ;;  %v626_v62 = vpop.f32.mrb[30].mxu1  ;;  %v672_v6 = vmax.f32 %v563_v59, 0.0  ;;  %v674_v7 = vmax.f32 %v624_v60, 0.0 }
 0x12c   : > { %v683_v2 = vmax.f32 %v565_v61, 0.0  ;;  %v685_v3 = vmax.f32 %v626_v62, 0.0  ;;  %v567_v4 = vpop.f32.mrb[31].mxu0  ;;  %v628_v5 = vpop.f32.mrb[31].mxu1 }
 0x12d   : > { %v684_v8 = vmax.f32 %v567_v4, 0.0  ;;  %v686_v9 = vmax.f32 %v628_v5, 0.0  ;;  %1355 = vmatmul.mubr.msk.bf16.gmra.mrb[48].mxu0 %vm749_vm4, %v1574_v58  ;;  %1357 = vmatmul.mubr.msk.bf16.gmra.mrb[48].mxu1 %vm749_vm4, %v1574_v58 }
 0x12e   : > { %v719_v10 = vpack.c.bf16 %v683_v2, %v671_v63  ;;  %v721_v11 = vpack.c.bf16 %v685_v3, %v673_v1  ;;  %1039 = vmatprep.mubr.bf16.mxu0 %v1451_v0  ;;  %1092 = vmatprep.mubr.bf16.mxu1 %v1451_v0 }
 0x12f   : > { %v720_v12 = vpack.c.bf16 %v684_v8, %v672_v6  ;;  %v722_v13 = vpack.c.bf16 %v686_v9, %v674_v7 }
 0x131   : > { %v571_v14 = vpop.f32.mrb[32].mxu0  ;;  %v632_v15 = vpop.f32.mrb[32].mxu1  ;;  %1009 = vmatprep.subr.bf16.mxu0 %v720_v12  ;;  %1062 = vmatprep.subr.bf16.mxu1 %v722_v13 }
 0x132   : > { %v695_v16 = vmax.f32 %v571_v14, 0.0  ;;  %v697_v17 = vmax.f32 %v632_v15, 0.0  ;;  %v573_v18 = vpop.f32.mrb[33].mxu0  ;;  %v634_v19 = vpop.f32.mrb[33].mxu1  ;;  %1010 = vmatpush1.bf16.msra.mxu0 %v719_v10  ;;  %1063 = vmatpush1.bf16.msra.mxu1 %v721_v11 }
 0x133   : > { %v696_v20 = vmax.f32 %v573_v18, 0.0  ;;  %v698_v21 = vmax.f32 %v634_v19, 0.0  ;;  %v575_v22 = vpop.f32.mrb[34].mxu0  ;;  %v636_v23 = vpop.f32.mrb[34].mxu1 }
 0x134   : > { %v731_v24 = vpack.c.bf16 %v695_v16, %v695_v16  ;;  %v733_v26 = vpack.c.bf16 %v697_v17, %v697_v17  ;;  %v576_v27 = vpop.f32.mrb[35].mxu0  ;;  %v637_v28 = vpop.f32.mrb[35].mxu1 }
 0x135   : > { %v732_v29 = vpack.c.bf16 %v696_v20, %v696_v20  ;;  %v734_v30 = vpack.c.bf16 %v698_v21, %v698_v21 }
 0x136   : > { %v784_v33 = vand.u32 %v1554_v25, %v731_v24  ;;  %v790_v34 = vand.u32 %v1554_v25, %v733_v26 }
 0x137   : > { %v787_v31 = vand.u32 %v1554_v25, %v732_v29  ;;  %v793_v32 = vand.u32 %v1554_v25, %v734_v30 }
 0x139   : > { %1011 = vmatprep.subr.bf16.mxu0 %v787_v31  ;;  %1064 = vmatprep.subr.bf16.mxu1 %v793_v32 }
 0x13a   : > { %1012 = vmatpush1.bf16.msra.mxu0 %v784_v33  ;;  %1065 = vmatpush1.bf16.msra.mxu1 %v790_v34 }
 0x13d   : > { %1358 = vmatmul.mubr.msk.bf16.vlgmr.msra.gmra.mrb[52].mxu0 %vm749_vm4, %v1563_v37  ;;  %1360 = vmatmul.mubr.msk.bf16.vlgmr.msra.gmra.mrb[52].mxu1 %vm749_vm4, %v1563_v37 }
 0x13e   : > { %1049 = vmatprep.mubr.bf16.mxu0 %v1451_v0  ;;  %1102 = vmatprep.mubr.bf16.mxu1 %v1451_v0 }
 0x145   : > { %1359 = vmatmul.mubr.msk.bf16.gmra.mrb[56].mxu0 %vm749_vm4, %v1574_v58  ;;  %1361 = vmatmul.mubr.msk.bf16.gmra.mrb[56].mxu1 %vm749_vm4, %v1574_v58 }
 0x1e0   : > { %v829_v25 = vpop.f32.mrb[36].mxu0  ;;  %v882_v35 = vpop.f32.mrb[36].mxu1 }
 0x1e1   : > { %v831_v36 = vpop.f32.mrb[37].mxu0  ;;  %v884_v38 = vpop.f32.mrb[37].mxu1 }
 0x1e2   : > { %v833_v39 = vpop.f32.mrb[38].mxu0  ;;  %v886_v40 = vpop.f32.mrb[38].mxu1 }
 0x1e3   : > { %v1612_v41 = vpop.f32.mrb[39].mxu0  ;;  %v1614_v42 = vpop.f32.mrb[39].mxu1 }
 0x1e8   : > { %v1616_v37 = vpop.f32.mrb[40].mxu0  ;;  %v1618_v43 = vpop.f32.mrb[40].mxu1 }
 0x1e9   : > { %v1620_v0 = vpop.f32.mrb[41].mxu0  ;;  %v1622_v44 = vpop.f32.mrb[41].mxu1 }
 0x1ea   : > { %v1624_v45 = vpop.f32.mrb[42].mxu0  ;;  %v1626_v58 = vpop.f32.mrb[42].mxu1 }
 0x1eb   : > { %v1628_v46 = vpop.f32.mrb[43].mxu0  ;;  %v1630_v47 = vpop.f32.mrb[43].mxu1 }
 0x1f8   : > { %v935_v48 = vpop.f32.mrb[44].mxu0  ;;  %v988_v49 = vpop.f32.mrb[44].mxu1 }
 0x1f9   : > { %v1113_v50 = vmax.f32 %v829_v25, %v935_v48  ;;  %v1115_v51 = vmax.f32 %v882_v35, %v988_v49  ;;  %v937_v52 = vpop.f32.mrb[45].mxu0  ;;  %v990_v53 = vpop.f32.mrb[45].mxu1 }
 0x1fa   : > { %v1114_v54 = vmax.f32 %v831_v36, %v937_v52  ;;  %v1116_v55 = vmax.f32 %v884_v38, %v990_v53  ;;  %v939_v56 = vpop.f32.mrb[46].mxu0  ;;  %v992_v57 = vpop.f32.mrb[46].mxu1 }
 0x1fb   : > { %v1117_v59 = vmax.f32 %v833_v39, %v939_v56  ;;  %v1119_v60 = vmax.f32 %v886_v40, %v992_v57  ;;  %v941_v61 = vpop.f32.mrb[47].mxu0  ;;  %v994_v62 = vpop.f32.mrb[47].mxu1 }
 0x1fc   : > { %v1118_v63 = vmax.f32 %v1612_v41, %v941_v61  ;;  %v1120_v1 = vmax.f32 %v1614_v42, %v994_v62 }
 0x200   : > { %v945_v2 = vpop.f32.mrb[48].mxu0  ;;  %v998_v3 = vpop.f32.mrb[48].mxu1 }
 0x201   : > { %v1121_v4 = vmax.f32 %v1616_v37, %v945_v2  ;;  %v1123_v5 = vmax.f32 %v1618_v43, %v998_v3  ;;  %v947_v6 = vpop.f32.mrb[49].mxu0  ;;  %v1000_v7 = vpop.f32.mrb[49].mxu1 }
 0x202   : > { %v1122_v8 = vmax.f32 %v1620_v0, %v947_v6  ;;  %v1124_v9 = vmax.f32 %v1622_v44, %v1000_v7  ;;  %v949_v10 = vpop.f32.mrb[50].mxu0  ;;  %v1002_v11 = vpop.f32.mrb[50].mxu1 }
 0x203   : > { %v1125_v12 = vmax.f32 %v1624_v45, %v949_v10  ;;  %v1127_v13 = vmax.f32 %v1626_v58, %v1002_v11  ;;  %v951_v14 = vpop.f32.mrb[51].mxu0  ;;  %v1004_v15 = vpop.f32.mrb[51].mxu1 }
 0x204   : > { %v1126_v16 = vmax.f32 %v1628_v46, %v951_v14  ;;  %v1128_v17 = vmax.f32 %v1630_v47, %v1004_v15 }
 0x210   : > { %v1041_v18 = vpop.f32.mrb[52].mxu0  ;;  %v1094_v19 = vpop.f32.mrb[52].mxu1 }
 0x211   : > { %v1129_v20 = vmax.f32 %v1113_v50, %v1041_v18  ;;  %v1131_v21 = vmax.f32 %v1115_v51, %v1094_v19  ;;  %v1043_v22 = vpop.f32.mrb[53].mxu0  ;;  %v1096_v23 = vpop.f32.mrb[53].mxu1 }
 0x212   : > { %v1130_v24 = vmax.f32 %v1114_v54, %v1043_v22  ;;  %v1132_v26 = vmax.f32 %v1116_v55, %v1096_v23  ;;  %v1045_v27 = vpop.f32.mrb[54].mxu0  ;;  %v1098_v28 = vpop.f32.mrb[54].mxu1 }
 0x213   : > { %v1145_v29 = vmax.f32 %v1129_v20, 0.0  ;;  %v1147_v30 = vmax.f32 %v1131_v21, 0.0  ;;  %v1133_v31 = vmax.f32 %v1117_v59, %v1045_v27  ;;  %v1135_v32 = vmax.f32 %v1119_v60, %v1098_v28  ;;  %v1047_v33 = vpop.f32.mrb[55].mxu0  ;;  %v1100_v34 = vpop.f32.mrb[55].mxu1 }
 0x214   : > { %v1146_v25 = vmax.f32 %v1130_v24, 0.0  ;;  %v1148_v35 = vmax.f32 %v1132_v26, 0.0  ;;  %v1134_v36 = vmax.f32 %v1118_v63, %v1047_v33  ;;  %v1136_v38 = vmax.f32 %v1120_v1, %v1100_v34 }
 0x215   : > { %v1149_v39 = vmax.f32 %v1133_v31, 0.0  ;;  %v1151_v40 = vmax.f32 %v1135_v32, 0.0 }
 0x216   : > { %v1375_v41 = vpack.c.bf16 %v1146_v25, %v1145_v29  ;;  %v1376_v42 = vpack.c.bf16 %v1148_v35, %v1147_v30  ;;  %v1150_v37 = vmax.f32 %v1134_v36, 0.0  ;;  %v1152_v43 = vmax.f32 %v1136_v38, 0.0 }
 0x218   : > { %1209 = vst [vmem:[%s1643_s11] sm:$0xff] %v1375_v41  ;;  %1210 = vst [vmem:[%s1643_s11 + $0x8] sm:$0xff] %v1376_v42  ;;  %v1377_v0 = vpack.c.bf16 %v1150_v37, %v1149_v39  ;;  %v1378_v44 = vpack.c.bf16 %v1152_v43, %v1151_v40  ;;  %v1051_v45 = vpop.f32.mrb[56].mxu0  ;;  %v1104_v58 = vpop.f32.mrb[56].mxu1 }
 0x219   : > { %v1137_v46 = vmax.f32 %v1121_v4, %v1051_v45  ;;  %v1139_v47 = vmax.f32 %v1123_v5, %v1104_v58  ;;  %v1053_v48 = vpop.f32.mrb[57].mxu0  ;;  %v1106_v49 = vpop.f32.mrb[57].mxu1 }
 0x21a   : > { %1211 = vst [vmem:[%s1643_s11 + $0x10] sm:$0xff] %v1377_v0  ;;  %1212 = vst [vmem:[%s1643_s11 + $0x18] sm:$0xff] %v1378_v44  ;;  %v1138_v50 = vmax.f32 %v1122_v8, %v1053_v48  ;;  %v1140_v51 = vmax.f32 %v1124_v9, %v1106_v49  ;;  %v1055_v52 = vpop.f32.mrb[58].mxu0  ;;  %v1108_v53 = vpop.f32.mrb[58].mxu1 }
 0x21b   : > { %v1153_v54 = vmax.f32 %v1137_v46, 0.0  ;;  %v1155_v55 = vmax.f32 %v1139_v47, 0.0  ;;  %v1141_v56 = vmax.f32 %v1125_v12, %v1055_v52  ;;  %v1143_v57 = vmax.f32 %v1127_v13, %v1108_v53  ;;  %v1057_v59 = vpop.f32.mrb[59].mxu0  ;;  %v1110_v60 = vpop.f32.mrb[59].mxu1 }
 0x21c   : > { %v1154_v61 = vmax.f32 %v1138_v50, 0.0  ;;  %v1156_v62 = vmax.f32 %v1140_v51, 0.0  ;;  %v1142_v63 = vmax.f32 %v1126_v16, %v1057_v59  ;;  %v1144_v1 = vmax.f32 %v1128_v17, %v1110_v60  ;;  %1223 = sbr.rel (!%p1498_p4) target bundleno = 555 (0x22b), region = 36 }
 0x21d   : > { %v1157_v2 = vmax.f32 %v1141_v56, 0.0  ;;  %v1159_v3 = vmax.f32 %v1143_v57, 0.0 }
 0x21e   : > { %v1379_v4 = vpack.c.bf16 %v1154_v61, %v1153_v54  ;;  %v1380_v5 = vpack.c.bf16 %v1156_v62, %v1155_v55  ;;  %v1158_v6 = vmax.f32 %v1142_v63, 0.0  ;;  %v1160_v7 = vmax.f32 %v1144_v1, 0.0 }
 0x21f   : > { %v1239_v10 = vld [vmem:[%s1643_s11] sm:$0xff] (%p1498_p4)  ;;  %v1241_v11 = vld [vmem:[%s1643_s11 + $0x8] sm:$0xff] (%p1498_p4) }
 0x220   : > { %1213 = vst [vmem:[%s1643_s11 + $0x20] sm:$0xff] %v1379_v4  ;;  %1214 = vst [vmem:[%s1643_s11 + $0x28] sm:$0xff] %v1380_v5  ;;  %v1381_v8 = vpack.c.bf16 %v1158_v6, %v1157_v2  ;;  %v1382_v9 = vpack.c.bf16 %v1160_v7, %v1159_v3 }
 0x221   : > { %v1243_v12 = vld [vmem:[%s1643_s11 + $0x10] sm:$0xff] (%p1498_p4)  ;;  %v1245_v13 = vld [vmem:[%s1643_s11 + $0x18] sm:$0xff] (%p1498_p4)  ;;  %1240 = vst [vmem:[%s1226_s18] sm:$0xff] (%p1498_p4), %v1239_v10  ;;  %1242 = vst [vmem:[%s1226_s18 + $0x8] sm:$0xff] (%p1498_p4), %v1241_v11 }
 0x222   : > { %1215 = vst [vmem:[%s1643_s11 + $0x30] sm:$0xff] %v1381_v8  ;;  %1216 = vst [vmem:[%s1643_s11 + $0x38] sm:$0xff] %v1382_v9 }
 0x223   : > { %1244 = vst [vmem:[%s1226_s18 + $0x20] sm:$0xff] %v1243_v12  ;;  %1246 = vst [vmem:[%s1226_s18 + $0x28] sm:$0xff] %v1245_v13 }
 0x227   : > { %v1247_v14 = vld [vmem:[%s1643_s11 + $0x20] sm:$0xff]  ;;  %v1249_v15 = vld [vmem:[%s1643_s11 + $0x28] sm:$0xff] }
 0x228   : > { %1248 = vst [vmem:[%s1226_s18 + $0x40] sm:$0xff] %v1247_v14  ;;  %1250 = vst [vmem:[%s1226_s18 + $0x48] sm:$0xff] %v1249_v15 }
 0x229   : > { %v1251_v16 = vld [vmem:[%s1643_s11 + $0x30] sm:$0xff]  ;;  %v1253_v17 = vld [vmem:[%s1643_s11 + $0x38] sm:$0xff] }
 0x22a   : > { %1252 = vst [vmem:[%s1226_s18 + $0x60] sm:$0xff] %v1251_v16  ;;  %1254 = vst [vmem:[%s1226_s18 + $0x68] sm:$0xff] %v1253_v17 }
 0x22b PF: > { %p10_p8 = scmp.ge.s32.totalorder %s1488_s16, 4   ;;  %s1682_s12 = smov %s1445_s13 }
 0x22c   : > { %s1683_s13 = smov %s1496_s19  ;;  %s1684_s14 = smov %s1488_s16 }
 0x22d   :  { %12 = sbr.rel (!%p10_p8) target bundleno = 2 (0x2), region = 85 }

// kernel: pointnet_forward.4
= control target key start
LH: loop header
LB: loop body
LE: loop exit
PB: predicated region body
PF: predicated region fallthrough
CT: control target
= control target key end

     0   :  { %s1724_s12 = smov 0   ;;  %s1726_s13 = smov 0   ;;  %s2076_s0 = inlined_call_operand.vmem [shape: bf16[36,3072], index: 0, kind: input, shape index: {}]   ;;  %s2077_s1 = inlined_call_operand.vmem [shape: bf16[33,36], index: 1, kind: input, shape index: {}]   ;;  %s2078_s2 = inlined_call_operand.vmem [shape: bf16[32,33], index: 2, kind: input, shape index: {}]   ;;  %s2079_s3 = inlined_call_operand.vmem [shape: f32[32,1024], index: 3, kind: output, shape index: {}]  }
   0x1   :  { %s1728_s14 = smov 0  }
   0x2 LB: > { %s1508_s15 = sadd.s32 4294967295, %s1701_s14   ;;  %s1741_s16 = sadd.s32 1, %s1701_s14   ;;  %s1701_s14 = sphi %s1728_s14, %s2083_s14   ;;  %s1697_s13 = sphi %s1726_s13, %s2082_s13   ;;  %s1693_s12 = sphi %s1724_s12, %s2081_s12  }
   0x3   : > { %s17_s17 = ssub.s32 %s1701_s14, %s1741_s16  ;;  %s20_s18 = sadd.s32 1, %s1697_s13 }
   0x4   : > { %p18_p0 = scmp.eq.s32.totalorder %s17_s17, 0  ;;  %p27_p1 = scmp.ne.s32.totalorder %s1697_s13, %s1693_s12 }
   0x5   : > { %p28_p2 = scmp.eq.s32.totalorder %s1701_s14, 0  ;;  %p99_p3 = scmp.eq.s32.totalorder %s1508_s15, 1 }
   0x6   : > { %s1752_s19 = scalar_select %p18_p0, %s1697_s13, %s20_s18  }
   0x7   : > { %p29_p4 = por %p28_p2, %p27_p1  ;;  %p1754_p5 = por %p99_p3, %p27_p1 }
   0x8   : > { %p1511_p6 = scmp.ge.s32.totalorder %s1701_s14, 2 }
   0xa   : > { %127 = sbr.rel (%p1511_p6) target bundleno = 37 (0x25), region = 24 }
  0x11   : > { %130 = sbr.rel (!%p29_p4) target bundleno = 37 (0x25), region = 28  ;;  %s132_s21 = sand.u32 (%p29_p4), 1, %s1697_s13  }
  0x12   : > { %s1597_s22 = smul.u32 (%p29_p4), 48, %s1701_s14 }
  0x13   : > { %s1599_s23 = smul.u32 (%p29_p4), 240, %s132_s21 }
  0x14   : > { %s1764_s26 = scalar_lea.vmem (%p29_p4), %s2076_s0, %s1597_s22 }
  0x15   : > { %v150_v0 = vld [vmem:[%s1764_s26] sm:$0xff] (%p29_p4)  ;;  %v152_v1 = vld [vmem:[%s1764_s26 + $0x8] sm:$0xff] (%p29_p4)  ;;  %v154_v2 = vld [vmem:[%s1764_s26 + $0x10] sm:$0xff] (%p29_p4)  ;;  %s1769_s27 = scalar_lea.vmem (%p29_p4), [#allocation2], %s1599_s23 }
  0x16   : > { %151 = vst [vmem:[%s1769_s27] sm:$0xff] (%p29_p4), %v150_v0  ;;  %153 = vst [vmem:[%s1769_s27 + $0x8] sm:$0xff] (%p29_p4), %v152_v1  ;;  %v156_v3 = vld [vmem:[%s1764_s26 + $0x18] sm:$0xff] (%p29_p4)  ;;  %v158_v4 = vld [vmem:[%s1764_s26 + $0x20] sm:$0xff] (%p29_p4) }
  0x17   : > { %155 = vst [vmem:[%s1769_s27 + $0x10] sm:$0xff] (%p29_p4), %v154_v2  ;;  %v160_v5 = vld [vmem:[%s1764_s26 + $0x28] sm:$0xff] (%p29_p4)  ;;  %157 = vst [vmem:[%s1769_s27 + $0x18] sm:$0xff] (%p29_p4), %v156_v3  ;;  %v162_v6 = vld [vmem:[%s1764_s26 + $0x60] sm:$0xff] (%p29_p4) }
  0x18   : > { %159 = vst [vmem:[%s1769_s27 + $0x20] sm:$0xff] %v158_v4  ;;  %161 = vst [vmem:[%s1769_s27 + $0x28] sm:$0xff] %v160_v5  ;;  %v164_v7 = vld [vmem:[%s1764_s26 + $0x68] sm:$0xff]  ;;  %v166_v8 = vld [vmem:[%s1764_s26 + $0x70] sm:$0xff] }
  0x19   : > { %163 = vst [vmem:[%s1769_s27 + $0x30] sm:$0xff] %v162_v6  ;;  %165 = vst [vmem:[%s1769_s27 + $0x38] sm:$0xff] %v164_v7  ;;  %v168_v9 = vld [vmem:[%s1764_s26 + $0x78] sm:$0xff]  ;;  %v170_v10 = vld [vmem:[%s1764_s26 + $0x80] sm:$0xff] }
  0x1a   : > { %167 = vst [vmem:[%s1769_s27 + $0x40] sm:$0xff] %v166_v8  ;;  %v172_v11 = vld [vmem:[%s1764_s26 + $0x88] sm:$0xff]  ;;  %169 = vst [vmem:[%s1769_s27 + $0x48] sm:$0xff] %v168_v9  ;;  %v174_v12 = vld [vmem:[%s1764_s26 + $0xc0] sm:$0xff] }
  0x1b   : > { %171 = vst [vmem:[%s1769_s27 + $0x50] sm:$0xff] %v170_v10  ;;  %173 = vst [vmem:[%s1769_s27 + $0x58] sm:$0xff] %v172_v11  ;;  %v176_v13 = vld [vmem:[%s1764_s26 + $0xc8] sm:$0xff]  ;;  %v178_v14 = vld [vmem:[%s1764_s26 + $0xd0] sm:$0xff] }
  0x1c   : > { %175 = vst [vmem:[%s1769_s27 + $0x60] sm:$0xff] %v174_v12  ;;  %177 = vst [vmem:[%s1769_s27 + $0x68] sm:$0xff] %v176_v13  ;;  %v180_v15 = vld [vmem:[%s1764_s26 + $0xd8] sm:$0xff]  ;;  %v182_v16 = vld [vmem:[%s1764_s26 + $0xe0] sm:$0xff] }
  0x1d   : > { %179 = vst [vmem:[%s1769_s27 + $0x70] sm:$0xff] %v178_v14  ;;  %v184_v17 = vld [vmem:[%s1764_s26 + $0xe8] sm:$0xff]  ;;  %181 = vst [vmem:[%s1769_s27 + $0x78] sm:$0xff] %v180_v15  ;;  %v186_v18 = vld [vmem:[%s1764_s26 + $0x120] sm:$0xff] }
  0x1e   : > { %183 = vst [vmem:[%s1769_s27 + $0x80] sm:$0xff] %v182_v16  ;;  %185 = vst [vmem:[%s1769_s27 + $0x88] sm:$0xff] %v184_v17  ;;  %v188_v19 = vld [vmem:[%s1764_s26 + $0x128] sm:$0xff]  ;;  %v190_v20 = vld [vmem:[%s1764_s26 + $0x130] sm:$0xff] }
  0x1f   : > { %187 = vst [vmem:[%s1769_s27 + $0x90] sm:$0xff] %v186_v18  ;;  %189 = vst [vmem:[%s1769_s27 + $0x98] sm:$0xff] %v188_v19  ;;  %v192_v21 = vld [vmem:[%s1764_s26 + $0x138] sm:$0xff]  ;;  %v194_v22 = vld [vmem:[%s1764_s26 + $0x140] sm:$0xff] }
  0x20   : > { %191 = vst [vmem:[%s1769_s27 + $0xa0] sm:$0xff] %v190_v20  ;;  %v196_v23 = vld [vmem:[%s1764_s26 + $0x148] sm:$0xff]  ;;  %193 = vst [vmem:[%s1769_s27 + $0xa8] sm:$0xff] %v192_v21  ;;  %v198_v24 = vld [vmem:[%s1764_s26 + $0x180] sm:$0xff] }
  0x21   : > { %195 = vst [vmem:[%s1769_s27 + $0xb0] sm:$0xff] %v194_v22  ;;  %197 = vst [vmem:[%s1769_s27 + $0xb8] sm:$0xff] %v196_v23  ;;  %v200_v25 = vld [vmem:[%s1764_s26 + $0x188] sm:$0xff]  ;;  %v202_v26 = vld [vmem:[%s1764_s26 + $0x190] sm:$0xff] }
  0x22   : > { %199 = vst [vmem:[%s1769_s27 + $0xc0] sm:$0xff] %v198_v24  ;;  %201 = vst [vmem:[%s1769_s27 + $0xc8] sm:$0xff] %v200_v25  ;;  %v204_v27 = vld [vmem:[%s1764_s26 + $0x198] sm:$0xff]  ;;  %v206_v28 = vld [vmem:[%s1764_s26 + $0x1a0] sm:$0xff] }
  0x23   : > { %203 = vst [vmem:[%s1769_s27 + $0xd0] sm:$0xff] %v202_v26  ;;  %v208_v29 = vld [vmem:[%s1764_s26 + $0x1a8] sm:$0xff]  ;;  %205 = vst [vmem:[%s1769_s27 + $0xd8] sm:$0xff] %v204_v27 }
  0x24   : > { %207 = vst [vmem:[%s1769_s27 + $0xe0] sm:$0xff] %v206_v28  ;;  %209 = vst [vmem:[%s1769_s27 + $0xe8] sm:$0xff] %v208_v29 }
  0x25 PF: > { %p1513_p7 = scmp.ge.s32.totalorder %s1701_s14, 1  ;;  %p214_p8 = scmp.lt.s32.totalorder %s1701_s14, 3 }
  0x27   : > { %p215_p9 = pnand %p1513_p7, %p214_p8 }
  0x28   : > { %s221_s28 = sand.u32 (!%p215_p9), 1, %s1693_s12   ;;  %v1703_v30 = vmov (!%p215_p9), 0   ;;  %vm454_vm0 = vcmask (!%p215_p9), 1041408   ;;  %v1856_v49 = vld [vmem:[%s2077_s1] sm:$0xff] (!%p215_p9)   ;;  %vm444_vm1 = vcmask (!%p215_p9), 293888   ;;  %v1875_v62 = vld [vmem:[%s2077_s1 + $0x8] sm:$0xff] (!%p215_p9)  }
  0x29   : > { %218 = sbr.rel (%p215_p9) target bundleno = 581 (0x245), region = 51  ;;  %523 = vmatprep.mubr.bf16.mxu0 (!%p215_p9), %v1703_v30  ;;  %584 = vmatprep.mubr.bf16.mxu1 (!%p215_p9), %v1703_v30  ;;  %v1656_v3 = vld [vmem:[%s2077_s1 + $0x10] ss:$0 sps:$4 sm:$0x11] (!%p215_p9)   ;;  %vm974_vm2 = vcmask (!%p215_p9), 1040384   ;;  %vm967_vm3 = vcmask (!%p215_p9), 269312  }
  0x2a   : > { %s1600_s29 = smul.u32 (!%p215_p9), 240, %s221_s28  ;;  %s1514_s21 = sshll.u32 (!%p215_p9), %s221_s28, 7 }
  0x2b   : > { %s2025_s12 = scalar_lea.vmem (!%p215_p9), [#allocation3], %s1514_s21 }
  0x2c   : > { %s1835_s30 = scalar_lea.vmem (!%p215_p9), [#allocation2], %s1600_s29 }
  0x2d   : > { %v1626_v31 = vld [vmem:[%s1835_s30 + $0x4] ss:$48 sps:$4 sm:$0xff] (!%p215_p9)   ;;  %v1628_v32 = vld [vmem:[%s1835_s30 + $0xc] ss:$48 sps:$4 sm:$0xff] (!%p215_p9)   ;;  %v1630_v33 = vld [vmem:[%s1835_s30] ss:$48 sps:$4 sm:$0xff] (!%p215_p9)  }
  0x2e   : > { %491 = vmatprep.subr.bf16.mxu0 (!%p215_p9), %v1626_v31  ;;  %v1631_v34 = vld [vmem:[%s1835_s30 + $0x8] ss:$48 sps:$4 sm:$0xff] (!%p215_p9)   ;;  %552 = vmatprep.subr.bf16.mxu1 (!%p215_p9), %v1628_v32  ;;  %v1632_v35 = vld [vmem:[%s1835_s30 + $0x64] ss:$48 sps:$4 sm:$0xff] (!%p215_p9)   ;;  %v1634_v36 = vld [vmem:[%s1835_s30 + $0x6c] ss:$48 sps:$4 sm:$0xff] (!%p215_p9)  }
  0x2f   : > { %492 = vmatpush1.bf16.msra.mxu0 (!%p215_p9), %v1630_v33  ;;  %553 = vmatpush1.bf16.msra.mxu1 (!%p215_p9), %v1631_v34  ;;  %v1636_v37 = vld [vmem:[%s1835_s30 + $0x60] ss:$48 sps:$4 sm:$0xff] (!%p215_p9)   ;;  %v1637_v38 = vld [vmem:[%s1835_s30 + $0x68] ss:$48 sps:$4 sm:$0xff] (!%p215_p9)   ;;  %v1645_v45 = vld [vmem:[%s1835_s30 + $0x14] ss:$48 sps:$4 sm:$0xff] (!%p215_p9)  }
  0x30   : > { %493 = vmatprep.subr.bf16.mxu0 %v1632_v35  ;;  %v275_v39 = vld [vmem:[%s1835_s30 + $0xc0] sm:$0x33]  ;;  %v276_v40 = vld [vmem:[%s1835_s30 + $0xc8] sm:$0x33]  ;;  %554 = vmatprep.subr.bf16.mxu1 %v1634_v36  ;;  %v277_v54 = vld [vmem:[%s1835_s30 + $0xd0] sm:$0x33] }
  0x31   : > { %v1543_v41 = vcombine.high %v275_v39, %v275_v39  ;;  %v1545_v42 = vcombine.high %v276_v40, %v276_v40  ;;  %v1542_v43 = vcombine.low %v275_v39, %v275_v39  ;;  %v1544_v44 = vcombine.low %v276_v40, %v276_v40  ;;  %v1648_v48 = vld [vmem:[%s1835_s30 + $0x1c] ss:$48 sps:$4 sm:$0xff]   ;;  %v1643_v50 = vld [vmem:[%s1835_s30 + $0x10] ss:$48 sps:$4 sm:$0xff]   ;;  %v1646_v51 = vld [vmem:[%s1835_s30 + $0x18] ss:$48 sps:$4 sm:$0xff]  }
  0x32   : > { %v1652_v52 = vld [vmem:[%s1835_s30 + $0x74] ss:$48 sps:$4 sm:$0xff]   ;;  %v1655_v53 = vld [vmem:[%s1835_s30 + $0x7c] ss:$48 sps:$4 sm:$0xff]   ;;  %v1650_v56 = vld [vmem:[%s1835_s30 + $0x70] ss:$48 sps:$4 sm:$0xff]   ;;  %v1547_v58 = vcombine.high %v277_v54, %v277_v54  ;;  %v1546_v60 = vcombine.low %v277_v54, %v277_v54 }
  0x33   : > { %494 = vmatpush1.bf16.msra.mxu0 %v1636_v37  ;;  %555 = vmatpush1.bf16.msra.mxu1 %v1637_v38  ;;  %v456_v46 = vsel %vm454_vm0, %v1542_v43, 0  ;;  %v462_v47 = vsel %vm454_vm0, %v1544_v44, 0  ;;  %v278_v55 = vld [vmem:[%s1835_s30 + $0xd8] sm:$0x33]  ;;  %v1663_v1 = vld [vmem:[%s1835_s30 + $0x24] ss:$48 sps:$4 sm:$0xff]  }
  0x34   : > { %1554 = vmatprep.subr.msk.bf16.mxu0 %vm454_vm0, %v1543_v41  ;;  %1558 = vmatprep.subr.msk.bf16.mxu1 %vm454_vm0, %v1545_v42  ;;  %v1653_v57 = vld [vmem:[%s1835_s30 + $0x78] ss:$48 sps:$4 sm:$0xff]   ;;  %v1549_v59 = vcombine.high %v278_v55, %v278_v55  ;;  %v1548_v61 = vcombine.low %v278_v55, %v278_v55  ;;  %v468_v63 = vsel %vm454_vm0, %v1546_v60, 0  ;;  %v1666_v2 = vld [vmem:[%s1835_s30 + $0x2c] ss:$48 sps:$4 sm:$0xff]   ;;  %s1598_s22 = sshll.u32 (%p1754_p5), %s1508_s15, 5 }
  0x35   : > { %v1661_v4 = vld [vmem:[%s1835_s30 + $0x20] ss:$48 sps:$4 sm:$0xff]   ;;  %v1664_v5 = vld [vmem:[%s1835_s30 + $0x28] ss:$48 sps:$4 sm:$0xff]   ;;  %v1669_v6 = vld [vmem:[%s1835_s30 + $0x84] ss:$48 sps:$4 sm:$0xff]   ;;  %s1404_s20 = scalar_lea.vmem (%p1754_p5), %s2079_s3, %s1598_s22 }
  0x36   : > { %v474_v0 = vsel %vm454_vm0, %v1548_v61, 0  ;;  %v1672_v7 = vld [vmem:[%s1835_s30 + $0x8c] ss:$48 sps:$4 sm:$0xff]   ;;  %v279_v8 = vld [vmem:[%s1835_s30 + $0xe0] sm:$0x33] }
  0x37   : > { %496 = vmatpush1.bf16.msra.mxu0 %v456_v46  ;;  %557 = vmatpush1.bf16.msra.mxu1 %v462_v47  ;;  %v280_v9 = vld [vmem:[%s1835_s30 + $0xe8] sm:$0x33]  ;;  %v1667_v10 = vld [vmem:[%s1835_s30 + $0x80] ss:$48 sps:$4 sm:$0xff]   ;;  %v1551_v12 = vcombine.high %v279_v8, %v279_v8  ;;  %v1550_v14 = vcombine.low %v279_v8, %v279_v8 }
  0x38   : > { %613 = vmatprep.subr.bf16.mxu0 %v1645_v45  ;;  %674 = vmatprep.subr.bf16.mxu1 %v1648_v48  ;;  %v1670_v11 = vld [vmem:[%s1835_s30 + $0x88] ss:$48 sps:$4 sm:$0xff]   ;;  %v1553_v13 = vcombine.high %v280_v9, %v280_v9  ;;  %v1552_v15 = vcombine.low %v280_v9, %v280_v9 }
  0x39   : > { %v480_v16 = vsel %vm454_vm0, %v1550_v14, 0 }
  0x3a   : > { %1555 = vmatmul.mubr.msk.bf16.vlgmr.msra.gmra.mrb[0].mxu0 %vm444_vm1, %v1856_v49  ;;  %1559 = vmatmul.mubr.msk.bf16.vlgmr.msra.gmra.mrb[0].mxu1 %vm444_vm1, %v1856_v49  ;;  %v486_v17 = vsel %vm454_vm0, %v1552_v15, 0 }
  0x3b   : > { %614 = vmatpush1.bf16.msra.mxu0 %v1643_v50  ;;  %675 = vmatpush1.bf16.msra.mxu1 %v1646_v51 }
  0x3c   : > { %533 = vmatprep.mubr.bf16.mxu0 %v1703_v30  ;;  %594 = vmatprep.mubr.bf16.mxu1 %v1703_v30 }
  0x3d   : > { %615 = vmatprep.subr.bf16.mxu0 %v1652_v52  ;;  %676 = vmatprep.subr.bf16.mxu1 %v1655_v53 }
  0x3f   : > { %616 = vmatpush1.bf16.msra.mxu0 %v1650_v56  ;;  %677 = vmatpush1.bf16.msra.mxu1 %v1653_v57 }
  0x40   : > { %1562 = vmatprep.subr.msk.bf16.mxu0 %vm454_vm0, %v1547_v58  ;;  %1566 = vmatprep.subr.msk.bf16.mxu1 %vm454_vm0, %v1549_v59 }
  0x42   : > { %1556 = vmatmul.mubr.msk.bf16.gmra.mrb[4].mxu0 %vm444_vm1, %v1875_v62  ;;  %1560 = vmatmul.mubr.msk.bf16.gmra.mrb[4].mxu1 %vm444_vm1, %v1875_v62 }
  0x43   : > { %543 = vmatprep.mubr.bf16.mxu0 %v1703_v30  ;;  %604 = vmatprep.mubr.bf16.mxu1 %v1703_v30 }
  0x44   : > { %618 = vmatpush1.bf16.msra.mxu0 %v468_v63  ;;  %679 = vmatpush1.bf16.msra.mxu1 %v474_v0 }
  0x45   : > { %735 = vmatprep.subr.bf16.mxu0 %v1663_v1  ;;  %796 = vmatprep.subr.bf16.mxu1 %v1666_v2 }
  0x4a   : > { %1557 = vmatmul.mubr.msk.bf16.gmra.mrb[8].mxu0 %vm444_vm1, %v1656_v3  ;;  %1561 = vmatmul.mubr.msk.bf16.gmra.mrb[8].mxu1 %vm444_vm1, %v1656_v3 }
  0x4b   : > { %645 = vmatprep.mubr.bf16.mxu0 %v1703_v30  ;;  %706 = vmatprep.mubr.bf16.mxu1 %v1703_v30 }
  0x52   : > { %1563 = vmatmul.mubr.msk.bf16.vlgmr.msra.gmra.mrb[12].mxu0 %vm444_vm1, %v1856_v49  ;;  %1567 = vmatmul.mubr.msk.bf16.vlgmr.msra.gmra.mrb[12].mxu1 %vm444_vm1, %v1856_v49 }
  0x53   : > { %736 = vmatpush1.bf16.msra.mxu0 %v1661_v4  ;;  %797 = vmatpush1.bf16.msra.mxu1 %v1664_v5 }
  0x54   : > { %655 = vmatprep.mubr.bf16.mxu0 %v1703_v30  ;;  %716 = vmatprep.mubr.bf16.mxu1 %v1703_v30 }
  0x55   : > { %737 = vmatprep.subr.bf16.mxu0 %v1669_v6  ;;  %798 = vmatprep.subr.bf16.mxu1 %v1672_v7  ;;  %v1941_v6 = vsel %vm974_vm2, 65535, %v1703_v30 }
  0x57   : > { %738 = vmatpush1.bf16.msra.mxu0 %v1667_v10  ;;  %799 = vmatpush1.bf16.msra.mxu1 %v1670_v11 }
  0x58   : > { %1570 = vmatprep.subr.msk.bf16.mxu0 %vm454_vm0, %v1551_v12  ;;  %1574 = vmatprep.subr.msk.bf16.mxu1 %vm454_vm0, %v1553_v13 }
  0x5a   : > { %1564 = vmatmul.mubr.msk.bf16.gmra.mrb[16].mxu0 %vm444_vm1, %v1875_v62  ;;  %1568 = vmatmul.mubr.msk.bf16.gmra.mrb[16].mxu1 %vm444_vm1, %v1875_v62 }
  0x5b   : > { %665 = vmatprep.mubr.bf16.mxu0 %v1703_v30  ;;  %726 = vmatprep.mubr.bf16.mxu1 %v1703_v30 }
  0x5c   : > { %740 = vmatpush1.bf16.msra.mxu0 %v480_v16  ;;  %801 = vmatpush1.bf16.msra.mxu1 %v486_v17 }
  0x62   : > { %1565 = vmatmul.mubr.msk.bf16.gmra.mrb[20].mxu0 %vm444_vm1, %v1656_v3  ;;  %1569 = vmatmul.mubr.msk.bf16.gmra.mrb[20].mxu1 %vm444_vm1, %v1656_v3 }
  0x63   : > { %767 = vmatprep.mubr.bf16.mxu0 %v1703_v30  ;;  %828 = vmatprep.mubr.bf16.mxu1 %v1703_v30 }
  0x6a   : > { %1571 = vmatmul.mubr.msk.bf16.vlgmr.msra.gmra.mrb[24].mxu0 %vm444_vm1, %v1856_v49  ;;  %1575 = vmatmul.mubr.msk.bf16.vlgmr.msra.gmra.mrb[24].mxu1 %vm444_vm1, %v1856_v49 }
  0x6b   : > { %777 = vmatprep.mubr.bf16.mxu0 %v1703_v30  ;;  %838 = vmatprep.mubr.bf16.mxu1 %v1703_v30 }
  0x72   : > { %1572 = vmatmul.mubr.msk.bf16.gmra.mrb[28].mxu0 %vm444_vm1, %v1875_v62  ;;  %1576 = vmatmul.mubr.msk.bf16.gmra.mrb[28].mxu1 %vm444_vm1, %v1875_v62 }
  0x73   : > { %787 = vmatprep.mubr.bf16.mxu0 %v1703_v30  ;;  %848 = vmatprep.mubr.bf16.mxu1 %v1703_v30 }
  0x7a   : > { %1573 = vmatmul.mubr.msk.bf16.gmra.mrb[32].mxu0 %vm444_vm1, %v1656_v3  ;;  %1577 = vmatmul.mubr.msk.bf16.gmra.mrb[32].mxu1 %vm444_vm1, %v1656_v3 }
  0x7b   : > { %1045 = vmatprep.mubr.bf16.mxu0 %v1703_v30  ;;  %1098 = vmatprep.mubr.bf16.mxu1 %v1703_v30 }
 0x10d   : > { %v525_v18 = vpop.f32.mrb[0].mxu0  ;;  %v586_v19 = vpop.f32.mrb[0].mxu1 }
 0x10e   : > { %v527_v20 = vpop.f32.mrb[1].mxu0  ;;  %v588_v21 = vpop.f32.mrb[1].mxu1  ;;  %v857_v24 = vmax.f32 %v525_v18, 0.0  ;;  %v859_v25 = vmax.f32 %v586_v19, 0.0  ;;  %v1950_v18 = vld [vmem:[%s2078_s2] sm:$0xff]  }
 0x10f   : > { %v529_v22 = vpop.f32.mrb[2].mxu0  ;;  %v590_v23 = vpop.f32.mrb[2].mxu1  ;;  %v858_v31 = vmax.f32 %v527_v20, 0.0  ;;  %v860_v32 = vmax.f32 %v588_v21, 0.0 }
 0x110   : > { %v869_v26 = vmax.f32 %v529_v22, 0.0  ;;  %v871_v27 = vmax.f32 %v590_v23, 0.0  ;;  %v531_v28 = vpop.f32.mrb[3].mxu0  ;;  %v592_v29 = vpop.f32.mrb[3].mxu1 }
 0x111   : > { %v870_v33 = vmax.f32 %v531_v28, 0.0  ;;  %v872_v34 = vmax.f32 %v592_v29, 0.0 }
 0x112   : > { %v917_v35 = vpack.c.bf16 %v869_v26, %v857_v24  ;;  %v919_v36 = vpack.c.bf16 %v871_v27, %v859_v25 }
 0x113   : > { %v918_v37 = vpack.c.bf16 %v870_v33, %v858_v31  ;;  %v920_v38 = vpack.c.bf16 %v872_v34, %v860_v32 }
 0x115   : > { %v535_v39 = vpop.f32.mrb[4].mxu0  ;;  %v596_v40 = vpop.f32.mrb[4].mxu1  ;;  %1013 = vmatprep.subr.bf16.mxu0 %v918_v37  ;;  %1066 = vmatprep.subr.bf16.mxu1 %v920_v38 }
 0x116   : > { %v537_v41 = vpop.f32.mrb[5].mxu0  ;;  %v598_v42 = vpop.f32.mrb[5].mxu1  ;;  %1014 = vmatpush1.bf16.msra.mxu0 %v917_v35  ;;  %1067 = vmatpush1.bf16.msra.mxu1 %v919_v36  ;;  %v881_v45 = vmax.f32 %v535_v39, 0.0  ;;  %v883_v46 = vmax.f32 %v596_v40, 0.0  ;;  %v1961_v40 = vld [vmem:[%s2078_s2 + $0x8] sm:$0xff]  }
 0x117   : > { %v539_v43 = vpop.f32.mrb[6].mxu0  ;;  %v600_v44 = vpop.f32.mrb[6].mxu1  ;;  %v882_v51 = vmax.f32 %v537_v41, 0.0  ;;  %v884_v52 = vmax.f32 %v598_v42, 0.0 }
 0x118   : > { %v893_v47 = vmax.f32 %v539_v43, 0.0  ;;  %v895_v48 = vmax.f32 %v600_v44, 0.0  ;;  %v541_v49 = vpop.f32.mrb[7].mxu0  ;;  %v602_v50 = vpop.f32.mrb[7].mxu1 }
 0x119   : > { %v894_v53 = vmax.f32 %v541_v49, 0.0  ;;  %v896_v54 = vmax.f32 %v602_v50, 0.0 }
 0x11a   : > { %v929_v55 = vpack.c.bf16 %v893_v47, %v881_v45  ;;  %v931_v56 = vpack.c.bf16 %v895_v48, %v883_v46 }
 0x11b   : > { %v930_v57 = vpack.c.bf16 %v894_v53, %v882_v51  ;;  %v932_v58 = vpack.c.bf16 %v896_v54, %v884_v52 }
 0x11d   : > { %v545_v59 = vpop.f32.mrb[8].mxu0  ;;  %v606_v60 = vpop.f32.mrb[8].mxu1  ;;  %1015 = vmatprep.subr.bf16.mxu0 %v930_v57  ;;  %1068 = vmatprep.subr.bf16.mxu1 %v932_v58 }
 0x11e   : > { %v905_v61 = vmax.f32 %v545_v59, 0.0  ;;  %v907_v62 = vmax.f32 %v606_v60, 0.0  ;;  %v547_v63 = vpop.f32.mrb[9].mxu0  ;;  %v608_v0 = vpop.f32.mrb[9].mxu1  ;;  %1016 = vmatpush1.bf16.msra.mxu0 %v929_v55  ;;  %1069 = vmatpush1.bf16.msra.mxu1 %v931_v56 }
 0x11f   : > { %v906_v1 = vmax.f32 %v547_v63, 0.0  ;;  %v908_v2 = vmax.f32 %v608_v0, 0.0  ;;  %v549_v3 = vpop.f32.mrb[10].mxu0  ;;  %v610_v4 = vpop.f32.mrb[10].mxu1 }
 0x120   : > { %v941_v5 = vpack.c.bf16 %v905_v61, %v905_v61  ;;  %v943_v7 = vpack.c.bf16 %v907_v62, %v907_v62  ;;  %v550_v8 = vpop.f32.mrb[11].mxu0  ;;  %v611_v9 = vpop.f32.mrb[11].mxu1 }
 0x121   : > { %v942_v10 = vpack.c.bf16 %v906_v1, %v906_v1  ;;  %v944_v11 = vpack.c.bf16 %v908_v2, %v908_v2 }
 0x122   : > { %v978_v14 = vand.u32 %v1941_v6, %v941_v5  ;;  %v984_v15 = vand.u32 %v1941_v6, %v943_v7 }
 0x123   : > { %v981_v12 = vand.u32 %v1941_v6, %v942_v10  ;;  %v987_v13 = vand.u32 %v1941_v6, %v944_v11 }
 0x125   : > { %v647_v16 = vpop.f32.mrb[12].mxu0  ;;  %v708_v17 = vpop.f32.mrb[12].mxu1  ;;  %1017 = vmatprep.subr.bf16.mxu0 %v981_v12  ;;  %1070 = vmatprep.subr.bf16.mxu1 %v987_v13 }
 0x126   : > { %v649_v19 = vpop.f32.mrb[13].mxu0  ;;  %v710_v20 = vpop.f32.mrb[13].mxu1  ;;  %1018 = vmatpush1.bf16.msra.mxu0 %v978_v14  ;;  %1071 = vmatpush1.bf16.msra.mxu1 %v984_v15  ;;  %v861_v23 = vmax.f32 %v647_v16, 0.0  ;;  %v863_v24 = vmax.f32 %v708_v17, 0.0 }
 0x127   : > { %v651_v21 = vpop.f32.mrb[14].mxu0  ;;  %v712_v22 = vpop.f32.mrb[14].mxu1  ;;  %v862_v29 = vmax.f32 %v649_v19, 0.0  ;;  %v864_v31 = vmax.f32 %v710_v20, 0.0 }
 0x128   : > { %v873_v25 = vmax.f32 %v651_v21, 0.0  ;;  %v875_v26 = vmax.f32 %v712_v22, 0.0  ;;  %v653_v27 = vpop.f32.mrb[15].mxu0  ;;  %v714_v28 = vpop.f32.mrb[15].mxu1 }
 0x129   : > { %v874_v32 = vmax.f32 %v653_v27, 0.0  ;;  %v876_v33 = vmax.f32 %v714_v28, 0.0  ;;  %1580 = vmatmul.mubr.msk.bf16.vlgmr.msra.gmra.mrb[36].mxu0 %vm967_vm3, %v1950_v18  ;;  %1582 = vmatmul.mubr.msk.bf16.vlgmr.msra.gmra.mrb[36].mxu1 %vm967_vm3, %v1950_v18 }
 0x12a   : > { %v921_v34 = vpack.c.bf16 %v873_v25, %v861_v23  ;;  %v923_v35 = vpack.c.bf16 %v875_v26, %v863_v24  ;;  %1055 = vmatprep.mubr.bf16.mxu0 %v1703_v30  ;;  %1108 = vmatprep.mubr.bf16.mxu1 %v1703_v30 }
 0x12b   : > { %v922_v36 = vpack.c.bf16 %v874_v32, %v862_v29  ;;  %v924_v37 = vpack.c.bf16 %v876_v33, %v864_v31 }
 0x12d   : > { %v657_v38 = vpop.f32.mrb[16].mxu0  ;;  %v718_v39 = vpop.f32.mrb[16].mxu1  ;;  %1119 = vmatprep.subr.bf16.mxu0 %v922_v36  ;;  %1172 = vmatprep.subr.bf16.mxu1 %v924_v37 }
 0x12e   : > { %v659_v41 = vpop.f32.mrb[17].mxu0  ;;  %v720_v42 = vpop.f32.mrb[17].mxu1  ;;  %1120 = vmatpush1.bf16.msra.mxu0 %v921_v34  ;;  %1173 = vmatpush1.bf16.msra.mxu1 %v923_v35  ;;  %v885_v45 = vmax.f32 %v657_v38, 0.0  ;;  %v887_v46 = vmax.f32 %v718_v39, 0.0 }
 0x12f   : > { %v661_v43 = vpop.f32.mrb[18].mxu0  ;;  %v722_v44 = vpop.f32.mrb[18].mxu1  ;;  %v886_v51 = vmax.f32 %v659_v41, 0.0  ;;  %v888_v52 = vmax.f32 %v720_v42, 0.0 }
 0x130   : > { %v897_v47 = vmax.f32 %v661_v43, 0.0  ;;  %v899_v48 = vmax.f32 %v722_v44, 0.0  ;;  %v663_v49 = vpop.f32.mrb[19].mxu0  ;;  %v724_v50 = vpop.f32.mrb[19].mxu1 }
 0x131   : > { %v898_v53 = vmax.f32 %v663_v49, 0.0  ;;  %v900_v54 = vmax.f32 %v724_v50, 0.0  ;;  %1581 = vmatmul.mubr.msk.bf16.gmra.mrb[40].mxu0 %vm967_vm3, %v1961_v40  ;;  %1583 = vmatmul.mubr.msk.bf16.gmra.mrb[40].mxu1 %vm967_vm3, %v1961_v40 }
 0x132   : > { %v933_v55 = vpack.c.bf16 %v897_v47, %v885_v45  ;;  %v935_v56 = vpack.c.bf16 %v899_v48, %v887_v46  ;;  %1151 = vmatprep.mubr.bf16.mxu0 %v1703_v30  ;;  %1204 = vmatprep.mubr.bf16.mxu1 %v1703_v30 }
 0x133   : > { %v934_v57 = vpack.c.bf16 %v898_v53, %v886_v51  ;;  %v936_v58 = vpack.c.bf16 %v900_v54, %v888_v52 }
 0x135   : > { %v667_v59 = vpop.f32.mrb[20].mxu0  ;;  %v728_v60 = vpop.f32.mrb[20].mxu1  ;;  %1121 = vmatprep.subr.bf16.mxu0 %v934_v57  ;;  %1174 = vmatprep.subr.bf16.mxu1 %v936_v58 }
 0x136   : > { %v909_v61 = vmax.f32 %v667_v59, 0.0  ;;  %v911_v62 = vmax.f32 %v728_v60, 0.0  ;;  %v669_v63 = vpop.f32.mrb[21].mxu0  ;;  %v730_v0 = vpop.f32.mrb[21].mxu1  ;;  %1122 = vmatpush1.bf16.msra.mxu0 %v933_v55  ;;  %1175 = vmatpush1.bf16.msra.mxu1 %v935_v56 }
 0x137   : > { %v910_v1 = vmax.f32 %v669_v63, 0.0  ;;  %v912_v2 = vmax.f32 %v730_v0, 0.0  ;;  %v671_v3 = vpop.f32.mrb[22].mxu0  ;;  %v732_v4 = vpop.f32.mrb[22].mxu1 }
 0x138   : > { %v945_v5 = vpack.c.bf16 %v909_v61, %v909_v61  ;;  %v947_v7 = vpack.c.bf16 %v911_v62, %v911_v62  ;;  %v672_v8 = vpop.f32.mrb[23].mxu0  ;;  %v733_v9 = vpop.f32.mrb[23].mxu1 }
 0x139   : > { %v946_v10 = vpack.c.bf16 %v910_v1, %v910_v1  ;;  %v948_v11 = vpack.c.bf16 %v912_v2, %v912_v2 }
 0x13a   : > { %v990_v14 = vand.u32 %v1941_v6, %v945_v5  ;;  %v996_v15 = vand.u32 %v1941_v6, %v947_v7 }
 0x13b   : > { %v993_v12 = vand.u32 %v1941_v6, %v946_v10  ;;  %v999_v13 = vand.u32 %v1941_v6, %v948_v11 }
 0x13d   : > { %v769_v16 = vpop.f32.mrb[24].mxu0  ;;  %v830_v17 = vpop.f32.mrb[24].mxu1  ;;  %1123 = vmatprep.subr.bf16.mxu0 %v993_v12  ;;  %1176 = vmatprep.subr.bf16.mxu1 %v999_v13 }
 0x13e   : > { %v771_v19 = vpop.f32.mrb[25].mxu0  ;;  %v832_v20 = vpop.f32.mrb[25].mxu1  ;;  %1124 = vmatpush1.bf16.msra.mxu0 %v990_v14  ;;  %1177 = vmatpush1.bf16.msra.mxu1 %v996_v15  ;;  %v865_v23 = vmax.f32 %v769_v16, 0.0  ;;  %v867_v24 = vmax.f32 %v830_v17, 0.0 }
 0x13f   : > { %v773_v21 = vpop.f32.mrb[26].mxu0  ;;  %v834_v22 = vpop.f32.mrb[26].mxu1  ;;  %v866_v29 = vmax.f32 %v771_v19, 0.0  ;;  %v868_v31 = vmax.f32 %v832_v20, 0.0 }
 0x140   : > { %v877_v25 = vmax.f32 %v773_v21, 0.0  ;;  %v879_v26 = vmax.f32 %v834_v22, 0.0  ;;  %v775_v27 = vpop.f32.mrb[27].mxu0  ;;  %v836_v28 = vpop.f32.mrb[27].mxu1 }
 0x141   : > { %v878_v32 = vmax.f32 %v775_v27, 0.0  ;;  %v880_v33 = vmax.f32 %v836_v28, 0.0  ;;  %1584 = vmatmul.mubr.msk.bf16.vlgmr.msra.gmra.mrb[44].mxu0 %vm967_vm3, %v1950_v18  ;;  %1586 = vmatmul.mubr.msk.bf16.vlgmr.msra.gmra.mrb[44].mxu1 %vm967_vm3, %v1950_v18 }
 0x142   : > { %v925_v34 = vpack.c.bf16 %v877_v25, %v865_v23  ;;  %v927_v35 = vpack.c.bf16 %v879_v26, %v867_v24  ;;  %1161 = vmatprep.mubr.bf16.mxu0 %v1703_v30  ;;  %1214 = vmatprep.mubr.bf16.mxu1 %v1703_v30 }
 0x143   : > { %v926_v36 = vpack.c.bf16 %v878_v32, %v866_v29  ;;  %v928_v37 = vpack.c.bf16 %v880_v33, %v868_v31 }
 0x145   : > { %v779_v38 = vpop.f32.mrb[28].mxu0  ;;  %v840_v39 = vpop.f32.mrb[28].mxu1  ;;  %1225 = vmatprep.subr.bf16.mxu0 %v926_v36  ;;  %1278 = vmatprep.subr.bf16.mxu1 %v928_v37 }
 0x146   : > { %v781_v41 = vpop.f32.mrb[29].mxu0  ;;  %v842_v42 = vpop.f32.mrb[29].mxu1  ;;  %1226 = vmatpush1.bf16.msra.mxu0 %v925_v34  ;;  %1279 = vmatpush1.bf16.msra.mxu1 %v927_v35  ;;  %v889_v45 = vmax.f32 %v779_v38, 0.0  ;;  %v891_v46 = vmax.f32 %v840_v39, 0.0 }
 0x147   : > { %v783_v43 = vpop.f32.mrb[30].mxu0  ;;  %v844_v44 = vpop.f32.mrb[30].mxu1  ;;  %v890_v51 = vmax.f32 %v781_v41, 0.0  ;;  %v892_v52 = vmax.f32 %v842_v42, 0.0 }
 0x148   : > { %v901_v47 = vmax.f32 %v783_v43, 0.0  ;;  %v903_v48 = vmax.f32 %v844_v44, 0.0  ;;  %v785_v49 = vpop.f32.mrb[31].mxu0  ;;  %v846_v50 = vpop.f32.mrb[31].mxu1 }
 0x149   : > { %v902_v53 = vmax.f32 %v785_v49, 0.0  ;;  %v904_v54 = vmax.f32 %v846_v50, 0.0  ;;  %1585 = vmatmul.mubr.msk.bf16.gmra.mrb[48].mxu0 %vm967_vm3, %v1961_v40  ;;  %1587 = vmatmul.mubr.msk.bf16.gmra.mrb[48].mxu1 %vm967_vm3, %v1961_v40 }
 0x14a   : > { %v937_v55 = vpack.c.bf16 %v901_v47, %v889_v45  ;;  %v939_v56 = vpack.c.bf16 %v903_v48, %v891_v46  ;;  %1257 = vmatprep.mubr.bf16.mxu0 %v1703_v30  ;;  %1310 = vmatprep.mubr.bf16.mxu1 %v1703_v30 }
 0x14b   : > { %v938_v57 = vpack.c.bf16 %v902_v53, %v890_v51  ;;  %v940_v58 = vpack.c.bf16 %v904_v54, %v892_v52 }
 0x14d   : > { %v789_v59 = vpop.f32.mrb[32].mxu0  ;;  %v850_v60 = vpop.f32.mrb[32].mxu1  ;;  %1227 = vmatprep.subr.bf16.mxu0 %v938_v57  ;;  %1280 = vmatprep.subr.bf16.mxu1 %v940_v58 }
 0x14e   : > { %v913_v61 = vmax.f32 %v789_v59, 0.0  ;;  %v915_v62 = vmax.f32 %v850_v60, 0.0  ;;  %v791_v63 = vpop.f32.mrb[33].mxu0  ;;  %v852_v0 = vpop.f32.mrb[33].mxu1  ;;  %1228 = vmatpush1.bf16.msra.mxu0 %v937_v55  ;;  %1281 = vmatpush1.bf16.msra.mxu1 %v939_v56 }
 0x14f   : > { %v914_v1 = vmax.f32 %v791_v63, 0.0  ;;  %v916_v2 = vmax.f32 %v852_v0, 0.0  ;;  %v793_v3 = vpop.f32.mrb[34].mxu0  ;;  %v854_v4 = vpop.f32.mrb[34].mxu1 }
 0x150   : > { %v949_v5 = vpack.c.bf16 %v913_v61, %v913_v61  ;;  %v951_v7 = vpack.c.bf16 %v915_v62, %v915_v62  ;;  %v794_v8 = vpop.f32.mrb[35].mxu0  ;;  %v855_v9 = vpop.f32.mrb[35].mxu1 }
 0x151   : > { %v950_v10 = vpack.c.bf16 %v914_v1, %v914_v1  ;;  %v952_v11 = vpack.c.bf16 %v916_v2, %v916_v2 }
 0x152   : > { %v1002_v14 = vand.u32 %v1941_v6, %v949_v5  ;;  %v1008_v15 = vand.u32 %v1941_v6, %v951_v7 }
 0x153   : > { %v1005_v12 = vand.u32 %v1941_v6, %v950_v10  ;;  %v1011_v13 = vand.u32 %v1941_v6, %v952_v11 }
 0x155   : > { %1229 = vmatprep.subr.bf16.mxu0 %v1005_v12  ;;  %1282 = vmatprep.subr.bf16.mxu1 %v1011_v13 }
 0x156   : > { %1230 = vmatpush1.bf16.msra.mxu0 %v1002_v14  ;;  %1283 = vmatpush1.bf16.msra.mxu1 %v1008_v15 }
 0x159   : > { %1588 = vmatmul.mubr.msk.bf16.vlgmr.msra.gmra.mrb[52].mxu0 %vm967_vm3, %v1950_v18  ;;  %1590 = vmatmul.mubr.msk.bf16.vlgmr.msra.gmra.mrb[52].mxu1 %vm967_vm3, %v1950_v18 }
 0x15a   : > { %1267 = vmatprep.mubr.bf16.mxu0 %v1703_v30  ;;  %1320 = vmatprep.mubr.bf16.mxu1 %v1703_v30 }
 0x161   : > { %1589 = vmatmul.mubr.msk.bf16.gmra.mrb[56].mxu0 %vm967_vm3, %v1961_v40  ;;  %1591 = vmatmul.mubr.msk.bf16.gmra.mrb[56].mxu1 %vm967_vm3, %v1961_v40 }
 0x1fc   : > { %v1047_v6 = vpop.f32.mrb[36].mxu0  ;;  %v1100_v16 = vpop.f32.mrb[36].mxu1 }
 0x1fd   : > { %v1049_v17 = vpop.f32.mrb[37].mxu0  ;;  %v1102_v19 = vpop.f32.mrb[37].mxu1 }
 0x1fe   : > { %v1051_v20 = vpop.f32.mrb[38].mxu0  ;;  %v1104_v21 = vpop.f32.mrb[38].mxu1 }
 0x1ff   : > { %v1053_v22 = vpop.f32.mrb[39].mxu0  ;;  %v1106_v23 = vpop.f32.mrb[39].mxu1 }
 0x204   : > { %v1999_v24 = vpop.f32.mrb[40].mxu0  ;;  %v2001_v18 = vpop.f32.mrb[40].mxu1 }
 0x205   : > { %v2003_v25 = vpop.f32.mrb[41].mxu0  ;;  %v2005_v30 = vpop.f32.mrb[41].mxu1 }
 0x206   : > { %v2007_v26 = vpop.f32.mrb[42].mxu0  ;;  %v2009_v27 = vpop.f32.mrb[42].mxu1 }
 0x207   : > { %v2011_v40 = vpop.f32.mrb[43].mxu0  ;;  %v2013_v28 = vpop.f32.mrb[43].mxu1 }
 0x214   : > { %v1153_v29 = vpop.f32.mrb[44].mxu0  ;;  %v1206_v31 = vpop.f32.mrb[44].mxu1 }
 0x215   : > { %v1331_v32 = vmax.f32 %v1047_v6, %v1153_v29  ;;  %v1333_v33 = vmax.f32 %v1100_v16, %v1206_v31  ;;  %v1155_v34 = vpop.f32.mrb[45].mxu0  ;;  %v1208_v35 = vpop.f32.mrb[45].mxu1 }
 0x216   : > { %v1332_v36 = vmax.f32 %v1049_v17, %v1155_v34  ;;  %v1334_v37 = vmax.f32 %v1102_v19, %v1208_v35  ;;  %v1157_v38 = vpop.f32.mrb[46].mxu0  ;;  %v1210_v39 = vpop.f32.mrb[46].mxu1 }
 0x217   : > { %v1335_v41 = vmax.f32 %v1051_v20, %v1157_v38  ;;  %v1337_v42 = vmax.f32 %v1104_v21, %v1210_v39  ;;  %v1159_v43 = vpop.f32.mrb[47].mxu0  ;;  %v1212_v44 = vpop.f32.mrb[47].mxu1 }
 0x218   : > { %v1336_v45 = vmax.f32 %v1053_v22, %v1159_v43  ;;  %v1338_v46 = vmax.f32 %v1106_v23, %v1212_v44 }
 0x21c   : > { %v1163_v47 = vpop.f32.mrb[48].mxu0  ;;  %v1216_v48 = vpop.f32.mrb[48].mxu1 }
 0x21d   : > { %v1339_v49 = vmax.f32 %v1999_v24, %v1163_v47  ;;  %v1341_v50 = vmax.f32 %v2001_v18, %v1216_v48  ;;  %v1165_v51 = vpop.f32.mrb[49].mxu0  ;;  %v1218_v52 = vpop.f32.mrb[49].mxu1 }
 0x21e   : > { %v1340_v53 = vmax.f32 %v2003_v25, %v1165_v51  ;;  %v1342_v54 = vmax.f32 %v2005_v30, %v1218_v52  ;;  %v1167_v55 = vpop.f32.mrb[50].mxu0  ;;  %v1220_v56 = vpop.f32.mrb[50].mxu1 }
 0x21f   : > { %v1343_v57 = vmax.f32 %v2007_v26, %v1167_v55  ;;  %v1345_v58 = vmax.f32 %v2009_v27, %v1220_v56  ;;  %v1169_v59 = vpop.f32.mrb[51].mxu0  ;;  %v1222_v60 = vpop.f32.mrb[51].mxu1 }
 0x220   : > { %v1344_v61 = vmax.f32 %v2011_v40, %v1169_v59  ;;  %v1346_v62 = vmax.f32 %v2013_v28, %v1222_v60 }
 0x22c   : > { %v1259_v63 = vpop.f32.mrb[52].mxu0  ;;  %v1312_v0 = vpop.f32.mrb[52].mxu1 }
 0x22d   : > { %v1347_v1 = vmax.f32 %v1331_v32, %v1259_v63  ;;  %v1349_v2 = vmax.f32 %v1333_v33, %v1312_v0  ;;  %v1261_v3 = vpop.f32.mrb[53].mxu0  ;;  %v1314_v4 = vpop.f32.mrb[53].mxu1 }
 0x22e   : > { %v1348_v5 = vmax.f32 %v1332_v36, %v1261_v3  ;;  %v1350_v7 = vmax.f32 %v1334_v37, %v1314_v4  ;;  %v1263_v8 = vpop.f32.mrb[54].mxu0  ;;  %v1316_v9 = vpop.f32.mrb[54].mxu1 }
 0x22f   : > { %v1363_v10 = vmax.f32 %v1347_v1, 0.0  ;;  %v1365_v11 = vmax.f32 %v1349_v2, 0.0  ;;  %v1351_v12 = vmax.f32 %v1335_v41, %v1263_v8  ;;  %v1353_v13 = vmax.f32 %v1337_v42, %v1316_v9  ;;  %v1265_v14 = vpop.f32.mrb[55].mxu0  ;;  %v1318_v15 = vpop.f32.mrb[55].mxu1 }
 0x230   : > { %v1364_v6 = vmax.f32 %v1348_v5, 0.0  ;;  %v1366_v16 = vmax.f32 %v1350_v7, 0.0  ;;  %v1352_v17 = vmax.f32 %v1336_v45, %v1265_v14  ;;  %v1354_v19 = vmax.f32 %v1338_v46, %v1318_v15 }
 0x231   : > { %1379 = vst [vmem:[%s2025_s12] sm:$0xff] %v1363_v10  ;;  %1381 = vst [vmem:[%s2025_s12 + $0x10] sm:$0xff] %v1365_v11  ;;  %v1367_v20 = vmax.f32 %v1351_v12, 0.0  ;;  %v1369_v21 = vmax.f32 %v1353_v13, 0.0 }
 0x232   : > { %1380 = vst [vmem:[%s2025_s12 + $0x8] sm:$0xff] %v1364_v6  ;;  %1382 = vst [vmem:[%s2025_s12 + $0x18] sm:$0xff] %v1366_v16  ;;  %v1368_v22 = vmax.f32 %v1352_v17, 0.0  ;;  %v1370_v23 = vmax.f32 %v1354_v19, 0.0 }
 0x233   : > { %1383 = vst [vmem:[%s2025_s12 + $0x20] sm:$0xff] %v1367_v20  ;;  %1385 = vst [vmem:[%s2025_s12 + $0x30] sm:$0xff] %v1369_v21 }
 0x234   : > { %1384 = vst [vmem:[%s2025_s12 + $0x28] sm:$0xff] %v1368_v22  ;;  %1386 = vst [vmem:[%s2025_s12 + $0x38] sm:$0xff] %v1370_v23  ;;  %v1269_v24 = vpop.f32.mrb[56].mxu0  ;;  %v1322_v18 = vpop.f32.mrb[56].mxu1 }
 0x235   : > { %v1355_v25 = vmax.f32 %v1339_v49, %v1269_v24  ;;  %v1357_v30 = vmax.f32 %v1341_v50, %v1322_v18  ;;  %v1271_v26 = vpop.f32.mrb[57].mxu0  ;;  %v1324_v27 = vpop.f32.mrb[57].mxu1 }
 0x236   : > { %v1356_v40 = vmax.f32 %v1340_v53, %v1271_v26  ;;  %v1358_v28 = vmax.f32 %v1342_v54, %v1324_v27  ;;  %v1273_v29 = vpop.f32.mrb[58].mxu0  ;;  %v1326_v31 = vpop.f32.mrb[58].mxu1  ;;  %1401 = sbr.rel (!%p1754_p5) target bundleno = 581 (0x245), region = 59 }
 0x237   : > { %v1371_v32 = vmax.f32 %v1355_v25, 0.0  ;;  %v1373_v33 = vmax.f32 %v1357_v30, 0.0  ;;  %v1359_v34 = vmax.f32 %v1343_v57, %v1273_v29  ;;  %v1361_v35 = vmax.f32 %v1345_v58, %v1326_v31  ;;  %v1275_v36 = vpop.f32.mrb[59].mxu0  ;;  %v1328_v37 = vpop.f32.mrb[59].mxu1 }
 0x238   : > { %v1372_v38 = vmax.f32 %v1356_v40, 0.0  ;;  %v1374_v39 = vmax.f32 %v1358_v28, 0.0  ;;  %v1360_v41 = vmax.f32 %v1344_v61, %v1275_v36  ;;  %v1362_v42 = vmax.f32 %v1346_v62, %v1328_v37  ;;  %v1417_v47 = vld [vmem:[%s2025_s12] sm:$0xff] (%p1754_p5)  ;;  %v1421_v49 = vld [vmem:[%s2025_s12 + $0x10] sm:$0xff] (%p1754_p5) }
 0x239   : > { %1387 = vst [vmem:[%s2025_s12 + $0x40] sm:$0xff] %v1371_v32  ;;  %1389 = vst [vmem:[%s2025_s12 + $0x50] sm:$0xff] %v1373_v33  ;;  %v1375_v43 = vmax.f32 %v1359_v34, 0.0  ;;  %v1377_v44 = vmax.f32 %v1361_v35, 0.0  ;;  %v1419_v48 = vld [vmem:[%s2025_s12 + $0x8] sm:$0xff] (%p1754_p5)  ;;  %v1423_v50 = vld [vmem:[%s2025_s12 + $0x18] sm:$0xff] (%p1754_p5) }
 0x23a   : > { %1388 = vst [vmem:[%s2025_s12 + $0x48] sm:$0xff] %v1372_v38  ;;  %1390 = vst [vmem:[%s2025_s12 + $0x58] sm:$0xff] %v1374_v39  ;;  %v1376_v45 = vmax.f32 %v1360_v41, 0.0  ;;  %v1378_v46 = vmax.f32 %v1362_v42, 0.0  ;;  %v1425_v51 = vld [vmem:[%s2025_s12 + $0x20] sm:$0xff] (%p1754_p5)  ;;  %v1429_v53 = vld [vmem:[%s2025_s12 + $0x30] sm:$0xff] (%p1754_p5) }
 0x23b   : > { %1391 = vst [vmem:[%s2025_s12 + $0x60] sm:$0xff] %v1375_v43  ;;  %1393 = vst [vmem:[%s2025_s12 + $0x70] sm:$0xff] %v1377_v44  ;;  %v1427_v52 = vld [vmem:[%s2025_s12 + $0x28] sm:$0xff] (%p1754_p5)  ;;  %v1431_v54 = vld [vmem:[%s2025_s12 + $0x38] sm:$0xff] (%p1754_p5) }
 0x23c   : > { %1392 = vst [vmem:[%s2025_s12 + $0x68] sm:$0xff] %v1376_v45  ;;  %1394 = vst [vmem:[%s2025_s12 + $0x78] sm:$0xff] %v1378_v46 }
 0x23d   : > { %1418 = vst [vmem:[%s1404_s20] sm:$0xff] %v1417_v47  ;;  %1420 = vst [vmem:[%s1404_s20 + $0x8] sm:$0xff] %v1419_v48 }
 0x23e   : > { %1422 = vst [vmem:[%s1404_s20 + $0x10] sm:$0xff] %v1421_v49  ;;  %1424 = vst [vmem:[%s1404_s20 + $0x18] sm:$0xff] %v1423_v50 }
 0x23f   : > { %1426 = vst [vmem:[%s1404_s20 + $0x40] sm:$0xff] %v1425_v51  ;;  %1428 = vst [vmem:[%s1404_s20 + $0x48] sm:$0xff] %v1427_v52 }
 0x240   : > { %v1433_v55 = vld [vmem:[%s2025_s12 + $0x40] sm:$0xff]  ;;  %1430 = vst [vmem:[%s1404_s20 + $0x50] sm:$0xff] %v1429_v53  ;;  %1432 = vst [vmem:[%s1404_s20 + $0x58] sm:$0xff] %v1431_v54  ;;  %v1437_v57 = vld [vmem:[%s2025_s12 + $0x50] sm:$0xff] }
 0x241   : > { %1434 = vst [vmem:[%s1404_s20 + $0x80] sm:$0xff] %v1433_v55  ;;  %v1435_v56 = vld [vmem:[%s2025_s12 + $0x48] sm:$0xff]  ;;  %v1439_v58 = vld [vmem:[%s2025_s12 + $0x58] sm:$0xff]  ;;  %1438 = vst [vmem:[%s1404_s20 + $0x90] sm:$0xff] %v1437_v57 }
 0x242   : > { %1436 = vst [vmem:[%s1404_s20 + $0x88] sm:$0xff] %v1435_v56  ;;  %1440 = vst [vmem:[%s1404_s20 + $0x98] sm:$0xff] %v1439_v58  ;;  %v1441_v59 = vld [vmem:[%s2025_s12 + $0x60] sm:$0xff]  ;;  %v1445_v61 = vld [vmem:[%s2025_s12 + $0x70] sm:$0xff] }
 0x243   : > { %v1443_v60 = vld [vmem:[%s2025_s12 + $0x68] sm:$0xff]  ;;  %1442 = vst [vmem:[%s1404_s20 + $0xc0] sm:$0xff] %v1441_v59  ;;  %1446 = vst [vmem:[%s1404_s20 + $0xd0] sm:$0xff] %v1445_v61  ;;  %v1447_v62 = vld [vmem:[%s2025_s12 + $0x78] sm:$0xff] }
 0x244   : > { %1444 = vst [vmem:[%s1404_s20 + $0xc8] sm:$0xff] %v1443_v60  ;;  %1448 = vst [vmem:[%s1404_s20 + $0xd8] sm:$0xff] %v1447_v62 }
 0x245 PF: > { %p10_p10 = scmp.ge.s32.totalorder %s1741_s16, 4   ;;  %s2081_s12 = smov %s1697_s13 }
 0x246   : > { %s2082_s13 = smov %s1752_s19  ;;  %s2083_s14 = smov %s1741_s16 }
 0x247   :  { %12 = sbr.rel (!%p10_p10) target bundleno = 2 (0x2), region = 113 }

// kernel: pointnet_forward.5
= control target key start
LH: loop header
LB: loop body
LE: loop exit
PB: predicated region body
PF: predicated region fallthrough
CT: control target
= control target key end

     0   :  { %s2123_s15 = smov 0   ;;  %s2125_s16 = smov 0   ;;  %s3079_s0 = inlined_call_operand.vmem [shape: f32[32,1024], index: 0, kind: input, shape index: {}]   ;;  %s3080_s1 = inlined_call_operand.vmem [shape: s32[1,1024], index: 1, kind: input, shape index: {}]   ;;  %s3081_s2 = inlined_call_operand.vmem [shape: bf16[4,32], index: 2, kind: input, shape index: {}]   ;;  %s3082_s3 = inlined_call_operand.vmem [shape: f32[4,1], index: 3, kind: input, shape index: {}]   ;;  %s3083_s4 = inlined_call_operand.vmem [shape: f32[4,2], index: 4, kind: output, shape index: {}]  }
   0x1   :  { %s2127_s17 = smov 0  }
   0x2 LB: > { %s2139_s18 = sadd.s32 4294967295, %s2091_s17   ;;  %s2142_s19 = sadd.s32 1, %s2091_s17   ;;  %s2091_s17 = sphi %s2127_s17, %s3094_s17   ;;  %s2087_s16 = sphi %s2125_s16, %s3093_s16   ;;  %s2083_s15 = sphi %s2123_s15, %s3092_s15  }
   0x3   : > { %s18_s20 = ssub.s32 %s2091_s17, %s2142_s19  ;;  %s21_s21 = sadd.s32 1, %s2087_s16 }
   0x4   : > { %p19_p0 = scmp.eq.s32.totalorder %s18_s20, 0  ;;  %p28_p1 = scmp.ne.s32.totalorder %s2087_s16, %s2083_s15 }
   0x5   : > { %p29_p2 = scmp.eq.s32.totalorder %s2091_s17, 0  ;;  %p1985_p4 = scmp.ge.s32.totalorder %s2091_s17, 2 }
   0x6   : > { %s2151_s22 = scalar_select %p19_p0, %s2087_s16, %s21_s21  }
   0x7   : > { %p30_p3 = por %p29_p2, %p28_p1  ;;  %149 = sbr.rel (%p1985_p4) target bundleno = 26 (0x1a), region = 24 }
   0xe   : > { %152 = sbr.rel (!%p30_p3) target bundleno = 26 (0x1a), region = 28  ;;  %s154_s23 = sand.u32 (%p30_p3), 1, %s2087_s16  }
   0xf   : > { %s2003_s24 = sshll.u32 (%p30_p3), %s2091_s17, 5  ;;  %s1986_s25 = sshll.u32 (%p30_p3), %s154_s23, 7 }
  0x10   : > { %s2159_s28 = scalar_lea.vmem (%p30_p3), %s3079_s0, %s2003_s24  ;;  %s156_s29 = scalar_lea.vmem (%p30_p3), [#allocation3], %s1986_s25 }
  0x11   : > { %v172_v0 = vld [vmem:[%s2159_s28] sm:$0xff] (%p30_p3)  ;;  %v174_v1 = vld [vmem:[%s2159_s28 + $0x8] sm:$0xff] (%p30_p3)  ;;  %v176_v2 = vld [vmem:[%s2159_s28 + $0x10] sm:$0xff] (%p30_p3) }
  0x12   : > { %173 = vst [vmem:[%s156_s29] sm:$0xff] (%p30_p3), %v172_v0  ;;  %175 = vst [vmem:[%s156_s29 + $0x8] sm:$0xff] (%p30_p3), %v174_v1  ;;  %v178_v3 = vld [vmem:[%s2159_s28 + $0x18] sm:$0xff] (%p30_p3)  ;;  %v180_v4 = vld [vmem:[%s2159_s28 + $0x40] sm:$0xff] (%p30_p3) }
  0x13   : > { %177 = vst [vmem:[%s156_s29 + $0x10] sm:$0xff] (%p30_p3), %v176_v2  ;;  %v182_v5 = vld [vmem:[%s2159_s28 + $0x48] sm:$0xff] (%p30_p3)  ;;  %179 = vst [vmem:[%s156_s29 + $0x18] sm:$0xff] (%p30_p3), %v178_v3  ;;  %v184_v6 = vld [vmem:[%s2159_s28 + $0x50] sm:$0xff] (%p30_p3) }
  0x14   : > { %181 = vst [vmem:[%s156_s29 + $0x20] sm:$0xff] (%p30_p3), %v180_v4  ;;  %183 = vst [vmem:[%s156_s29 + $0x28] sm:$0xff] (%p30_p3), %v182_v5  ;;  %v186_v7 = vld [vmem:[%s2159_s28 + $0x58] sm:$0xff] (%p30_p3)  ;;  %v188_v8 = vld [vmem:[%s2159_s28 + $0x80] sm:$0xff] (%p30_p3) }
  0x15   : > { %185 = vst [vmem:[%s156_s29 + $0x30] sm:$0xff] %v184_v6  ;;  %187 = vst [vmem:[%s156_s29 + $0x38] sm:$0xff] %v186_v7  ;;  %v190_v9 = vld [vmem:[%s2159_s28 + $0x88] sm:$0xff]  ;;  %v192_v10 = vld [vmem:[%s2159_s28 + $0x90] sm:$0xff] }
  0x16   : > { %189 = vst [vmem:[%s156_s29 + $0x40] sm:$0xff] %v188_v8  ;;  %v194_v11 = vld [vmem:[%s2159_s28 + $0x98] sm:$0xff]  ;;  %191 = vst [vmem:[%s156_s29 + $0x48] sm:$0xff] %v190_v9  ;;  %v196_v12 = vld [vmem:[%s2159_s28 + $0xc0] sm:$0xff] }
  0x17   : > { %193 = vst [vmem:[%s156_s29 + $0x50] sm:$0xff] %v192_v10  ;;  %195 = vst [vmem:[%s156_s29 + $0x58] sm:$0xff] %v194_v11  ;;  %v198_v13 = vld [vmem:[%s2159_s28 + $0xc8] sm:$0xff]  ;;  %v200_v14 = vld [vmem:[%s2159_s28 + $0xd0] sm:$0xff] }
  0x18   : > { %197 = vst [vmem:[%s156_s29 + $0x60] sm:$0xff] %v196_v12  ;;  %199 = vst [vmem:[%s156_s29 + $0x68] sm:$0xff] %v198_v13  ;;  %v202_v15 = vld [vmem:[%s2159_s28 + $0xd8] sm:$0xff] }
  0x19   : > { %201 = vst [vmem:[%s156_s29 + $0x70] sm:$0xff] %v200_v14  ;;  %203 = vst [vmem:[%s156_s29 + $0x78] sm:$0xff] %v202_v15 }
  0x1a PF: > { %p1989_p5 = scmp.ge.s32.totalorder %s2091_s17, 1  ;;  %p216_p6 = scmp.lt.s32.totalorder %s2091_s17, 3 }
  0x1c   : > { %p217_p7 = pnand %p1989_p5, %p216_p6 }
  0x1d   : > { %s223_s30 = sand.u32 (!%p217_p7), 1, %s2083_s15   ;;  %s1991_s5 = sshll.u32 (!%p217_p7), %s2139_s18, 2 }
  0x1e   : > { %220 = sbr.rel (%p217_p7) target bundleno = 569 (0x239), region = 55  ;;  %s1990_s6 = sshll.u32 (!%p217_p7), %s223_s30, 7 }
  0x1f   : > { %p249_p8 = scmp.lt.s32.totalorder (!%p217_p7), %s1991_s5, 7  ;;  %s2184_s10 = scalar_lea.vmem (!%p217_p7), [#allocation3], %s1990_s6 }
  0x20   : > { %p1992_p9 = scmp.ne.s32.totalorder (!%p217_p7), %s2139_s18, 0 }
  0x25   : > { %s3096_s5 = smov (!%p249_p8, %s1991_s5), 7  ;;  %257 = sbr.rel (%p1992_p9) target bundleno = 44 (0x2c), region = 63 }
  0x26   : > { %s251_s9 = scalar_lea.vmem %s3080_s1, %s3096_s5  ;;  %vm258_vm0 = vcmask (!%p1992_p9), 15360   ;;  %v2093_v16 = vmov (!%p1992_p9), -inf  }
  0x27   : > { %259 = vst.msk [vmem:[#allocation2] sm:$0xff] (!%p1992_p9), %vm258_vm0, %v2093_v16  ;;  %260 = vst.msk [vmem:[#allocation2 + $0x8] sm:$0xff] (!%p1992_p9), %vm258_vm0, %v2093_v16 }
  0x28   : > { %261 = vst.msk [vmem:[#allocation2 + $0x10] sm:$0xff] (!%p1992_p9), %vm258_vm0, %v2093_v16  ;;  %262 = vst.msk [vmem:[#allocation2 + $0x18] sm:$0xff] (!%p1992_p9), %vm258_vm0, %v2093_v16 }
  0x2c PF: > { %v280_v17 = vlaneseq  ;;  %v279_v18 = vld [vmem:[%s251_s9] sm:$0xf]  ;;  %v2094_v19 = vmov 1966171168   ;;  %v2046_v23 = vld [vmem:[%s2184_s10 + $0x30] ss:$8 sps:$4 sm:$0xff]  }
  0x2d   : > { %v323_v20 = vunpack.c.l.s4 %v2094_v19  ;;  %v2044_v21 = vld [vmem:[%s2184_s10 + $0x20] ss:$8 sps:$4 sm:$0xff]   ;;  %v2050_v31 = vld [vmem:[%s2184_s10 + $0x10] ss:$8 sps:$4 sm:$0xff]   ;;  %vm1370_vm1 = vcmask 1041408   ;;  %vm1821_vm6 = vcmask 1041409  }
  0x2e   : > { %v281_v22 = vshrl.u32 %v280_v17, 7  ;;  %v1692_v24 = vand.u32 127, %v280_v17  ;;  %v2048_v26 = vld [vmem:[%s2184_s10] ss:$8 sps:$4 sm:$0xff]   ;;  %v2054_v39 = vld [vmem:[%s2184_s10 + $0x50] ss:$8 sps:$4 sm:$0xff]  }
  0x2f   : > { %v324_v25 = vunpack.c.0.s8 %v323_v20  ;;  %v2052_v38 = vld [vmem:[%s2184_s10 + $0x40] ss:$8 sps:$4 sm:$0xff]   ;;  %v2058_v49 = vld [vmem:[%s2184_s10 + $0x70] ss:$8 sps:$4 sm:$0xff]   ;;  %vm1823_vm7 = vcmask 1042434   ;;  %vm1825_vm8 = vcmask 1043459  }
  0x30   : > { %v2190_v27 = vsub.s32 0, %v281_v22  ;;  %v2192_v28 = vsub.s32 1, %v281_v22  ;;  %v2194_v29 = vsub.s32 2, %v281_v22  ;;  %v2196_v30 = vsub.s32 3, %v281_v22  ;;  %v2056_v48 = vld [vmem:[%s2184_s10 + $0x60] ss:$8 sps:$4 sm:$0xff]  }
  0x31   : > { %v2199_v32 = vsub.s32 %v324_v25, %v281_v22  ;;  %v2201_v33 = vsub.s32 %v1692_v24, %v281_v22  ;;  %vm1827_vm9 = vcmask 1044484   ;;  %vm1829_vm10 = vcmask 1045509   ;;  %p1993_p10 = scmp.ne.s32.totalorder %s2139_s18, 1 }
  0x32   : > { %v285_v34 = vrot.slane %v279_v18, %v2190_v27  ;;  %v289_v35 = vrot.slane %v279_v18, %v2192_v28  ;;  %v293_v36 = vrot.slane %v279_v18, %v2194_v29  ;;  %v297_v37 = vrot.slane %v279_v18, %v2196_v30 }
  0x33   : > { %v396_v40 = vrot.slane %v2044_v21, %v2199_v32  ;;  %v410_v41 = vrot.slane %v2046_v23, %v2199_v32  ;;  %v328_v42 = vrot.slane %v2048_v26, %v2199_v32  ;;  %v342_v43 = vrot.slane %v2050_v31, %v2199_v32 }
  0x34   : > { %vm2213_vm2 = vcmp.eq.s32.totalorder %v285_v34, %v281_v22  ;;  %vm2217_vm3 = vcmp.eq.s32.totalorder %v289_v35, %v281_v22  ;;  %vm2221_vm4 = vcmp.eq.s32.totalorder %v293_v36, %v281_v22  ;;  %vm2225_vm5 = vcmp.eq.s32.totalorder %v297_v37, %v281_v22 }
  0x35   : > { %v418_v50 = vcombine.low %v396_v40, %v410_v41  ;;  %v350_v51 = vcombine.low %v328_v42, %v342_v43  ;;  %v419_v52 = vcombine.high %v396_v40, %v410_v41  ;;  %v351_v53 = vcombine.high %v328_v42, %v342_v43 }
  0x36   : > { %v2232_v54 = vrot.slane %v2052_v38, %v2199_v32  ;;  %v2235_v55 = vrot.slane %v2054_v39, %v2199_v32  ;;  %v2238_v56 = vrot.slane %v2056_v48, %v2199_v32  ;;  %v2241_v57 = vrot.slane %v2058_v49, %v2199_v32 }
  0x37   : > { %v2244_v58 = vrot.slane %v418_v50, %v2199_v32  ;;  %v2247_v59 = vrot.slane %v350_v51, %v2199_v32  ;;  %v2250_v60 = vrot.slane %v419_v52, %v2199_v32  ;;  %v2253_v61 = vrot.slane %v351_v53, %v2199_v32 }
  0x38   : > { %v487_v62 = vcombine.high %v2232_v54, %v2235_v55  ;;  %v486_v63 = vcombine.low %v2232_v54, %v2235_v55  ;;  %v555_v0 = vcombine.high %v2238_v56, %v2241_v57  ;;  %v554_v1 = vcombine.low %v2238_v56, %v2241_v57 }
  0x39   : > { %v729_v2 = vrot.slane %v2244_v58, %v2190_v27  ;;  %v733_v3 = vrot.slane %v2244_v58, %v2192_v28  ;;  %v737_v4 = vrot.slane %v2244_v58, %v2194_v29  ;;  %v741_v5 = vrot.slane %v2244_v58, %v2196_v30 }
  0x3a   : > { %v601_v6 = vrot.slane %v2247_v59, %v2190_v27  ;;  %v605_v7 = vrot.slane %v2247_v59, %v2192_v28  ;;  %v609_v8 = vrot.slane %v2247_v59, %v2194_v29  ;;  %v613_v9 = vrot.slane %v2247_v59, %v2196_v30 }
  0x3b   : > { %v1270_v10 = vsel %vm2213_vm2, %v729_v2, -inf  ;;  %v1271_v11 = vsel %vm2217_vm3, %v733_v3, -inf  ;;  %v1272_v12 = vsel %vm2221_vm4, %v737_v4, -inf  ;;  %v1273_v13 = vsel %vm2225_vm5, %v741_v5, -inf }
  0x3c   : > { %v1443_v14 = vsel %vm1370_vm1, %v1270_v10, -inf  ;;  %v1444_v15 = vsel %vm1370_vm1, %v1271_v11, -inf  ;;  %v1446_v16 = vsel %vm1370_vm1, %v1272_v12, -inf  ;;  %v1448_v17 = vsel %vm1370_vm1, %v1273_v13, -inf }
  0x3d   : > { %v1445_v18 = vmax.f32 %v1443_v14, %v1444_v15  ;;  %v1238_v19 = vsel %vm2213_vm2, %v601_v6, -inf  ;;  %v1239_v20 = vsel %vm2217_vm3, %v605_v7, -inf  ;;  %v1240_v21 = vsel %vm2221_vm4, %v609_v8, -inf }
  0x3e   : > { %v1241_v22 = vsel %vm2225_vm5, %v613_v9, -inf  ;;  %v1371_v23 = vsel %vm1370_vm1, %v1238_v19, -inf  ;;  %v1372_v24 = vsel %vm1370_vm1, %v1239_v20, -inf  ;;  %v1374_v25 = vsel %vm1370_vm1, %v1240_v21, -inf }
  0x3f   : > { %v1447_v26 = vmax.f32 %v1445_v18, %v1446_v16  ;;  %v1373_v31 = vmax.f32 %v1371_v23, %v1372_v24  ;;  %v1376_v34 = vsel %vm1370_vm1, %v1241_v22, -inf  ;;  %v745_v35 = vrot.slane %v2250_v60, %v2190_v27 }
  0x40   : > { %v749_v36 = vrot.slane %v2250_v60, %v2192_v28  ;;  %v753_v37 = vrot.slane %v2250_v60, %v2194_v29  ;;  %v757_v38 = vrot.slane %v2250_v60, %v2196_v30  ;;  %v617_v39 = vrot.slane %v2253_v61, %v2190_v27 }
  0x41   : > { %v1449_v40 = vmax.f32 %v1447_v26, %v1448_v17  ;;  %v1375_v41 = vmax.f32 %v1373_v31, %v1374_v25  ;;  %v1274_v42 = vsel %vm2213_vm2, %v745_v35, -inf  ;;  %v621_v43 = vrot.slane %v2253_v61, %v2192_v28 }
  0x42   : > { %v1275_v48 = vsel %vm2217_vm3, %v749_v36, -inf  ;;  %v1276_v49 = vsel %vm2221_vm4, %v753_v37, -inf  ;;  %v1277_v50 = vsel %vm2225_vm5, %v757_v38, -inf  ;;  %v1452_v51 = vsel %vm1370_vm1, %v1274_v42, -inf }
  0x43   : > { %1450 = vmax.xlane.f32.xlu1 %v1449_v40  ;;  %v1377_v52 = vmax.f32 %v1375_v41, %v1376_v34  ;;  %v1453_v53 = vsel %vm1370_vm1, %v1275_v48, -inf  ;;  %v1455_v54 = vsel %vm1370_vm1, %v1276_v49, -inf  ;;  %v1457_v55 = vsel %vm1370_vm1, %v1277_v50, -inf }
  0x44   : > { %v1454_v2 = vmax.f32 %v1452_v51, %v1453_v53  ;;  %v625_v3 = vrot.slane %v2253_v61, %v2194_v29  ;;  %v629_v4 = vrot.slane %v2253_v61, %v2196_v30  ;;  %v1242_v5 = vsel %vm2213_vm2, %v617_v39, -inf }
  0x45   : > { %1378 = vmax.xlane.f32.xlu0 %v1377_v52  ;;  %v1243_v6 = vsel %vm2217_vm3, %v621_v43, -inf  ;;  %v1380_v7 = vsel %vm1370_vm1, %v1242_v5, -inf  ;;  %v2337_v8 = vrot.slane %v487_v62, %v2199_v32  ;;  %v2340_v9 = vrot.slane %v486_v63, %v2199_v32 }
  0x46   : > { %v1456_v10 = vmax.f32 %v1454_v2, %v1455_v54  ;;  %v1244_v11 = vsel %vm2221_vm4, %v625_v3, -inf  ;;  %v1245_v12 = vsel %vm2225_vm5, %v629_v4, -inf  ;;  %v1381_v13 = vsel %vm1370_vm1, %v1243_v6, -inf }
  0x47   : > { %v1382_v14 = vmax.f32 %v1380_v7, %v1381_v13  ;;  %v1383_v15 = vsel %vm1370_vm1, %v1244_v11, -inf  ;;  %v1385_v16 = vsel %vm1370_vm1, %v1245_v12, -inf  ;;  %v873_v62 = vrot.slane %v2337_v8, %v2190_v27 }
  0x48   : > { %v1458_v17 = vmax.f32 %v1456_v10, %v1457_v55  ;;  %v877_v63 = vrot.slane %v2337_v8, %v2192_v28  ;;  %v881_v18 = vrot.slane %v2337_v8, %v2194_v29  ;;  %v885_v19 = vrot.slane %v2337_v8, %v2196_v30 }
  0x49   : > { %v1384_v20 = vmax.f32 %v1382_v14, %v1383_v15  ;;  %v1306_v21 = vsel %vm2213_vm2, %v873_v62, -inf  ;;  %v857_v22 = vrot.slane %v2340_v9, %v2190_v27  ;;  %v861_v23 = vrot.slane %v2340_v9, %v2192_v28 }
  0x4a   : > { %1459 = vmax.xlane.f32.xlu1 %v1458_v17  ;;  %v1307_v24 = vsel %vm2217_vm3, %v877_v63, -inf  ;;  %v1308_v25 = vsel %vm2221_vm4, %v881_v18, -inf  ;;  %v1309_v26 = vsel %vm2225_vm5, %v885_v19, -inf  ;;  %v1524_v31 = vsel %vm1370_vm1, %v1306_v21, -inf }
  0x4b   : > { %v1386_v34 = vmax.f32 %v1384_v20, %v1385_v16  ;;  %v1525_v35 = vsel %vm1370_vm1, %v1307_v24, -inf  ;;  %v1527_v36 = vsel %vm1370_vm1, %v1308_v25, -inf  ;;  %v1529_v37 = vsel %vm1370_vm1, %v1309_v26, -inf }
  0x4c   : > { %v1526_v38 = vmax.f32 %v1524_v31, %v1525_v35  ;;  %v865_v39 = vrot.slane %v2340_v9, %v2194_v29  ;;  %v869_v40 = vrot.slane %v2340_v9, %v2196_v30  ;;  %v1302_v41 = vsel %vm2213_vm2, %v857_v22, -inf }
  0x4d   : > { %1387 = vmax.xlane.f32.xlu0 %v1386_v34  ;;  %v1303_v42 = vsel %vm2217_vm3, %v861_v23, -inf  ;;  %v1515_v43 = vsel %vm1370_vm1, %v1302_v41, -inf  ;;  %v2386_v48 = vrot.slane %v555_v0, %v2199_v32  ;;  %v2392_v49 = vrot.slane %v554_v1, %v2199_v32 }
  0x4e   : > { %v1528_v50 = vmax.f32 %v1526_v38, %v1527_v36  ;;  %v1304_v51 = vsel %vm2221_vm4, %v865_v39, -inf  ;;  %v1305_v52 = vsel %vm2225_vm5, %v869_v40, -inf  ;;  %v1516_v53 = vsel %vm1370_vm1, %v1303_v42, -inf }
  0x4f   : > { %v1517_v54 = vmax.f32 %v1515_v43, %v1516_v53  ;;  %v1518_v55 = vsel %vm1370_vm1, %v1304_v51, -inf  ;;  %v1520_v0 = vsel %vm1370_vm1, %v1305_v52, -inf  ;;  %v1001_v2 = vrot.slane %v2386_v48, %v2190_v27 }
  0x50   : > { %v1530_v56 = vmax.f32 %v1528_v50, %v1529_v37  ;;  %v1005_v57 = vrot.slane %v2386_v48, %v2192_v28  ;;  %v1009_v1 = vrot.slane %v2386_v48, %v2194_v29  ;;  %v1013_v3 = vrot.slane %v2386_v48, %v2196_v30 }
  0x51   : > { %v1519_v4 = vmax.f32 %v1517_v54, %v1518_v55  ;;  %v1338_v5 = vsel %vm2213_vm2, %v1001_v2, -inf  ;;  %v985_v6 = vrot.slane %v2392_v49, %v2190_v27  ;;  %v989_v7 = vrot.slane %v2392_v49, %v2192_v28 }
  0x52   : > { %1531 = vmax.xlane.f32.xlu1 %v1530_v56  ;;  %v1339_v10 = vsel %vm2217_vm3, %v1005_v57, -inf  ;;  %v1340_v11 = vsel %vm2221_vm4, %v1009_v1, -inf  ;;  %v1341_v12 = vsel %vm2225_vm5, %v1013_v3, -inf  ;;  %v1596_v13 = vsel %vm1370_vm1, %v1338_v5, -inf }
  0x53   : > { %v1521_v14 = vmax.f32 %v1519_v4, %v1520_v0  ;;  %v1597_v15 = vsel %vm1370_vm1, %v1339_v10, -inf  ;;  %v1599_v16 = vsel %vm1370_vm1, %v1340_v11, -inf  ;;  %v1601_v62 = vsel %vm1370_vm1, %v1341_v12, -inf }
  0x54   : > { %v1598_v17 = vmax.f32 %v1596_v13, %v1597_v15  ;;  %v993_v63 = vrot.slane %v2392_v49, %v2194_v29  ;;  %v997_v18 = vrot.slane %v2392_v49, %v2196_v30  ;;  %v1334_v19 = vsel %vm2213_vm2, %v985_v6, -inf }
  0x55   : > { %1522 = vmax.xlane.f32.xlu0 %v1521_v14  ;;  %v1335_v20 = vsel %vm2217_vm3, %v989_v7, -inf  ;;  %v1587_v21 = vsel %vm1370_vm1, %v1334_v19, -inf  ;;  %v450_v22 = vcombine.high %v2244_v58, %v2244_v58  ;;  %v382_v23 = vcombine.high %v2247_v59, %v2247_v59 }
  0x56   : > { %v1600_v24 = vmax.f32 %v1598_v17, %v1599_v16  ;;  %v1336_v25 = vsel %vm2221_vm4, %v993_v63, -inf  ;;  %v1337_v26 = vsel %vm2225_vm5, %v997_v18, -inf  ;;  %v1588_v31 = vsel %vm1370_vm1, %v1335_v20, -inf }
  0x57   : > { %v1589_v34 = vmax.f32 %v1587_v21, %v1588_v31  ;;  %v1590_v35 = vsel %vm1370_vm1, %v1336_v25, -inf  ;;  %v1592_v36 = vsel %vm1370_vm1, %v1337_v26, -inf  ;;  %v761_v37 = vrot.slane %v450_v22, %v2190_v27 }
  0x58   : > { %v1602_v58 = vmax.f32 %v1600_v24, %v1601_v62  ;;  %v765_v38 = vrot.slane %v450_v22, %v2192_v28  ;;  %v769_v59 = vrot.slane %v450_v22, %v2194_v29  ;;  %v773_v39 = vrot.slane %v450_v22, %v2196_v30 }
  0x59   : > { %v1591_v40 = vmax.f32 %v1589_v34, %v1590_v35  ;;  %v1278_v41 = vsel %vm2213_vm2, %v761_v37, -inf  ;;  %v633_v42 = vrot.slane %v382_v23, %v2190_v27  ;;  %v637_v43 = vrot.slane %v382_v23, %v2192_v28 }
  0x5a   : > { %1603 = vmax.xlane.f32.xlu1 %v1602_v58  ;;  %v1279_v50 = vsel %vm2217_vm3, %v765_v38, -inf  ;;  %v1280_v51 = vsel %vm2221_vm4, %v769_v59, -inf  ;;  %v1281_v52 = vsel %vm2225_vm5, %v773_v39, -inf  ;;  %v1461_v53 = vsel %vm1370_vm1, %v1278_v41, -inf }
  0x5b   : > { %v1593_v54 = vmax.f32 %v1591_v40, %v1592_v36  ;;  %v1462_v55 = vsel %vm1370_vm1, %v1279_v50, -inf  ;;  %v1464_v0 = vsel %vm1370_vm1, %v1280_v51, -inf  ;;  %v1466_v2 = vsel %vm1370_vm1, %v1281_v52, -inf }
  0x5c   : > { %v1463_v56 = vmax.f32 %v1461_v53, %v1462_v55  ;;  %v641_v57 = vrot.slane %v382_v23, %v2194_v29  ;;  %v645_v1 = vrot.slane %v382_v23, %v2196_v30  ;;  %v1246_v3 = vsel %vm2213_vm2, %v633_v42, -inf }
  0x5d   : > { %1594 = vmax.xlane.f32.xlu0 %v1593_v54  ;;  %v1247_v4 = vsel %vm2217_vm3, %v637_v43, -inf  ;;  %v1389_v5 = vsel %vm1370_vm1, %v1246_v3, -inf  ;;  %v586_v6 = vcombine.high %v2392_v49, %v2392_v49  ;;  %v518_v7 = vcombine.high %v2340_v9, %v2340_v9 }
  0x5e   : > { %v1465_v10 = vmax.f32 %v1463_v56, %v1464_v0  ;;  %v1248_v11 = vsel %vm2221_vm4, %v641_v57, -inf  ;;  %v1249_v12 = vsel %vm2225_vm5, %v645_v1, -inf  ;;  %v1390_v13 = vsel %vm1370_vm1, %v1247_v4, -inf }
  0x5f   : > { %v1391_v14 = vmax.f32 %v1389_v5, %v1390_v13  ;;  %v1392_v15 = vsel %vm1370_vm1, %v1248_v11, -inf  ;;  %v1394_v16 = vsel %vm1370_vm1, %v1249_v12, -inf  ;;  %v1017_v62 = vrot.slane %v586_v6, %v2190_v27 }
  0x60   : > { %v1467_v49 = vmax.f32 %v1465_v10, %v1466_v2  ;;  %v1021_v17 = vrot.slane %v586_v6, %v2192_v28  ;;  %v1025_v9 = vrot.slane %v586_v6, %v2194_v29  ;;  %v1029_v63 = vrot.slane %v586_v6, %v2196_v30 }
  0x61   : > { %v1393_v18 = vmax.f32 %v1391_v14, %v1392_v15  ;;  %v1342_v19 = vsel %vm2213_vm2, %v1017_v62, -inf  ;;  %v889_v20 = vrot.slane %v518_v7, %v2190_v27  ;;  %v893_v21 = vrot.slane %v518_v7, %v2192_v28 }
  0x62   : > { %1468 = vmax.xlane.f32.xlu1 %v1467_v49  ;;  %v1343_v22 = vsel %vm2217_vm3, %v1021_v17, -inf  ;;  %v1344_v23 = vsel %vm2221_vm4, %v1025_v9, -inf  ;;  %v1345_v24 = vsel %vm2225_vm5, %v1029_v63, -inf  ;;  %v1605_v25 = vsel %vm1370_vm1, %v1342_v19, -inf }
  0x63   : > { %v1395_v26 = vmax.f32 %v1393_v18, %v1394_v16  ;;  %v1606_v31 = vsel %vm1370_vm1, %v1343_v22, -inf  ;;  %v1608_v34 = vsel %vm1370_vm1, %v1344_v23, -inf  ;;  %v1610_v35 = vsel %vm1370_vm1, %v1345_v24, -inf }
  0x64   : > { %v1607_v36 = vmax.f32 %v1605_v25, %v1606_v31  ;;  %v897_v37 = vrot.slane %v518_v7, %v2194_v29  ;;  %v901_v58 = vrot.slane %v518_v7, %v2196_v30  ;;  %v1310_v38 = vsel %vm2213_vm2, %v889_v20, -inf }
  0x65   : > { %1396 = vmax.xlane.f32.xlu0 %v1395_v26  ;;  %v1311_v59 = vsel %vm2217_vm3, %v893_v21, -inf  ;;  %v1533_v39 = vsel %vm1370_vm1, %v1310_v38, -inf  ;;  %v452_v40 = vcombine.high %v2250_v60, %v2250_v60  ;;  %v384_v41 = vcombine.high %v2253_v61, %v2253_v61  ;;  %v2061_v38 = vld [vmem:[%s2184_s10 + $0x34] ss:$8 sps:$4 sm:$0xff]  }
  0x66   : > { %v1609_v42 = vmax.f32 %v1607_v36, %v1608_v34  ;;  %v1312_v43 = vsel %vm2221_vm4, %v897_v37, -inf  ;;  %v1313_v50 = vsel %vm2225_vm5, %v901_v58, -inf  ;;  %v1534_v51 = vsel %vm1370_vm1, %v1311_v59, -inf  ;;  %v2060_v58 = vld [vmem:[%s2184_s10 + $0x24] ss:$8 sps:$4 sm:$0xff]  }
  0x67   : > { %v1535_v52 = vmax.f32 %v1533_v39, %v1534_v51  ;;  %v1536_v53 = vsel %vm1370_vm1, %v1312_v43, -inf  ;;  %v1538_v54 = vsel %vm1370_vm1, %v1313_v50, -inf  ;;  %v777_v55 = vrot.slane %v452_v40, %v2190_v27 }
  0x68   : > { %v1611_v60 = vmax.f32 %v1609_v42, %v1610_v35  ;;  %v781_v0 = vrot.slane %v452_v40, %v2192_v28  ;;  %v785_v61 = vrot.slane %v452_v40, %v2194_v29  ;;  %v789_v2 = vrot.slane %v452_v40, %v2196_v30 }
  0x69   : > { %v1537_v56 = vmax.f32 %v1535_v52, %v1536_v53  ;;  %v1282_v57 = vsel %vm2213_vm2, %v777_v55, -inf  ;;  %v649_v1 = vrot.slane %v384_v41, %v2190_v27  ;;  %v653_v3 = vrot.slane %v384_v41, %v2192_v28  ;;  %v2062_v52 = vld [vmem:[%s2184_s10 + $0x4] ss:$8 sps:$4 sm:$0xff]  }
  0x6a   : > { %1612 = vmax.xlane.f32.xlu1 %v1611_v60  ;;  %v1283_v4 = vsel %vm2217_vm3, %v781_v0, -inf  ;;  %v1284_v5 = vsel %vm2221_vm4, %v785_v61, -inf  ;;  %v1285_v6 = vsel %vm2225_vm5, %v789_v2, -inf  ;;  %v1470_v7 = vsel %vm1370_vm1, %v1282_v57, -inf  ;;  %v2063_v0 = vld [vmem:[%s2184_s10 + $0x14] ss:$8 sps:$4 sm:$0xff]  }
  0x6b   : > { %v1539_v10 = vmax.f32 %v1537_v56, %v1538_v54  ;;  %v1471_v11 = vsel %vm1370_vm1, %v1283_v4, -inf  ;;  %v1473_v12 = vsel %vm1370_vm1, %v1284_v5, -inf  ;;  %v1475_v13 = vsel %vm1370_vm1, %v1285_v6, -inf  ;;  %v2064_v61 = vld [vmem:[%s2184_s10 + $0x64] ss:$8 sps:$4 sm:$0xff]  }
  0x6c   : > { %v1472_v14 = vmax.f32 %v1470_v7, %v1471_v11  ;;  %v657_v15 = vrot.slane %v384_v41, %v2194_v29  ;;  %v661_v16 = vrot.slane %v384_v41, %v2196_v30  ;;  %v1250_v62 = vsel %vm2213_vm2, %v649_v1, -inf  ;;  %v2066_v4 = vld [vmem:[%s2184_s10 + $0x44] ss:$8 sps:$4 sm:$0xff]   ;;  %v2067_v11 = vld [vmem:[%s2184_s10 + $0x54] ss:$8 sps:$4 sm:$0xff]  }
  0x6d   : > { %1540 = vmax.xlane.f32.xlu0 %v1539_v10  ;;  %v1251_v49 = vsel %vm2217_vm3, %v653_v3, -inf  ;;  %v1398_v17 = vsel %vm1370_vm1, %v1250_v62, -inf  ;;  %v588_v9 = vcombine.high %v2386_v48, %v2386_v48  ;;  %v520_v63 = vcombine.high %v2337_v8, %v2337_v8  ;;  %v2065_v3 = vld [vmem:[%s2184_s10 + $0x74] ss:$8 sps:$4 sm:$0xff]  }
  0x6e   : > { %v1474_v18 = vmax.f32 %v1472_v14, %v1473_v12  ;;  %v1252_v19 = vsel %vm2221_vm4, %v657_v15, -inf  ;;  %v1253_v20 = vsel %vm2225_vm5, %v661_v16, -inf  ;;  %v1399_v21 = vsel %vm1370_vm1, %v1251_v49, -inf }
  0x6f   : > { %v1400_v22 = vmax.f32 %v1398_v17, %v1399_v21  ;;  %v1401_v23 = vsel %vm1370_vm1, %v1252_v19, -inf  ;;  %v1403_v24 = vsel %vm1370_vm1, %v1253_v20, -inf  ;;  %v1033_v48 = vrot.slane %v588_v9, %v2190_v27 }
  0x70   : > { %v1476_v25 = vmax.f32 %v1474_v18, %v1475_v13  ;;  %v1037_v8 = vrot.slane %v588_v9, %v2192_v28  ;;  %v1041_v26 = vrot.slane %v588_v9, %v2194_v29  ;;  %v1045_v31 = vrot.slane %v588_v9, %v2196_v30 }
  0x71   : > { %v1402_v34 = vmax.f32 %v1400_v22, %v1401_v23  ;;  %v1346_v35 = vsel %vm2213_vm2, %v1033_v48, -inf  ;;  %v905_v36 = vrot.slane %v520_v63, %v2190_v27  ;;  %v909_v37 = vrot.slane %v520_v63, %v2192_v28 }
  0x72   : > { %1477 = vmax.xlane.f32.xlu1 %v1476_v25  ;;  %v1347_v59 = vsel %vm2217_vm3, %v1037_v8, -inf  ;;  %v1348_v39 = vsel %vm2221_vm4, %v1041_v26, -inf  ;;  %v1349_v40 = vsel %vm2225_vm5, %v1045_v31, -inf  ;;  %v1614_v41 = vsel %vm1370_vm1, %v1346_v35, -inf }
  0x73   : > { %v1404_v42 = vmax.f32 %v1402_v34, %v1403_v24  ;;  %v1615_v43 = vsel %vm1370_vm1, %v1347_v59, -inf  ;;  %v1617_v50 = vsel %vm1370_vm1, %v1348_v39, -inf  ;;  %v1619_v51 = vsel %vm1370_vm1, %v1349_v40, -inf }
  0x74   : > { %v1616_v53 = vmax.f32 %v1614_v41, %v1615_v43  ;;  %v913_v54 = vrot.slane %v520_v63, %v2194_v29  ;;  %v917_v55 = vrot.slane %v520_v63, %v2196_v30  ;;  %v1314_v60 = vsel %vm2213_vm2, %v905_v36, -inf }
  0x75   : > { %1405 = vmax.xlane.f32.xlu0 %v1404_v42  ;;  %v1315_v2 = vsel %vm2217_vm3, %v909_v37, -inf  ;;  %v1542_v56 = vsel %vm1370_vm1, %v1314_v60, -inf  ;;  %v403_v57 = vrot.slane %v2060_v58, %v2199_v32  ;;  %v417_v1 = vrot.slane %v2061_v38, %v2199_v32 }
  0x76   : > { %v1618_v5 = vmax.f32 %v1616_v53, %v1617_v50  ;;  %v1316_v6 = vsel %vm2221_vm4, %v913_v54, -inf  ;;  %v1317_v7 = vsel %vm2225_vm5, %v917_v55, -inf  ;;  %v1543_v10 = vsel %vm1370_vm1, %v1315_v2, -inf }
  0x77   : > { %v1544_v12 = vmax.f32 %v1542_v56, %v1543_v10  ;;  %v1545_v13 = vsel %vm1370_vm1, %v1316_v6, -inf  ;;  %v1547_v14 = vsel %vm1370_vm1, %v1317_v7, -inf  ;;  %v420_v15 = vcombine.low %v403_v57, %v417_v1 }
  0x78   : > { %v1620_v16 = vmax.f32 %v1618_v5, %v1619_v51  ;;  %v2596_v62 = vrot.slane %v2062_v52, %v2199_v32  ;;  %v2599_v49 = vrot.slane %v2063_v0, %v2199_v32  ;;  %v2602_v17 = vrot.slane %v2064_v61, %v2199_v32 }
  0x79   : > { %v1546_v9 = vmax.f32 %v1544_v12, %v1545_v13  ;;  %v2605_v63 = vrot.slane %v420_v15, %v2199_v32  ;;  %v2608_v18 = vrot.slane %v2065_v3, %v2199_v32  ;;  %v2611_v19 = vrot.slane %v2066_v4, %v2199_v32 }
  0x7a   : > { %1621 = vmax.xlane.f32.xlu1 %v1620_v16  ;;  %v352_v20 = vcombine.low %v2596_v62, %v2599_v49  ;;  %v2616_v21 = vrot.slane %v2067_v11, %v2199_v32  ;;  %v421_v22 = vcombine.high %v403_v57, %v417_v1  ;;  %v353_v23 = vcombine.high %v2596_v62, %v2599_v49 }
  0x7b   : > { %v1548_v24 = vmax.f32 %v1546_v9, %v1547_v14  ;;  %v793_v48 = vrot.slane %v2605_v63, %v2190_v27  ;;  %v797_v25 = vrot.slane %v2605_v63, %v2192_v28  ;;  %v801_v8 = vrot.slane %v2605_v63, %v2194_v29 }
  0x7c   : > { %v805_v26 = vrot.slane %v2605_v63, %v2196_v30  ;;  %v2629_v31 = vrot.slane %v352_v20, %v2199_v32  ;;  %v556_v34 = vcombine.low %v2602_v17, %v2608_v18  ;;  %v488_v35 = vcombine.low %v2611_v19, %v2616_v21 }
  0x7d   : > { %1549 = vmax.xlane.f32.xlu0 %v1548_v24  ;;  %v1286_v36 = vsel %vm2213_vm2, %v793_v48, -inf  ;;  %v1287_v37 = vsel %vm2217_vm3, %v797_v25, -inf  ;;  %v1288_v58 = vsel %vm2221_vm4, %v801_v8, -inf  ;;  %v2642_v38 = vrot.slane %v421_v22, %v2199_v32 }
  0x7e   : > { %v1289_v59 = vsel %vm2225_vm5, %v805_v26, -inf  ;;  %v1479_v39 = vsel %vm1370_vm1, %v1286_v36, -inf  ;;  %v1480_v40 = vsel %vm1370_vm1, %v1287_v37, -inf  ;;  %v1482_v41 = vsel %vm1370_vm1, %v1288_v58, -inf }
  0x7f   : > { %v1481_v42 = vmax.f32 %v1479_v39, %v1480_v40  ;;  %v1484_v43 = vsel %vm1370_vm1, %v1289_v59, -inf  ;;  %v665_v50 = vrot.slane %v2629_v31, %v2190_v27  ;;  %v669_v51 = vrot.slane %v2629_v31, %v2192_v28 }
  0x80   : > { %v673_v52 = vrot.slane %v2629_v31, %v2194_v29  ;;  %v677_v53 = vrot.slane %v2629_v31, %v2196_v30  ;;  %v2659_v54 = vrot.slane %v556_v34, %v2199_v32  ;;  %v2662_v55 = vrot.slane %v488_v35, %v2199_v32 }
  0x81   : > { %v1483_v60 = vmax.f32 %v1481_v42, %v1482_v41  ;;  %v1254_v0 = vsel %vm2213_vm2, %v665_v50, -inf  ;;  %v1255_v61 = vsel %vm2217_vm3, %v669_v51, -inf  ;;  %v809_v2 = vrot.slane %v2642_v38, %v2190_v27 }
  0x82   : > { %v1256_v56 = vsel %vm2221_vm4, %v673_v52, -inf  ;;  %v1257_v57 = vsel %vm2225_vm5, %v677_v53, -inf  ;;  %v1407_v1 = vsel %vm1370_vm1, %v1254_v0, -inf  ;;  %v1408_v3 = vsel %vm1370_vm1, %v1255_v61, -inf }
  0x83   : > { %v1485_v4 = vmax.f32 %v1483_v60, %v1484_v43  ;;  %v1409_v5 = vmax.f32 %v1407_v1, %v1408_v3  ;;  %v1410_v6 = vsel %vm1370_vm1, %v1256_v56, -inf  ;;  %v1412_v7 = vsel %vm1370_vm1, %v1257_v57, -inf }
  0x84   : > { %v1049_v10 = vrot.slane %v2659_v54, %v2190_v27  ;;  %v1053_v11 = vrot.slane %v2659_v54, %v2192_v28  ;;  %v1057_v12 = vrot.slane %v2659_v54, %v2194_v29  ;;  %v1061_v13 = vrot.slane %v2659_v54, %v2196_v30 }
  0x85   : > { %1486 = vmax.xlane.f32.xlu1 %v1485_v4  ;;  %v1411_v14 = vmax.f32 %v1409_v5, %v1410_v6  ;;  %v921_v15 = vrot.slane %v2662_v55, %v2190_v27  ;;  %v925_v16 = vrot.slane %v2662_v55, %v2192_v28  ;;  %v929_v9 = vrot.slane %v2662_v55, %v2194_v29 }
  0x86   : > { %v1350_v20 = vsel %vm2213_vm2, %v1049_v10, -inf  ;;  %v1351_v22 = vsel %vm2217_vm3, %v1053_v11, -inf  ;;  %v1352_v24 = vsel %vm2221_vm4, %v1057_v12, -inf  ;;  %v1353_v48 = vsel %vm2225_vm5, %v1061_v13, -inf }
  0x87   : > { %v1413_v25 = vmax.f32 %v1411_v14, %v1412_v7  ;;  %v1623_v8 = vsel %vm1370_vm1, %v1350_v20, -inf  ;;  %v1624_v26 = vsel %vm1370_vm1, %v1351_v22, -inf  ;;  %v1626_v34 = vsel %vm1370_vm1, %v1352_v24, -inf }
  0x88   : > { %v1625_v35 = vmax.f32 %v1623_v8, %v1624_v26  ;;  %v1628_v36 = vsel %vm1370_vm1, %v1353_v48, -inf  ;;  %v933_v37 = vrot.slane %v2662_v55, %v2196_v30  ;;  %v1318_v58 = vsel %vm2213_vm2, %v921_v15, -inf }
  0x89   : > { %1414 = vmax.xlane.f32.xlu0 %v1413_v25  ;;  %v1319_v59 = vsel %vm2217_vm3, %v925_v16, -inf  ;;  %v1320_v39 = vsel %vm2221_vm4, %v929_v9, -inf  ;;  %v1551_v40 = vsel %vm1370_vm1, %v1318_v58, -inf  ;;  %v813_v41 = vrot.slane %v2642_v38, %v2192_v28 }
  0x8a   : > { %v1627_v42 = vmax.f32 %v1625_v35, %v1626_v34  ;;  %v1321_v43 = vsel %vm2225_vm5, %v933_v37, -inf  ;;  %v1552_v50 = vsel %vm1370_vm1, %v1319_v59, -inf  ;;  %v1554_v51 = vsel %vm1370_vm1, %v1320_v39, -inf }
  0x8b   : > { %v1553_v52 = vmax.f32 %v1551_v40, %v1552_v50  ;;  %v1556_v53 = vsel %vm1370_vm1, %v1321_v43, -inf  ;;  %v817_v60 = vrot.slane %v2642_v38, %v2194_v29  ;;  %v821_v0 = vrot.slane %v2642_v38, %v2196_v30 }
  0x8c   : > { %v1629_v61 = vmax.f32 %v1627_v42, %v1628_v36  ;;  %v1290_v56 = vsel %vm2213_vm2, %v809_v2, -inf  ;;  %v1291_v57 = vsel %vm2217_vm3, %v813_v41, -inf  ;;  %v2732_v1 = vrot.slane %v353_v23, %v2199_v32 }
  0x8d   : > { %v1555_v3 = vmax.f32 %v1553_v52, %v1554_v51  ;;  %v1292_v4 = vsel %vm2221_vm4, %v817_v60, -inf  ;;  %v1293_v5 = vsel %vm2225_vm5, %v821_v0, -inf  ;;  %v1488_v6 = vsel %vm1370_vm1, %v1290_v56, -inf }
  0x8e   : > { %1630 = vmax.xlane.f32.xlu1 %v1629_v61  ;;  %v1489_v2 = vsel %vm1370_vm1, %v1291_v57, -inf  ;;  %v1491_v7 = vsel %vm1370_vm1, %v1292_v4, -inf  ;;  %v1493_v10 = vsel %vm1370_vm1, %v1293_v5, -inf  ;;  %v681_v62 = vrot.slane %v2732_v1, %v2190_v27 }
  0x8f   : > { %v1557_v49 = vmax.f32 %v1555_v3, %v1556_v53  ;;  %v1490_v23 = vmax.f32 %v1488_v6, %v1489_v2  ;;  %v685_v11 = vrot.slane %v2732_v1, %v2192_v28  ;;  %v689_v12 = vrot.slane %v2732_v1, %v2194_v29 }
  0x90   : > { %v693_v13 = vrot.slane %v2732_v1, %v2196_v30  ;;  %v1258_v14 = vsel %vm2213_vm2, %v681_v62, -inf  ;;  %v557_v15 = vcombine.high %v2602_v17, %v2608_v18  ;;  %v489_v16 = vcombine.high %v2611_v19, %v2616_v21 }
  0x91   : > { %1558 = vmax.xlane.f32.xlu0 %v1557_v49  ;;  %v1492_v9 = vmax.f32 %v1490_v23, %v1491_v7  ;;  %v1259_v20 = vsel %vm2217_vm3, %v685_v11, -inf  ;;  %v1260_v22 = vsel %vm2221_vm4, %v689_v12, -inf  ;;  %v1416_v24 = vsel %vm1370_vm1, %v1258_v14, -inf }
  0x92   : > { %v1261_v48 = vsel %vm2225_vm5, %v693_v13, -inf  ;;  %v1417_v25 = vsel %vm1370_vm1, %v1259_v20, -inf  ;;  %v1419_v17 = vsel %vm1370_vm1, %v1260_v22, -inf  ;;  %v2766_v18 = vrot.slane %v557_v15, %v2199_v32 }
  0x93   : > { %v1494_v19 = vmax.f32 %v1492_v9, %v1493_v10  ;;  %v1418_v21 = vmax.f32 %v1416_v24, %v1417_v25  ;;  %v1421_v8 = vsel %vm1370_vm1, %v1261_v48, -inf  ;;  %v2770_v26 = vrot.slane %v489_v16, %v2199_v32 }
  0x94   : > { %v1065_v34 = vrot.slane %v2766_v18, %v2190_v27  ;;  %v1069_v35 = vrot.slane %v2766_v18, %v2192_v28  ;;  %v1073_v36 = vrot.slane %v2766_v18, %v2194_v29  ;;  %v1077_v37 = vrot.slane %v2766_v18, %v2196_v30 }
  0x95   : > { %1495 = vmax.xlane.f32.xlu1 %v1494_v19  ;;  %v1420_v58 = vmax.f32 %v1418_v21, %v1419_v17  ;;  %v937_v59 = vrot.slane %v2770_v26, %v2190_v27  ;;  %v941_v32 = vrot.slane %v2770_v26, %v2192_v28  ;;  %v945_v39 = vrot.slane %v2770_v26, %v2194_v29 }
  0x96   : > { %v1354_v40 = vsel %vm2213_vm2, %v1065_v34, -inf  ;;  %v1355_v41 = vsel %vm2217_vm3, %v1069_v35, -inf  ;;  %v1356_v42 = vsel %vm2221_vm4, %v1073_v36, -inf  ;;  %v1357_v43 = vsel %vm2225_vm5, %v1077_v37, -inf }
  0x97   : > { %v1422_v50 = vmax.f32 %v1420_v58, %v1421_v8  ;;  %v1632_v51 = vsel %vm1370_vm1, %v1354_v40, -inf  ;;  %v1633_v52 = vsel %vm1370_vm1, %v1355_v41, -inf  ;;  %v1635_v53 = vsel %vm1370_vm1, %v1356_v42, -inf }
  0x98   : > { %v1634_v60 = vmax.f32 %v1632_v51, %v1633_v52  ;;  %v1637_v0 = vsel %vm1370_vm1, %v1357_v43, -inf  ;;  %v949_v61 = vrot.slane %v2770_v26, %v2196_v30  ;;  %v1322_v56 = vsel %vm2213_vm2, %v937_v59, -inf }
  0x99   : > { %1423 = vmax.xlane.f32.xlu0 %v1422_v50  ;;  %v1323_v57 = vsel %vm2217_vm3, %v941_v32, -inf  ;;  %v1324_v3 = vsel %vm2221_vm4, %v945_v39, -inf  ;;  %v1560_v4 = vsel %vm1370_vm1, %v1322_v56, -inf  ;;  %v451_v5 = vcombine.high %v2605_v63, %v2605_v63 }
  0x9a   : > { %v1636_v6 = vmax.f32 %v1634_v60, %v1635_v53  ;;  %v1325_v2 = vsel %vm2225_vm5, %v949_v61, -inf  ;;  %v1561_v7 = vsel %vm1370_vm1, %v1323_v57, -inf  ;;  %v1563_v10 = vsel %vm1370_vm1, %v1324_v3, -inf }
  0x9b   : > { %v1562_v62 = vmax.f32 %v1560_v4, %v1561_v7  ;;  %v1565_v49 = vsel %vm1370_vm1, %v1325_v2, -inf  ;;  %v825_v23 = vrot.slane %v451_v5, %v2190_v27  ;;  %v829_v11 = vrot.slane %v451_v5, %v2192_v28 }
  0x9c   : > { %v1638_v12 = vmax.f32 %v1636_v6, %v1637_v0  ;;  %v833_v13 = vrot.slane %v451_v5, %v2194_v29  ;;  %v837_v63 = vrot.slane %v451_v5, %v2196_v30  ;;  %v383_v14 = vcombine.high %v2629_v31, %v2629_v31 }
  0x9d   : > { %v1564_v15 = vmax.f32 %v1562_v62, %v1563_v10  ;;  %v1294_v16 = vsel %vm2213_vm2, %v825_v23, -inf  ;;  %v1295_v9 = vsel %vm2217_vm3, %v829_v11, -inf  ;;  %v587_v20 = vcombine.high %v2659_v54, %v2659_v54 }
  0x9e   : > { %1639 = vmax.xlane.f32.xlu1 %v1638_v12  ;;  %v1296_v22 = vsel %vm2221_vm4, %v833_v13, -inf  ;;  %v1297_v24 = vsel %vm2225_vm5, %v837_v63, -inf  ;;  %v1497_v48 = vsel %vm1370_vm1, %v1294_v16, -inf  ;;  %v1498_v31 = vsel %vm1370_vm1, %v1295_v9, -inf }
  0x9f   : > { %v1566_v25 = vmax.f32 %v1564_v15, %v1565_v49  ;;  %v1499_v17 = vmax.f32 %v1497_v48, %v1498_v31  ;;  %v1500_v19 = vsel %vm1370_vm1, %v1296_v22, -inf  ;;  %v1502_v21 = vsel %vm1370_vm1, %v1297_v24, -inf }
  0xa0   : > { %v697_v8 = vrot.slane %v383_v14, %v2190_v27  ;;  %v701_v54 = vrot.slane %v383_v14, %v2192_v28  ;;  %v705_v34 = vrot.slane %v383_v14, %v2194_v29  ;;  %v709_v35 = vrot.slane %v383_v14, %v2196_v30 }
  0xa1   : > { %1567 = vmax.xlane.f32.xlu0 %v1566_v25  ;;  %v1501_v36 = vmax.f32 %v1499_v17, %v1500_v19  ;;  %v1081_v37 = vrot.slane %v587_v20, %v2190_v27  ;;  %v1085_v58 = vrot.slane %v587_v20, %v2192_v28  ;;  %v1089_v59 = vrot.slane %v587_v20, %v2194_v29 }
  0xa2   : > { %v1262_v32 = vsel %vm2213_vm2, %v697_v8, -inf  ;;  %v1263_v39 = vsel %vm2217_vm3, %v701_v54, -inf  ;;  %v1264_v40 = vsel %vm2221_vm4, %v705_v34, -inf  ;;  %v1265_v41 = vsel %vm2225_vm5, %v709_v35, -inf }
  0xa3   : > { %v1503_v42 = vmax.f32 %v1501_v36, %v1502_v21  ;;  %v1425_v43 = vsel %vm1370_vm1, %v1262_v32, -inf  ;;  %v1426_v50 = vsel %vm1370_vm1, %v1263_v39, -inf  ;;  %v1428_v51 = vsel %vm1370_vm1, %v1264_v40, -inf }
  0xa4   : > { %v1427_v52 = vmax.f32 %v1425_v43, %v1426_v50  ;;  %v1430_v53 = vsel %vm1370_vm1, %v1265_v41, -inf  ;;  %v1093_v60 = vrot.slane %v587_v20, %v2196_v30  ;;  %v1358_v0 = vsel %vm2213_vm2, %v1081_v37, -inf }
  0xa5   : > { %1504 = vmax.xlane.f32.xlu1 %v1503_v42  ;;  %v1359_v61 = vsel %vm2217_vm3, %v1085_v58, -inf  ;;  %v1360_v56 = vsel %vm2221_vm4, %v1089_v59, -inf  ;;  %v1641_v57 = vsel %vm1370_vm1, %v1358_v0, -inf  ;;  %v519_v3 = vcombine.high %v2662_v55, %v2662_v55 }
  0xa6   : > { %v1429_v4 = vmax.f32 %v1427_v52, %v1428_v51  ;;  %v1361_v5 = vsel %vm2225_vm5, %v1093_v60, -inf  ;;  %v1642_v6 = vsel %vm1370_vm1, %v1359_v61, -inf  ;;  %v1644_v2 = vsel %vm1370_vm1, %v1360_v56, -inf }
  0xa7   : > { %v1643_v7 = vmax.f32 %v1641_v57, %v1642_v6  ;;  %v1646_v10 = vsel %vm1370_vm1, %v1361_v5, -inf  ;;  %v953_v62 = vrot.slane %v519_v3, %v2190_v27  ;;  %v957_v49 = vrot.slane %v519_v3, %v2192_v28 }
  0xa8   : > { %v1431_v23 = vmax.f32 %v1429_v4, %v1430_v53  ;;  %v961_v11 = vrot.slane %v519_v3, %v2194_v29  ;;  %v965_v55 = vrot.slane %v519_v3, %v2196_v30  ;;  %v453_v12 = vcombine.high %v2642_v38, %v2642_v38 }
  0xa9   : > { %v1645_v13 = vmax.f32 %v1643_v7, %v1644_v2  ;;  %v1326_v63 = vsel %vm2213_vm2, %v953_v62, -inf  ;;  %v1327_v14 = vsel %vm2217_vm3, %v957_v49, -inf  ;;  %v385_v15 = vcombine.high %v2732_v1, %v2732_v1 }
  0xaa   : > { %1432 = vmax.xlane.f32.xlu0 %v1431_v23  ;;  %v1328_v16 = vsel %vm2221_vm4, %v961_v11, -inf  ;;  %v1329_v9 = vsel %vm2225_vm5, %v965_v55, -inf  ;;  %v1569_v20 = vsel %vm1370_vm1, %v1326_v63, -inf  ;;  %v1570_v38 = vsel %vm1370_vm1, %v1327_v14, -inf }
  0xab   : > { %v1647_v22 = vmax.f32 %v1645_v13, %v1646_v10  ;;  %v1571_v24 = vmax.f32 %v1569_v20, %v1570_v38  ;;  %v1572_v48 = vsel %vm1370_vm1, %v1328_v16, -inf  ;;  %v1574_v31 = vsel %vm1370_vm1, %v1329_v9, -inf }
  0xac   : > { %v841_v25 = vrot.slane %v453_v12, %v2190_v27  ;;  %v845_v1 = vrot.slane %v453_v12, %v2192_v28  ;;  %v849_v17 = vrot.slane %v453_v12, %v2194_v29  ;;  %v853_v19 = vrot.slane %v453_v12, %v2196_v30 }
  0xad   : > { %1648 = vmax.xlane.f32.xlu1 %v1647_v22  ;;  %v1573_v21 = vmax.f32 %v1571_v24, %v1572_v48  ;;  %v713_v8 = vrot.slane %v385_v15, %v2190_v27  ;;  %v717_v54 = vrot.slane %v385_v15, %v2192_v28  ;;  %v721_v34 = vrot.slane %v385_v15, %v2194_v29 }
  0xae   : > { %v1298_v35 = vsel %vm2213_vm2, %v841_v25, -inf  ;;  %v1299_v36 = vsel %vm2217_vm3, %v845_v1, -inf  ;;  %v1300_v37 = vsel %vm2221_vm4, %v849_v17, -inf  ;;  %v1301_v58 = vsel %vm2225_vm5, %v853_v19, -inf }
  0xaf   : > { %v1575_v59 = vmax.f32 %v1573_v21, %v1574_v31  ;;  %v1506_v32 = vsel %vm1370_vm1, %v1298_v35, -inf  ;;  %v1507_v39 = vsel %vm1370_vm1, %v1299_v36, -inf  ;;  %v1509_v40 = vsel %vm1370_vm1, %v1300_v37, -inf }
  0xb0   : > { %v1508_v41 = vmax.f32 %v1506_v32, %v1507_v39  ;;  %v1511_v42 = vsel %vm1370_vm1, %v1301_v58, -inf  ;;  %v725_v43 = vrot.slane %v385_v15, %v2196_v30  ;;  %v1266_v50 = vsel %vm2213_vm2, %v713_v8, -inf }
  0xb1   : > { %1576 = vmax.xlane.f32.xlu0 %v1575_v59  ;;  %v1267_v51 = vsel %vm2217_vm3, %v717_v54, -inf  ;;  %v1268_v52 = vsel %vm2221_vm4, %v721_v34, -inf  ;;  %v1434_v53 = vsel %vm1370_vm1, %v1266_v50, -inf  ;;  %v589_v60 = vcombine.high %v2766_v18, %v2766_v18 }
  0xb2   : > { %v1510_v0 = vmax.f32 %v1508_v41, %v1509_v40  ;;  %v1269_v61 = vsel %vm2225_vm5, %v725_v43, -inf  ;;  %v1435_v56 = vsel %vm1370_vm1, %v1267_v51, -inf  ;;  %v1437_v57 = vsel %vm1370_vm1, %v1268_v52, -inf }
  0xb3   : > { %v1436_v3 = vmax.f32 %v1434_v53, %v1435_v56  ;;  %v1439_v4 = vsel %vm1370_vm1, %v1269_v61, -inf  ;;  %v1097_v5 = vrot.slane %v589_v60, %v2190_v27  ;;  %v1101_v6 = vrot.slane %v589_v60, %v2192_v28 }
  0xb4   : > { %v1512_v2 = vmax.f32 %v1510_v0, %v1511_v42  ;;  %v1105_v7 = vrot.slane %v589_v60, %v2194_v29  ;;  %v1109_v18 = vrot.slane %v589_v60, %v2196_v30  ;;  %v521_v10 = vcombine.high %v2770_v26, %v2770_v26 }
  0xb5   : > { %v1438_v62 = vmax.f32 %v1436_v3, %v1437_v57  ;;  %v1362_v49 = vsel %vm2213_vm2, %v1097_v5, -inf  ;;  %v1363_v23 = vsel %vm2217_vm3, %v1101_v6, -inf  ;;  %vm1831_vm11 = vcmask 1046534  }
  0xb6   : > { %1513 = vmax.xlane.f32.xlu1 %v1512_v2  ;;  %v1364_v11 = vsel %vm2221_vm4, %v1105_v7, -inf  ;;  %v1365_v55 = vsel %vm2225_vm5, %v1109_v18, -inf  ;;  %v1650_v12 = vsel %vm1370_vm1, %v1362_v49, -inf  ;;  %v1651_v13 = vsel %vm1370_vm1, %v1363_v23, -inf }
  0xb7   : > { %v1440_v63 = vmax.f32 %v1438_v62, %v1439_v4  ;;  %v1652_v26 = vmax.f32 %v1650_v12, %v1651_v13  ;;  %v1653_v14 = vsel %vm1370_vm1, %v1364_v11, -inf  ;;  %v1655_v15 = vsel %vm1370_vm1, %v1365_v55, -inf }
  0xb8   : > { %v969_v16 = vrot.slane %v521_v10, %v2190_v27  ;;  %v973_v9 = vrot.slane %v521_v10, %v2192_v28  ;;  %v977_v20 = vrot.slane %v521_v10, %v2194_v29  ;;  %v981_v38 = vrot.slane %v521_v10, %v2196_v30 }
  0xb9   : > { %1441 = vmax.xlane.f32.xlu0 %v1440_v63  ;;  %v1654_v22 = vmax.f32 %v1652_v26, %v1653_v14  ;;  %vm1833_vm12 = vcmask 1047559   ;;  %vm1864_vm13 = vcmask 15360  }
  0xba   : > { %v1330_v24 = vsel %vm2213_vm2, %v969_v16, -inf  ;;  %v1331_v48 = vsel %vm2217_vm3, %v973_v9, -inf  ;;  %v1332_v31 = vsel %vm2221_vm4, %v977_v20, -inf  ;;  %v1333_v27 = vsel %vm2225_vm5, %v981_v38, -inf }
  0xbb   : > { %v1656_v25 = vmax.f32 %v1654_v22, %v1655_v15  ;;  %v1578_v28 = vsel %vm1370_vm1, %v1330_v24, -inf  ;;  %v1579_v29 = vsel %vm1370_vm1, %v1331_v48, -inf  ;;  %v1581_v30 = vsel %vm1370_vm1, %v1332_v31, -inf  ;;  %v1367_v31 = vld [vmem:[#allocation2 + $0x8] sm:$0xff] }
  0xbc   : > { %v1580_v1 = vmax.f32 %v1578_v28, %v1579_v29  ;;  %v1583_v44 = vsel %vm1370_vm1, %v1333_v27, -inf  ;;  %vm2096_vm1 = vmmov (!%p1993_p10), 0   ;;  %vm1894_vm5 = vcmask (!%p1993_p10), 261120  }
  0xbd   : > { %1657 = vmax.xlane.f32.xlu1 %v1656_v25 }
  0xbe   : > { %v1582_v17 = vmax.f32 %v1580_v1, %v1581_v30 }
  0xc0   : > { %v1584_v45 = vmax.f32 %v1582_v17, %v1583_v44 }
  0xc2   : > { %1585 = vmax.xlane.f32.xlu0 %v1584_v45 }
  0xd0   : > { %v1451_v19 = vpop.xlane.xlu1 %1450 }
  0xd1   : > { %v1728_v6 = vrot.slane %v1451_v19, %v2201_v33 }
  0xd2   : > { %v1379_v46 = vpop.xlane.xlu0 %1378 }
  0xd3   : > { %v1696_v7 = vrot.slane %v1379_v46, %v2201_v33 }
  0xd7   : > { %v1460_v21 = vpop.xlane.xlu1 %1459 }
  0xd8   : > { %v1732_v57 = vrot.slane %v1460_v21, %v2201_v33 }
  0xda   : > { %v1388_v8 = vpop.xlane.xlu0 %1387  ;;  %v1835_v62 = vsel %vm1821_vm6, %v1732_v57, %v1728_v6 }
  0xdb   : > { %v1700_v3 = vrot.slane %v1388_v8, %v2201_v33 }
  0xdd   : > { %v1822_v11 = vsel %vm1821_vm6, %v1700_v3, %v1696_v7 }
  0xdf   : > { %v2956_v47 = vpop.xlane.xlu1 %1531 }
  0xe0   : > { %v1764_v25 = vrot.slane %v2956_v47, %v2201_v33  ;;  %v1366_v47 = vld [vmem:[#allocation2] sm:$0xff] }
  0xe2   : > { %v2958_v54 = vpop.xlane.xlu0 %1522 }
  0xe7   : > { %v2960_v34 = vpop.xlane.xlu1 %1603 }
  0xe8   : > { %v1796_v63 = vrot.slane %v2960_v34, %v2201_v33 }
  0xea   : > { %v1595_v35 = vpop.xlane.xlu0 %1594 }
  0xeb   : > { %v1792_v26 = vrot.slane %v1595_v35, %v2201_v33  ;;  %v1760_v35 = vrot.slane %v2958_v54, %v2201_v33 }
  0xed   : > { %v1849_v1 = vsel %vm1821_vm6, %v1796_v63, %v1792_v26 }
  0xef   : > { %v1469_v36 = vpop.xlane.xlu1 %1468 }
  0xf0   : > { %v1736_v4 = vrot.slane %v1469_v36, %v2201_v33 }
  0xf2   : > { %v1397_v37 = vpop.xlane.xlu0 %1396  ;;  %v1836_v55 = vsel %vm1823_vm7, %v1736_v4, %v1835_v62 }
  0xf3   : > { %v1704_v18 = vrot.slane %v1397_v37, %v2201_v33 }
  0xf5   : > { %v1824_v16 = vsel %vm1823_vm7, %v1704_v18, %v1822_v11 }
  0xf7   : > { %v2962_v58 = vpop.xlane.xlu1 %1612 }
  0xf8   : > { %v1800_v22 = vrot.slane %v2962_v58, %v2201_v33 }
  0xfa   : > { %v2964_v59 = vpop.xlane.xlu0 %1540  ;;  %v1850_v36 = vsel %vm1823_vm7, %v1800_v22, %v1849_v1 }
  0xff   : > { %v1478_v32 = vpop.xlane.xlu1 %1477 }
 0x100   : > { %v1740_v2 = vrot.slane %v1478_v32, %v2201_v33  ;;  %v1768_v32 = vrot.slane %v2964_v59, %v2201_v33 }
 0x102   : > { %v1406_v39 = vpop.xlane.xlu0 %1405  ;;  %v1837_v14 = vsel %vm1825_vm8, %v1740_v2, %v1836_v55 }
 0x103   : > { %v1708_v12 = vrot.slane %v1406_v39, %v2201_v33 }
 0x105   : > { %v1826_v28 = vsel %vm1825_vm8, %v1708_v12, %v1824_v16  ;;  %v2095_v12 = vmov (!%p1993_p10), 0.0  }
 0x106   : > { %2007 = vmatprep.subr.bf16.mxu0 (!%p1993_p10), %v2095_v12  ;;  %2011 = vmatprep.mubr.msk.bf16.mxu0 (!%p1993_p10), %vm2096_vm1, %v2095_v12 }
 0x107   : > { %v2966_v40 = vpop.xlane.xlu1 %1621 }
 0x108   : > { %v1804_v29 = vrot.slane %v2966_v40, %v2201_v33 }
 0x10a   : > { %v2968_v41 = vpop.xlane.xlu0 %1549  ;;  %v1851_v39 = vsel %vm1825_vm8, %v1804_v29, %v1850_v36 }
 0x112   : > { %v1487_v42 = vpop.xlane.xlu1 %1486 }
 0x113   : > { %v1744_v10 = vrot.slane %v1487_v42, %v2201_v33  ;;  %v1772_v42 = vrot.slane %v2968_v41, %v2201_v33 }
 0x115   : > { %v1838_v9 = vsel %vm1827_vm9, %v1744_v10, %v1837_v14  ;;  %v2097_v14 = vmov (!%p1993_p10), 0  }
 0x116   : > { %v1415_v43 = vpop.xlane.xlu0 %1414  ;;  %2068 = vset.pattern.permute.xlu0 (!%p1993_p10), %v2097_v14 }
 0x117   : > { %v1712_v15 = vrot.slane %v1415_v43, %v2201_v33 }
 0x119   : > { %v1828_v44 = vsel %vm1827_vm9, %v1712_v15, %v1826_v28  ;;  %v1887_v15 = vld [vmem:[%s3081_s2] sm:$0x3] (!%p1993_p10) }
 0x11b   : > { %v2970_v50 = vpop.xlane.xlu1 %1630 }
 0x11c   : > { %v1808_v17 = vrot.slane %v2970_v50, %v2201_v33 }
 0x11e   : > { %v2972_v51 = vpop.xlane.xlu0 %1558  ;;  %v1852_v54 = vsel %vm1827_vm9, %v1808_v17, %v1851_v39 }
 0x122   : > { %v1496_v52 = vpop.xlane.xlu1 %1495 }
 0x123   : > { %v1748_v49 = vrot.slane %v1496_v52, %v2201_v33  ;;  %v1776_v52 = vrot.slane %v2972_v51, %v2201_v33 }
 0x125   : > { %v1839_v24 = vsel %vm1829_vm10, %v1748_v49, %v1838_v9 }
 0x126   : > { %v1424_v53 = vpop.xlane.xlu0 %1423 }
 0x127   : > { %v1716_v20 = vrot.slane %v1424_v53, %v2201_v33 }
 0x129   : > { %v1830_v46 = vsel %vm1829_vm10, %v1716_v20, %v1828_v44 }
 0x12b   : > { %v2974_v60 = vpop.xlane.xlu1 %1639 }
 0x12c   : > { %v1812_v21 = vrot.slane %v2974_v60, %v2201_v33  ;;  %v1369_v60 = vld [vmem:[#allocation2 + $0x18] sm:$0xff] }
 0x12e   : > { %v2976_v0 = vpop.xlane.xlu0 %1567  ;;  %v1853_v53 = vsel %vm1829_vm10, %v1812_v21, %v1852_v54 }
 0x132   : > { %v1505_v61 = vpop.xlane.xlu1 %1504 }
 0x133   : > { %v1752_v13 = vrot.slane %v1505_v61, %v2201_v33  ;;  %v1842_v61 = vsel %vm1821_vm6, %v1764_v25, %v1760_v35  ;;  %vm1938_vm6 = vcmask (!%p1993_p10), 11264  }
 0x134   : > { %v1843_v41 = vsel %vm1823_vm7, %v1768_v32, %v1842_v61 }
 0x135   : > { %v1840_v30 = vsel %vm1831_vm11, %v1752_v13, %v1839_v24  ;;  %v1844_v4 = vsel %vm1825_vm8, %v1772_v42, %v1843_v41 }
 0x136   : > { %v1845_v6 = vsel %vm1827_vm9, %v1776_v52, %v1844_v4 }
 0x137   : > { %v1433_v56 = vpop.xlane.xlu0 %1432 }
 0x138   : > { %v1720_v48 = vrot.slane %v1433_v56, %v2201_v33  ;;  %v1780_v56 = vrot.slane %v2976_v0, %v2201_v33  ;;  %v1368_v0 = vld [vmem:[#allocation2 + $0x10] sm:$0xff] }
 0x13a   : > { %v2981_v5 = vpop.xlane.xlu1 %1648  ;;  %v1832_v37 = vsel %vm1831_vm11, %v1720_v48, %v1830_v46  ;;  %v1846_v7 = vsel %vm1829_vm10, %v1780_v56, %v1845_v6 }
 0x13b   : > { %v1816_v58 = vrot.slane %v2981_v5, %v2201_v33 }
 0x13d   : > { %v1854_v57 = vsel %vm1831_vm11, %v1816_v58, %v1853_v53 }
 0x13e   : > { %v2990_v23 = vpop.xlane.xlu0 %1576 }
 0x13f   : > { %v1784_v3 = vrot.slane %v2990_v23, %v2201_v33 }
 0x141   : > { %v1847_v10 = vsel %vm1831_vm11, %v1784_v3, %v1846_v7 }
 0x143   : > { %v1514_v38 = vpop.xlane.xlu1 %1513 }
 0x144   : > { %v1756_v27 = vrot.slane %v1514_v38, %v2201_v33 }
 0x146   : > { %v1841_v45 = vsel %vm1833_vm12, %v1756_v27, %v1840_v30  ;;  %v1442_v19 = vpop.xlane.xlu0 %1441 }
 0x147   : > { %v1861_v8 = vmax.f32 %v1367_v31, %v1841_v45  ;;  %v1724_v34 = vrot.slane %v1442_v19, %v2201_v33 }
 0x149   : > { %1866 = vst.msk [vmem:[#allocation2 + $0x8] sm:$0xff] %vm1864_vm13, %v1861_v8  ;;  %v1834_v40 = vsel %vm1833_vm12, %v1724_v34, %v1832_v37 }
 0x14a   : > { %v1860_v43 = vmax.f32 %v1366_v47, %v1834_v40  ;;  %v1658_v50 = vpop.xlane.xlu1 %1657 }
 0x14b   : > { %v1820_v59 = vrot.slane %v1658_v50, %v2201_v33 }
 0x14c   : > { %1865 = vst.msk [vmem:[#allocation2] sm:$0xff] %vm1864_vm13, %v1860_v43 }
 0x14d   : > { %v1855_v51 = vsel %vm1833_vm12, %v1820_v59, %v1854_v57 }
 0x14e   : > { %v1863_v5 = vmax.f32 %v1369_v60, %v1855_v51 }
 0x14f   : > { %v1586_v2 = vpop.xlane.xlu0 %1585  ;;  %1872 = sbr.rel (%p1993_p10) target bundleno = 569 (0x239), region = 67 }
 0x150   : > { %1868 = vst.msk [vmem:[#allocation2 + $0x18] sm:$0xff] %vm1864_vm13, %v1863_v5  ;;  %v1788_v18 = vrot.slane %v1586_v2, %v2201_v33  ;;  %v1874_v11 = vld [vmem:[#allocation2 + $0x8] sm:$0xff] (!%p1993_p10)  ;;  %v1888_v33 = vld [vmem:[%s3082_s3] sm:$0xf] (!%p1993_p10) }
 0x151   : > { %vm1878_vm15 = vcmp.gt.f32.partialorder (!%p1993_p10), %v1874_v11, -inf  ;;  %1891 = vperm.xlu0 (!%p1993_p10), %2068, %v1888_v33  }
 0x152   : > { %v1848_v62 = vsel %vm1833_vm12, %v1788_v18, %v1847_v10 }
 0x153   : > { %v1862_v49 = vmax.f32 %v1368_v0, %v1848_v62  ;;  %v1873_v23 = vld [vmem:[#allocation2] sm:$0xff] (!%p1993_p10) }
 0x154   : > { %vm1877_vm14 = vcmp.gt.f32.partialorder (!%p1993_p10), %v1873_v23, -inf  ;;  %v1995_v13 = vpack.c.bf16 (!%p1993_p10), %v1874_v11, %v1873_v23 }
 0x155   : > { %1867 = vst.msk [vmem:[#allocation2 + $0x10] sm:$0xff] %vm1864_vm13, %v1862_v49  ;;  %vm1994_vm2 = vmpackc.low (!%p1993_p10), %vm1878_vm15, %vm1877_vm14 }
 0x156   : > { %2008 = vmatpush3.bf16.msk.msra.mxu0 %vm1994_vm2, %v1995_v13 }
 0x157   : > { %v1876_v63 = vld [vmem:[#allocation2 + $0x18] sm:$0xff]  ;;  %2009 = vmatprep.subr.bf16.mxu0 %v2095_v12 }
 0x158   : > { %vm1880_vm3 = vcmp.gt.f32.partialorder %v1876_v63, -inf }
 0x15c   : > { %v1875_v55 = vld [vmem:[#allocation2 + $0x10] sm:$0xff] }
 0x15d   : > { %vm1879_vm0 = vcmp.gt.f32.partialorder %v1875_v55, -inf  ;;  %v1998_v26 = vpack.c.bf16 %v1876_v63, %v1875_v55 }
 0x15e   : > { %vm1997_vm4 = vmpackc.low %vm1880_vm3, %vm1879_vm0 }
 0x15f   : > { %2010 = vmatpush3.bf16.msk.msra.mxu0 %vm1997_vm4, %v1998_v26 }
 0x162   : > { %2012 = vmatmul.mubr.msk.bf16.vlgmr.msra.gmra.mrb[0].mxu0 %vm1894_vm5, %v1887_v15 }
 0x1d0   : > { %v1892_v16 = vpop.permute.xlu0 %1891 }
 0x235   : > { %v1932_v9 = vpop.f32.mrb[0].mxu0 }
 0x236   : > { %v1933_v20 = vadd.f32 %v1932_v9, %v1892_v16  ;;  %v2013_v38 = vpop.f32.mrb[1].mxu0 }
 0x237   : > { %v1935_v22 = vpop.f32.mrb[2].mxu0 }
 0x238   : > { %1939 = vst.msk [vmem:[%s3083_s4] sm:$0xf] %vm1938_vm6, %v1933_v20  ;;  %v2014_v24 = vpop.f32.mrb[3].mxu0 }
 0x239 PF: > { %p11_p11 = scmp.ge.s32.totalorder %s2142_s19, 4   ;;  %s3092_s15 = smov %s2087_s16 }
 0x23a   : > { %s3093_s16 = smov %s2151_s22  ;;  %s3094_s17 = smov %s2142_s19 }
 0x23b   :  { %13 = sbr.rel (!%p11_p11) target bundleno = 2 (0x2), region = 101 }

</bundles_post_ra>
